<compile_context>
chip_gen: v7x
topology: tpu7x:2x2x1
jax: 0.10.0
libtpu: 0.0.40
codegen_flags: <defaults>
</compile_context>

<pallas_src>
import functools

import jax
import jax.numpy as jnp
from jax import lax
from jax.experimental import pallas as pl
from jax.experimental.pallas import tpu as pltpu


def _sliding_max(a, k, axis):
    """Sliding max of odd width k, stride 1, implicit -inf padding (k//2 per side)."""
    r = k // 2
    n = a.shape[axis]
    pad_shape = list(a.shape)
    pad_shape[axis] = r
    pad = jnp.full(tuple(pad_shape), -jnp.inf, dtype=a.dtype)
    ap = jnp.concatenate([pad, a, pad], axis=axis)
    out = lax.slice_in_dim(ap, 0, n, axis=axis)
    for d in range(1, k):
        out = jnp.maximum(out, lax.slice_in_dim(ap, d, d + n, axis=axis))
    return out


def _maxpool2d_same(a, k):
    """MaxPool2d(kernel=k, stride=1, padding=k//2) on a (H, W, C) array, separable."""
    return _sliding_max(_sliding_max(a, k, axis=0), k, axis=1)


def _spp_kernel(x_ref, w1_ref, b1_ref, w2_ref, b2_ref, o_ref, *,
                kernel_sizes, spatial_hw):
    H, W = spatial_hw
    S = H * W
    Chid = w1_ref.shape[1]

    # ---- conv1 (1x1) + folded BN + SiLU: (S, Cin) @ (Cin, Chid) --------------
    xf = x_ref[0]                                                   # (S, Cin)
    y = jnp.dot(xf, w1_ref[...], preferred_element_type=jnp.float32) + b1_ref[...]
    y = y * jax.nn.sigmoid(y)                                       # SiLU
    y3 = y.reshape(H, W, Chid)

    # ---- SPP max-pool branches (stride 1, 'same', implicit -inf padding) ----
    # Cascade: a k-window max of a p-window max is a (k+p-1)-window max, so for
    # (5, 9, 13) each branch is just a 5-tap separable pool of the previous one.
    branches = [y]
    prev, prev_k = y3, 1
    for ks in kernel_sizes:
        if ks > prev_k and (ks - prev_k) % 2 == 0:
            p = _maxpool2d_same(prev, ks - prev_k + 1)
        else:                       # fallback: pool the conv1 output directly
            p = _maxpool2d_same(y3, ks)
        branches.append(p.reshape(S, Chid))
        prev, prev_k = p, ks

    # ---- conv2 (1x1) + folded BN + SiLU --------------------------------------
    # The channel concat is folded away: one matmul per branch, accumulated.
    z = b2_ref[...]                                                 # (1, Cout)
    for i, br in enumerate(branches):
        z = z + jnp.dot(br, w2_ref[i], preferred_element_type=jnp.float32)
    z = z * jax.nn.sigmoid(z)                                       # SiLU
    o_ref[0] = z.astype(o_ref.dtype)


@functools.partial(jax.jit, static_argnames=("kernel_sizes",))
def spp_bottleneck_forward(x,
                           conv1_w, bn1_gamma, bn1_beta, bn1_mean, bn1_var,
                           conv2_w, bn2_gamma, bn2_beta, bn2_mean, bn2_var,
                           *, kernel_sizes=(5, 9, 13)):
    """SPPBottleneck forward.

    x:        [B, Cin, H, W]                 (NCHW, like PyTorch)
    conv1_w:  [Chid, Cin, 1, 1]              (Chid = Cin // 2)
    conv2_w:  [Cout, (len(ks)+1)*Chid, 1, 1]
    bn*_*:    per-output-channel BatchNorm params (eval mode)
    returns:  [B, Cout, H, W]                (NCHW)
    """
    eps = 1e-5
    f32 = jnp.float32
    B, Cin, H, W = x.shape
    Chid = conv1_w.shape[0]
    Cout = conv2_w.shape[0]
    n_branch = len(kernel_sizes) + 1
    S = H * W

    # NCHW -> channels-last, flattened spatial (one transpose pass; the reshape
    # is free on a contiguous buffer). Lane axis = channels.
    x_flat = jnp.transpose(x, (0, 2, 3, 1)).reshape(B, S, Cin).astype(f32)

    # Fold eval-mode BatchNorm into the 1x1 conv weights / biases.
    inv1 = 1.0 / jnp.sqrt(bn1_var.astype(f32) + eps)
    s1 = bn1_gamma.astype(f32) * inv1
    w1_eff = (conv1_w[:, :, 0, 0].astype(f32) * s1[:, None]).T          # (Cin, Chid)
    b1_eff = (bn1_beta.astype(f32) - bn1_mean.astype(f32) * s1).reshape(1, Chid)

    inv2 = 1.0 / jnp.sqrt(bn2_var.astype(f32) + eps)
    s2 = bn2_gamma.astype(f32) * inv2
    w2_scaled = conv2_w[:, :, 0, 0].astype(f32) * s2[:, None]           # (Cout, n_branch*Chid)
    # Split conv2's input-channel axis per branch: (n_branch, Chid, Cout).
    w2_eff = w2_scaled.reshape(Cout, n_branch, Chid).transpose(1, 2, 0)
    b2_eff = (bn2_beta.astype(f32) - bn2_mean.astype(f32) * s2).reshape(1, Cout)

    kernel = functools.partial(_spp_kernel,
                               kernel_sizes=tuple(kernel_sizes),
                               spatial_hw=(H, W))

    flops = 2 * B * S * Chid * (Cin + n_branch * Cout)
    transcendentals = B * S * (Chid + Cout)
    bytes_accessed = 4 * (x_flat.size + B * S * Cout
                          + w1_eff.size + w2_eff.size + b1_eff.size + b2_eff.size)

    out_flat = pl.pallas_call(
        kernel,
        out_shape=jax.ShapeDtypeStruct((B, S, Cout), f32),
        grid_spec=pltpu.PrefetchScalarGridSpec(
            num_scalar_prefetch=0,
            grid=(B,),
            in_specs=[
                pl.BlockSpec((1, S, Cin), lambda b: (b, 0, 0)),
                pl.BlockSpec((Cin, Chid), lambda b: (0, 0)),
                pl.BlockSpec((1, Chid), lambda b: (0, 0)),
                pl.BlockSpec((n_branch, Chid, Cout), lambda b: (0, 0, 0)),
                pl.BlockSpec((1, Cout), lambda b: (0, 0)),
            ],
            out_specs=pl.BlockSpec((1, S, Cout), lambda b: (b, 0, 0)),
        ),
        compiler_params=pltpu.CompilerParams(
            dimension_semantics=("parallel",),
            vmem_limit_bytes=64 * 1024 * 1024),
        cost_estimate=pl.CostEstimate(
            flops=flops, transcendentals=transcendentals,
            bytes_accessed=bytes_accessed),
    )(x_flat, w1_eff, b1_eff, w2_eff, b2_eff)

    # channels-last flattened -> NCHW
    return jnp.transpose(out_flat.reshape(B, H, W, Cout), (0, 3, 1, 2))


def _reference(x, conv1_w, g1, b1, m1, v1, conv2_w, g2, b2, m2, v2,
               kernel_sizes=(5, 9, 13)):
    """Pure-JAX reference mirroring the PyTorch module (eval-mode BN)."""
    eps = 1e-5

    def base_conv(inp, w, g, b, m, v):
        y = jnp.einsum("bchw,oc->bohw", inp.astype(jnp.float32),
                       w[:, :, 0, 0].astype(jnp.float32))
        inv = 1.0 / jnp.sqrt(v + eps)
        y = (y - m[None, :, None, None]) * inv[None, :, None, None]
        y = y * g[None, :, None, None] + b[None, :, None, None]
        return y * jax.nn.sigmoid(y)

    y = base_conv(x, conv1_w, g1, b1, m1, v1)
    branches = [y]
    for ks in kernel_sizes:
        r = ks // 2
        yp = jnp.pad(y, ((0, 0), (0, 0), (r, r), (r, r)),
                     constant_values=-jnp.inf)
        p = lax.reduce_window(yp, -jnp.inf, lax.max,
                              (1, 1, ks, ks), (1, 1, 1, 1), "VALID")
        branches.append(p)
    cat = jnp.concatenate(branches, axis=1)
    return base_conv(cat, conv2_w, g2, b2, m2, v2)


if __name__ == "__main__":
    key = jax.random.PRNGKey(0)
    keys = jax.random.split(key, 12)

    B, Cin, H, W = 2, 4, 16, 16
    Chid = Cin // 2                      # hidden_channels = in_channels // 2
    kernel_sizes = (5, 9, 13)
    Cout = 8
    C2in = Chid * (len(kernel_sizes) + 1)

    x = jax.random.normal(keys[0], (B, Cin, H, W), dtype=jnp.float32)

    conv1_w = jax.random.normal(keys[1], (Chid, Cin, 1, 1), jnp.float32) * 0.3
    bn1_gamma = 1.0 + 0.1 * jax.random.normal(keys[2], (Chid,), jnp.float32)
    bn1_beta = 0.1 * jax.random.normal(keys[3], (Chid,), jnp.float32)
    bn1_mean = 0.1 * jax.random.normal(keys[4], (Chid,), jnp.float32)
    bn1_var = jnp.abs(jax.random.normal(keys[5], (Chid,), jnp.float32)) + 0.5

    conv2_w = jax.random.normal(keys[6], (Cout, C2in, 1, 1), jnp.float32) * 0.2
    bn2_gamma = 1.0 + 0.1 * jax.random.normal(keys[7], (Cout,), jnp.float32)
    bn2_beta = 0.1 * jax.random.normal(keys[8], (Cout,), jnp.float32)
    bn2_mean = 0.1 * jax.random.normal(keys[9], (Cout,), jnp.float32)
    bn2_var = jnp.abs(jax.random.normal(keys[10], (Cout,), jnp.float32)) + 0.5

    out = spp_bottleneck_forward(
        x, conv1_w, bn1_gamma, bn1_beta, bn1_mean, bn1_var,
        conv2_w, bn2_gamma, bn2_beta, bn2_mean, bn2_var,
        kernel_sizes=kernel_sizes)
    out = jax.block_until_ready(out)

    ref = _reference(x, conv1_w, bn1_gamma, bn1_beta, bn1_mean, bn1_var,
                     conv2_w, bn2_gamma, bn2_beta, bn2_mean, bn2_var,
                     kernel_sizes)

    assert out.shape == (B, Cout, H, W), out.shape
    max_err = float(jnp.max(jnp.abs(out - ref)))
    assert jnp.allclose(out, ref, atol=1e-4, rtol=1e-4), max_err

    print("KERNEL_OK")
</pallas_src>

<mosaic_0001>
module attributes {stable_mosaic.version = 11 : i64} {
  func.func @_spp_kernel(%arg0: i32, %arg1: memref<1x256x4xf32, #tpu.memory_space<vmem>>, %arg2: memref<4x2xf32, #tpu.memory_space<vmem>>, %arg3: memref<1x2xf32, #tpu.memory_space<vmem>>, %arg4: memref<4x2x8xf32, #tpu.memory_space<vmem>>, %arg5: memref<1x8xf32, #tpu.memory_space<vmem>>, %arg6: memref<1x256x8xf32, #tpu.memory_space<vmem>>) attributes {dimension_semantics = [#tpu.dimension_semantics<parallel>], iteration_bounds = array<i64: 2>, scalar_prefetch = 0 : i64, scratch_operands = 0 : i64, tpu.core_type = #tpu.core_type<tc>, window_params = [{transform_indices = @transform_0, window_bounds = array<i64: 1, 256, 4>}, {pipeline_mode = #tpu.pipeline_mode<synchronous>, transform_indices = @transform_1, window_bounds = array<i64: 4, 2>}, {pipeline_mode = #tpu.pipeline_mode<synchronous>, transform_indices = @transform_2, window_bounds = array<i64: 1, 2>}, {pipeline_mode = #tpu.pipeline_mode<synchronous>, transform_indices = @transform_3, window_bounds = array<i64: 4, 2, 8>}, {pipeline_mode = #tpu.pipeline_mode<synchronous>, transform_indices = @transform_4, window_bounds = array<i64: 1, 8>}, {transform_indices = @transform_5, window_bounds = array<i64: 1, 256, 8>}]} {
    %c0 = arith.constant 0 : index
    %c0_0 = arith.constant 0 : index
    %c0_1 = arith.constant 0 : index
    %0 = vector.load %arg1[%c0, %c0_0, %c0_1] : memref<1x256x4xf32, #tpu.memory_space<vmem>>, vector<1x256x4xf32>
    %1 = vector.shape_cast %0 : vector<1x256x4xf32> to vector<256x4xf32>
    %c0_2 = arith.constant 0 : index
    %c0_3 = arith.constant 0 : index
    %2 = vector.load %arg2[%c0_2, %c0_3] : memref<4x2xf32, #tpu.memory_space<vmem>>, vector<4x2xf32>
    %cst = arith.constant dense<0.000000e+00> : vector<256x2xf32>
    %3 = tpu.matmul %1, %2, %cst {dimension_numbers = #tpu.dot_dimension_numbers<[1], [0], [0], [1], [0, 0, 1, 1], [], []>} : vector<256x4xf32>, vector<4x2xf32>, vector<256x2xf32> -> vector<256x2xf32>
    %c0_4 = arith.constant 0 : index
    %c0_5 = arith.constant 0 : index
    %4 = vector.load %arg3[%c0_4, %c0_5] : memref<1x2xf32, #tpu.memory_space<vmem>>, vector<1x2xf32>
    %5 = vector.broadcast %4 : vector<1x2xf32> to vector<256x2xf32>
    %6 = arith.addf %3, %5 : vector<256x2xf32>
    %7 = arith.negf %6 : vector<256x2xf32>
    %8 = math.exp %7 : vector<256x2xf32>
    %cst_6 = arith.constant 1.000000e+00 : f32
    %9 = vector.broadcast %cst_6 : f32 to vector<256x2xf32>
    %10 = arith.addf %9, %8 : vector<256x2xf32>
    %11 = arith.divf %9, %10 : vector<256x2xf32>
    %12 = arith.mulf %6, %11 : vector<256x2xf32>
    %13 = vector.shape_cast %12 : vector<256x2xf32> to vector<16x16x2xf32>
    %cst_7 = arith.constant 0xFF800000 : f32
    %14 = vector.broadcast %cst_7 : f32 to vector<2x16x2xf32>
    %15 = tpu.concatenate %14, %13, %14 in 0 : vector<2x16x2xf32>, vector<16x16x2xf32>, vector<2x16x2xf32> -> vector<20x16x2xf32>
    %16 = vector.extract_strided_slice %15 {offsets = [0, 0, 0], sizes = [16, 16, 2], strides = [1, 1, 1]} : vector<20x16x2xf32> to vector<16x16x2xf32>
    %17 = vector.extract_strided_slice %15 {offsets = [1, 0, 0], sizes = [16, 16, 2], strides = [1, 1, 1]} : vector<20x16x2xf32> to vector<16x16x2xf32>
    %18 = arith.maximumf %16, %17 : vector<16x16x2xf32>
    %19 = vector.extract_strided_slice %15 {offsets = [2, 0, 0], sizes = [16, 16, 2], strides = [1, 1, 1]} : vector<20x16x2xf32> to vector<16x16x2xf32>
    %20 = arith.maximumf %18, %19 : vector<16x16x2xf32>
    %21 = vector.extract_strided_slice %15 {offsets = [3, 0, 0], sizes = [16, 16, 2], strides = [1, 1, 1]} : vector<20x16x2xf32> to vector<16x16x2xf32>
    %22 = arith.maximumf %20, %21 : vector<16x16x2xf32>
    %23 = vector.extract_strided_slice %15 {offsets = [4, 0, 0], sizes = [16, 16, 2], strides = [1, 1, 1]} : vector<20x16x2xf32> to vector<16x16x2xf32>
    %24 = arith.maximumf %22, %23 : vector<16x16x2xf32>
    %cst_8 = arith.constant 0xFF800000 : f32
    %25 = vector.broadcast %cst_8 : f32 to vector<16x2x2xf32>
    %26 = tpu.concatenate %25, %24, %25 in 1 : vector<16x2x2xf32>, vector<16x16x2xf32>, vector<16x2x2xf32> -> vector<16x20x2xf32>
    %27 = vector.extract_strided_slice %26 {offsets = [0, 0, 0], sizes = [16, 16, 2], strides = [1, 1, 1]} : vector<16x20x2xf32> to vector<16x16x2xf32>
    %28 = vector.extract_strided_slice %26 {offsets = [0, 1, 0], sizes = [16, 16, 2], strides = [1, 1, 1]} : vector<16x20x2xf32> to vector<16x16x2xf32>
    %29 = arith.maximumf %27, %28 : vector<16x16x2xf32>
    %30 = vector.extract_strided_slice %26 {offsets = [0, 2, 0], sizes = [16, 16, 2], strides = [1, 1, 1]} : vector<16x20x2xf32> to vector<16x16x2xf32>
    %31 = arith.maximumf %29, %30 : vector<16x16x2xf32>
    %32 = vector.extract_strided_slice %26 {offsets = [0, 3, 0], sizes = [16, 16, 2], strides = [1, 1, 1]} : vector<16x20x2xf32> to vector<16x16x2xf32>
    %33 = arith.maximumf %31, %32 : vector<16x16x2xf32>
    %34 = vector.extract_strided_slice %26 {offsets = [0, 4, 0], sizes = [16, 16, 2], strides = [1, 1, 1]} : vector<16x20x2xf32> to vector<16x16x2xf32>
    %35 = arith.maximumf %33, %34 : vector<16x16x2xf32>
    %36 = vector.shape_cast %35 : vector<16x16x2xf32> to vector<256x2xf32>
    %cst_9 = arith.constant 0xFF800000 : f32
    %37 = vector.broadcast %cst_9 : f32 to vector<2x16x2xf32>
    %38 = tpu.concatenate %37, %35, %37 in 0 : vector<2x16x2xf32>, vector<16x16x2xf32>, vector<2x16x2xf32> -> vector<20x16x2xf32>
    %39 = vector.extract_strided_slice %38 {offsets = [0, 0, 0], sizes = [16, 16, 2], strides = [1, 1, 1]} : vector<20x16x2xf32> to vector<16x16x2xf32>
    %40 = vector.extract_strided_slice %38 {offsets = [1, 0, 0], sizes = [16, 16, 2], strides = [1, 1, 1]} : vector<20x16x2xf32> to vector<16x16x2xf32>
    %41 = arith.maximumf %39, %40 : vector<16x16x2xf32>
    %42 = vector.extract_strided_slice %38 {offsets = [2, 0, 0], sizes = [16, 16, 2], strides = [1, 1, 1]} : vector<20x16x2xf32> to vector<16x16x2xf32>
    %43 = arith.maximumf %41, %42 : vector<16x16x2xf32>
    %44 = vector.extract_strided_slice %38 {offsets = [3, 0, 0], sizes = [16, 16, 2], strides = [1, 1, 1]} : vector<20x16x2xf32> to vector<16x16x2xf32>
    %45 = arith.maximumf %43, %44 : vector<16x16x2xf32>
    %46 = vector.extract_strided_slice %38 {offsets = [4, 0, 0], sizes = [16, 16, 2], strides = [1, 1, 1]} : vector<20x16x2xf32> to vector<16x16x2xf32>
    %47 = arith.maximumf %45, %46 : vector<16x16x2xf32>
    %cst_10 = arith.constant 0xFF800000 : f32
    %48 = vector.broadcast %cst_10 : f32 to vector<16x2x2xf32>
    %49 = tpu.concatenate %48, %47, %48 in 1 : vector<16x2x2xf32>, vector<16x16x2xf32>, vector<16x2x2xf32> -> vector<16x20x2xf32>
    %50 = vector.extract_strided_slice %49 {offsets = [0, 0, 0], sizes = [16, 16, 2], strides = [1, 1, 1]} : vector<16x20x2xf32> to vector<16x16x2xf32>
    %51 = vector.extract_strided_slice %49 {offsets = [0, 1, 0], sizes = [16, 16, 2], strides = [1, 1, 1]} : vector<16x20x2xf32> to vector<16x16x2xf32>
    %52 = arith.maximumf %50, %51 : vector<16x16x2xf32>
    %53 = vector.extract_strided_slice %49 {offsets = [0, 2, 0], sizes = [16, 16, 2], strides = [1, 1, 1]} : vector<16x20x2xf32> to vector<16x16x2xf32>
    %54 = arith.maximumf %52, %53 : vector<16x16x2xf32>
    %55 = vector.extract_strided_slice %49 {offsets = [0, 3, 0], sizes = [16, 16, 2], strides = [1, 1, 1]} : vector<16x20x2xf32> to vector<16x16x2xf32>
    %56 = arith.maximumf %54, %55 : vector<16x16x2xf32>
    %57 = vector.extract_strided_slice %49 {offsets = [0, 4, 0], sizes = [16, 16, 2], strides = [1, 1, 1]} : vector<16x20x2xf32> to vector<16x16x2xf32>
    %58 = arith.maximumf %56, %57 : vector<16x16x2xf32>
    %59 = vector.shape_cast %58 : vector<16x16x2xf32> to vector<256x2xf32>
    %cst_11 = arith.constant 0xFF800000 : f32
    %60 = vector.broadcast %cst_11 : f32 to vector<2x16x2xf32>
    %61 = tpu.concatenate %60, %58, %60 in 0 : vector<2x16x2xf32>, vector<16x16x2xf32>, vector<2x16x2xf32> -> vector<20x16x2xf32>
    %62 = vector.extract_strided_slice %61 {offsets = [0, 0, 0], sizes = [16, 16, 2], strides = [1, 1, 1]} : vector<20x16x2xf32> to vector<16x16x2xf32>
    %63 = vector.extract_strided_slice %61 {offsets = [1, 0, 0], sizes = [16, 16, 2], strides = [1, 1, 1]} : vector<20x16x2xf32> to vector<16x16x2xf32>
    %64 = arith.maximumf %62, %63 : vector<16x16x2xf32>
    %65 = vector.extract_strided_slice %61 {offsets = [2, 0, 0], sizes = [16, 16, 2], strides = [1, 1, 1]} : vector<20x16x2xf32> to vector<16x16x2xf32>
    %66 = arith.maximumf %64, %65 : vector<16x16x2xf32>
    %67 = vector.extract_strided_slice %61 {offsets = [3, 0, 0], sizes = [16, 16, 2], strides = [1, 1, 1]} : vector<20x16x2xf32> to vector<16x16x2xf32>
    %68 = arith.maximumf %66, %67 : vector<16x16x2xf32>
    %69 = vector.extract_strided_slice %61 {offsets = [4, 0, 0], sizes = [16, 16, 2], strides = [1, 1, 1]} : vector<20x16x2xf32> to vector<16x16x2xf32>
    %70 = arith.maximumf %68, %69 : vector<16x16x2xf32>
    %cst_12 = arith.constant 0xFF800000 : f32
    %71 = vector.broadcast %cst_12 : f32 to vector<16x2x2xf32>
    %72 = tpu.concatenate %71, %70, %71 in 1 : vector<16x2x2xf32>, vector<16x16x2xf32>, vector<16x2x2xf32> -> vector<16x20x2xf32>
    %73 = vector.extract_strided_slice %72 {offsets = [0, 0, 0], sizes = [16, 16, 2], strides = [1, 1, 1]} : vector<16x20x2xf32> to vector<16x16x2xf32>
    %74 = vector.extract_strided_slice %72 {offsets = [0, 1, 0], sizes = [16, 16, 2], strides = [1, 1, 1]} : vector<16x20x2xf32> to vector<16x16x2xf32>
    %75 = arith.maximumf %73, %74 : vector<16x16x2xf32>
    %76 = vector.extract_strided_slice %72 {offsets = [0, 2, 0], sizes = [16, 16, 2], strides = [1, 1, 1]} : vector<16x20x2xf32> to vector<16x16x2xf32>
    %77 = arith.maximumf %75, %76 : vector<16x16x2xf32>
    %78 = vector.extract_strided_slice %72 {offsets = [0, 3, 0], sizes = [16, 16, 2], strides = [1, 1, 1]} : vector<16x20x2xf32> to vector<16x16x2xf32>
    %79 = arith.maximumf %77, %78 : vector<16x16x2xf32>
    %80 = vector.extract_strided_slice %72 {offsets = [0, 4, 0], sizes = [16, 16, 2], strides = [1, 1, 1]} : vector<16x20x2xf32> to vector<16x16x2xf32>
    %81 = arith.maximumf %79, %80 : vector<16x16x2xf32>
    %82 = vector.shape_cast %81 : vector<16x16x2xf32> to vector<256x2xf32>
    %c0_13 = arith.constant 0 : index
    %c0_14 = arith.constant 0 : index
    %83 = vector.load %arg5[%c0_13, %c0_14] : memref<1x8xf32, #tpu.memory_space<vmem>>, vector<1x8xf32>
    %c0_15 = arith.constant 0 : index
    %c0_16 = arith.constant 0 : index
    %c0_17 = arith.constant 0 : index
    %84 = vector.load %arg4[%c0_15, %c0_16, %c0_17] : memref<4x2x8xf32, #tpu.memory_space<vmem>>, vector<1x2x8xf32>
    %85 = vector.shape_cast %84 : vector<1x2x8xf32> to vector<2x8xf32>
    %cst_18 = arith.constant dense<0.000000e+00> : vector<256x8xf32>
    %86 = tpu.matmul %12, %85, %cst_18 {dimension_numbers = #tpu.dot_dimension_numbers<[1], [0], [0], [1], [0, 0, 1, 1], [], []>} : vector<256x2xf32>, vector<2x8xf32>, vector<256x8xf32> -> vector<256x8xf32>
    %87 = vector.broadcast %83 : vector<1x8xf32> to vector<256x8xf32>
    %88 = arith.addf %87, %86 : vector<256x8xf32>
    %c1 = arith.constant 1 : index
    %c0_19 = arith.constant 0 : index
    %c0_20 = arith.constant 0 : index
    %89 = vector.load %arg4[%c1, %c0_19, %c0_20] : memref<4x2x8xf32, #tpu.memory_space<vmem>>, vector<1x2x8xf32>
    %90 = vector.shape_cast %89 : vector<1x2x8xf32> to vector<2x8xf32>
    %cst_21 = arith.constant dense<0.000000e+00> : vector<256x8xf32>
    %91 = tpu.matmul %36, %90, %cst_21 {dimension_numbers = #tpu.dot_dimension_numbers<[1], [0], [0], [1], [0, 0, 1, 1], [], []>} : vector<256x2xf32>, vector<2x8xf32>, vector<256x8xf32> -> vector<256x8xf32>
    %92 = arith.addf %88, %91 : vector<256x8xf32>
    %c2 = arith.constant 2 : index
    %c0_22 = arith.constant 0 : index
    %c0_23 = arith.constant 0 : index
    %93 = vector.load %arg4[%c2, %c0_22, %c0_23] : memref<4x2x8xf32, #tpu.memory_space<vmem>>, vector<1x2x8xf32>
    %94 = vector.shape_cast %93 : vector<1x2x8xf32> to vector<2x8xf32>
    %cst_24 = arith.constant dense<0.000000e+00> : vector<256x8xf32>
    %95 = tpu.matmul %59, %94, %cst_24 {dimension_numbers = #tpu.dot_dimension_numbers<[1], [0], [0], [1], [0, 0, 1, 1], [], []>} : vector<256x2xf32>, vector<2x8xf32>, vector<256x8xf32> -> vector<256x8xf32>
    %96 = arith.addf %92, %95 : vector<256x8xf32>
    %c3 = arith.constant 3 : index
    %c0_25 = arith.constant 0 : index
    %c0_26 = arith.constant 0 : index
    %97 = vector.load %arg4[%c3, %c0_25, %c0_26] : memref<4x2x8xf32, #tpu.memory_space<vmem>>, vector<1x2x8xf32>
    %98 = vector.shape_cast %97 : vector<1x2x8xf32> to vector<2x8xf32>
    %cst_27 = arith.constant dense<0.000000e+00> : vector<256x8xf32>
    %99 = tpu.matmul %82, %98, %cst_27 {dimension_numbers = #tpu.dot_dimension_numbers<[1], [0], [0], [1], [0, 0, 1, 1], [], []>} : vector<256x2xf32>, vector<2x8xf32>, vector<256x8xf32> -> vector<256x8xf32>
    %100 = arith.addf %96, %99 : vector<256x8xf32>
    %101 = arith.negf %100 : vector<256x8xf32>
    %102 = math.exp %101 : vector<256x8xf32>
    %cst_28 = arith.constant 1.000000e+00 : f32
    %103 = vector.broadcast %cst_28 : f32 to vector<256x8xf32>
    %104 = arith.addf %103, %102 : vector<256x8xf32>
    %105 = arith.divf %103, %104 : vector<256x8xf32>
    %106 = arith.mulf %100, %105 : vector<256x8xf32>
    %c0_29 = arith.constant 0 : index
    %c0_30 = arith.constant 0 : index
    %c0_31 = arith.constant 0 : index
    %107 = vector.load %arg6[%c0_29, %c0_30, %c0_31] : memref<1x256x8xf32, #tpu.memory_space<vmem>>, vector<1x256x8xf32>
    %108 = vector.shape_cast %107 : vector<1x256x8xf32> to vector<256x8xf32>
    %109 = vector.shape_cast %106 : vector<256x8xf32> to vector<1x256x8xf32>
    tpu.vector_store %arg6[%c0_29, %c0_30, %c0_31], %109 {strides = array<i32>} : memref<1x256x8xf32, #tpu.memory_space<vmem>>, vector<1x256x8xf32>,
    return
  }
  func.func @transform_0(%arg0: i32) -> (i32, i32, i32) {
    %c0_i32 = arith.constant 0 : i32
    %c0_i32_0 = arith.constant 0 : i32
    %c0_i32_1 = arith.constant 0 : i32
    return %arg0, %c0_i32, %c0_i32_0 : i32, i32, i32
  }
  func.func @transform_1(%arg0: i32) -> (i32, i32) {
    %c0_i32 = arith.constant 0 : i32
    %c0_i32_0 = arith.constant 0 : i32
    %c0_i32_1 = arith.constant 0 : i32
    return %c0_i32, %c0_i32_0 : i32, i32
  }
  func.func @transform_2(%arg0: i32) -> (i32, i32) {
    %c0_i32 = arith.constant 0 : i32
    %c0_i32_0 = arith.constant 0 : i32
    %c0_i32_1 = arith.constant 0 : i32
    return %c0_i32, %c0_i32_0 : i32, i32
  }
  func.func @transform_3(%arg0: i32) -> (i32, i32, i32) {
    %c0_i32 = arith.constant 0 : i32
    %c0_i32_0 = arith.constant 0 : i32
    %c0_i32_1 = arith.constant 0 : i32
    %c0_i32_2 = arith.constant 0 : i32
    return %c0_i32, %c0_i32_0, %c0_i32_1 : i32, i32, i32
  }
  func.func @transform_4(%arg0: i32) -> (i32, i32) {
    %c0_i32 = arith.constant 0 : i32
    %c0_i32_0 = arith.constant 0 : i32
    %c0_i32_1 = arith.constant 0 : i32
    return %c0_i32, %c0_i32_0 : i32, i32
  }
  func.func @transform_5(%arg0: i32) -> (i32, i32, i32) {
    %c0_i32 = arith.constant 0 : i32
    %c0_i32_0 = arith.constant 0 : i32
    %c0_i32_1 = arith.constant 0 : i32
    return %arg0, %c0_i32, %c0_i32_0 : i32, i32, i32
  }
}

</mosaic_0001>

<bundles_post_ra>
// kernel: spp_bottleneck_forward.1
= control target key start
LH: loop header
LB: loop body
LE: loop exit
PB: predicated region body
PF: predicated region fallthrough
CT: control target
= control target key end

     0   :  { %10 = vsyncpa [#allocation3], 0  ;;  %s9669_s0 = inlined_call_operand.hbm [shape: f32[2,256,4], index: 0, kind: input, shape index: {}]   ;;  %s9670_s1 = inlined_call_operand.hbm [shape: f32[4,2], index: 1, kind: input, shape index: {}]   ;;  %s9671_s2 = inlined_call_operand.hbm [shape: f32[1,2], index: 2, kind: input, shape index: {}]   ;;  %s9672_s3 = inlined_call_operand.hbm [shape: f32[4,2,8], index: 3, kind: input, shape index: {}]   ;;  %s9673_s4 = inlined_call_operand.hbm [shape: f32[1,8], index: 4, kind: input, shape index: {}]   ;;  %s9674_s5 = inlined_call_operand.hbm [shape: f32[2,256,8], index: 5, kind: output, shape index: {}]  }
   0x1   :  { %12 = vsyncpa [#allocation3 + $0x1], 0 }
   0x2   :  { %13 = vsyncpa [#allocation6], 0 }
   0x3   :  { %14 = vsyncpa [#allocation9], 0 }
   0x4   :  { %15 = vsyncpa [#allocation4], 0 }
   0x5   :  { %17 = vsyncpa [#allocation4 + $0x1], 0  ;;  %s6743_s18 = smov 0   ;;  %s6745_s19 = smov 0  }
   0x6   :  { %s6747_s20 = smov 0   ;;  %s6749_s21 = smov 0  }
   0x7 LB: > { %s6764_s22 = sadd.s32 4294967295, %s6699_s21   ;;  %s5332_s23 = sadd.s32 4294967294, %s6699_s21   ;;  %s6699_s21 = sphi %s6749_s21, %s9912_s21   ;;  %s6695_s20 = sphi %s6747_s20, %s9911_s20   ;;  %s6691_s19 = sphi %s6745_s19, %s9910_s19   ;;  %s6687_s18 = sphi %s6743_s18, %s9909_s18  }
   0x8   : > { %p43_p0 = scmp.ne.s32.totalorder %s6691_s19, %s6687_s18  ;;  %p9675_p1 = scmp.eq.s32.totalorder %s6764_s22, 0 }
   0x9   : > { %p157_p3 = scmp.eq.s32.totalorder %s5332_s23, 1  ;;  %p5333_p5 = scmp.ge.s32.totalorder %s6699_s21, 1 }
   0xa   : > { %p6773_p4 = por %p9675_p1, %p43_p0  ;;  %p164_p7 = scmp.lt.s32.totalorder %s6699_s21, 3 }
   0xb   : > { %p6778_p6 = por %p157_p3, %p43_p0  ;;  %s6701_s27 = smov [#allocation5]  }
   0xc   : > { %s9715_s24 = scalar_select %p6773_p4, 1, 0 }
   0xd   : > { %s9716_s25 = scalar_select %p6778_p6, 1, 0 }
   0xe   : > { %p6783_p8 = pnand %p5333_p5, %p164_p7  ;;  %s177_s28 = sshll.u32 %s6701_s27, 4  ;;  %s178_s28 = int_to_ptr.vmem [resolvable:$true] %s177_s28 }
   0xf   : > { %s6702_s29 = smov [#allocation8]   ;;  %s6703_s7 = smov [#allocation7]  }
  0x10   : > { %s9717_s26 = scalar_select %p6783_p8, 1, 0 }
  0x11   : > { %p6152_p10 = pneg %p6783_p8  ;;  %s198_s30 = sshll.u32 %s6702_s29, 4  ;;  %s6796_s30 = int_to_ptr.vmem [resolvable:$true] %s198_s30 }
  0x12   : > { %s6798_s8 = sshll.u32 %s6703_s7, 4  ;;  %s6483_s11 = scalar_lea.hbm %s9670_s1, 64  ;;  %s189_s8 = int_to_ptr.vmem [resolvable:$true] %s6798_s8 }
  0x13   : > { %p6792_p11 = pnand %p6152_p10, %p9675_p1  ;;  %p6484_p12 = scmp.ne.s32.totalorder %s9670_s1, %s6483_s11 }
  0x14   : > { %p6490_p5 = scmp.lt.u32.totalorder %s6483_s11, %s9670_s1 }
  0x15   : > { %p6808_p13 = pneg %p6792_p11 }
  0x17   : > { %p6486_p0 = pnand %p6808_p13, %p6484_p12 }
  0x19   : > { %p6487_p3 = pneg %p6486_p0 }
  0x1b   : > { %p6492_p7 = pnand %p6490_p5, %p6487_p3 }
  0x1d   : > { %6495 = shalt.err (!%p6492_p7)
}
  0x1e   : > { %s6496_s17 = scalar_lea.vmem %s178_s28, 64  ;;  %p6504_p2 = scmp.lt.s32.totalorder %s178_s28, %s178_s28 }
  0x1f   : > { %p6497_p10 = scmp.ne.s32.totalorder %s178_s28, %s6496_s17  ;;  %p6505_p6 = scmp.lt.s32.totalorder %s6496_s17, %s6496_s17 }
  0x21   : > { %p6499_p9 = pnand %p6497_p10, %p6808_p13  ;;  %p6506_p4 = por %p6505_p6, %p6504_p2 }
  0x23   : > { %p6500_p1 = pneg %p6499_p9 }
  0x25   : > { %p6507_p8 = pnand %p6506_p4, %p6500_p1 }
  0x27   : > { %6510 = shalt.err (!%p6507_p8)
}
  0x28   : > { %6155 = dma.hbm_to_vmem [thread:$0]  (!%p6792_p11), %s9670_s1, 64, %s178_s28, [#allocation6]  }
  0x29   : > { %s6511_s9 = scalar_lea.hbm %s9672_s3, 128 }
  0x2a   : > { %p6512_p9 = scmp.ne.s32.totalorder %s9672_s3, %s6511_s9  ;;  %p6518_p1 = scmp.lt.u32.totalorder %s6511_s9, %s9672_s3 }
  0x2c   : > { %p6514_p12 = pnand %p6512_p9, %p6808_p13 }
  0x2e   : > { %p6515_p2 = pneg %p6514_p12 }
  0x30   : > { %p6520_p4 = pnand %p6518_p1, %p6515_p2 }
  0x32   : > { %6523 = shalt.err (!%p6520_p4)
}
  0x33   : > { %s6524_s28 = scalar_lea.vmem %s6796_s30, 128  ;;  %p6532_p3 = scmp.lt.s32.totalorder %s6796_s30, %s6796_s30 }
  0x34   : > { %p6525_p6 = scmp.ne.s32.totalorder %s6796_s30, %s6524_s28  ;;  %p6533_p5 = scmp.lt.s32.totalorder %s6524_s28, %s6524_s28 }
  0x36   : > { %p6527_p8 = pnand %p6525_p6, %p6808_p13  ;;  %p6534_p7 = por %p6533_p5, %p6532_p3 }
  0x38   : > { %p6528_p0 = pneg %p6527_p8 }
  0x3a   : > { %p6535_p10 = pnand %p6534_p7, %p6528_p0 }
  0x3c   : > { %6538 = shalt.err (!%p6535_p10)
}
  0x3d   : > { %s6704_s15 = smov 32   ;;  %s6705_s16 = smov 2  }
  0x3e   : > { %6161 = dma.hbm_to_vmem [thread:$0]  (!%p6792_p11), %s9672_s3, 128, %s6796_s30, [#allocation9], %s6704_s15, %s6704_s15, %s6705_s16  }
  0x3f   : > { %s6539_s7 = scalar_lea.hbm %s9671_s2, 16 }
  0x40   : > { %p6540_p9 = scmp.ne.s32.totalorder %s9671_s2, %s6539_s7  ;;  %p6546_p1 = scmp.lt.u32.totalorder %s6539_s7, %s9671_s2 }
  0x42   : > { %p6542_p12 = pnand %p6540_p9, %p6808_p13 }
  0x44   : > { %p6543_p2 = pneg %p6542_p12 }
  0x46   : > { %p6548_p4 = pnand %p6546_p1, %p6543_p2 }
  0x48   : > { %6551 = shalt.err (!%p6548_p4)
}
  0x49   : > { %s6552_s13 = scalar_lea.vmem %s189_s8, 16  ;;  %s6559_s30 = scalar_lea.vmem %s189_s8, 32 }
  0x4a   : > { %p6553_p6 = scmp.ne.s32.totalorder %s189_s8, %s6552_s13  ;;  %p6560_p3 = scmp.lt.s32.totalorder %s189_s8, %s189_s8 }
  0x4b   : > { %p6561_p5 = scmp.lt.s32.totalorder %s6559_s30, %s6552_s13 }
  0x4c   : > { %p6555_p8 = pnand %p6553_p6, %p6808_p13 }
  0x4d   : > { %p6562_p7 = por %p6561_p5, %p6560_p3 }
  0x4e   : > { %p6556_p0 = pneg %p6555_p8 }
  0x50   : > { %p6563_p10 = pnand %p6562_p7, %p6556_p0 }
  0x52   : > { %6566 = shalt.err (!%p6563_p10)
}
  0x53   : > { %6158 = dma.hbm_to_vmem [thread:$0]  (!%p6792_p11), %s9671_s2, 16, %s189_s8, [#allocation6]  }
  0x54   : > { %s6706_s16 = smov [#allocation10]   ;;  %s6567_s29 = scalar_lea.hbm %s9673_s4, 16 }
  0x55   : > { %s212_s17 = sshll.u32 %s6706_s16, 4  ;;  %p6568_p9 = scmp.ne.s32.totalorder %s9673_s4, %s6567_s29  ;;  %s213_s17 = int_to_ptr.vmem [resolvable:$true] %s212_s17 }
  0x56   : > { %p6574_p1 = scmp.lt.u32.totalorder %s6567_s29, %s9673_s4 }
  0x57   : > { %p6570_p12 = pnand %p6568_p9, %p6808_p13 }
  0x59   : > { %p6571_p2 = pneg %p6570_p12 }
  0x5b   : > { %p6576_p4 = pnand %p6574_p1, %p6571_p2 }
  0x5d   : > { %6579 = shalt.err (!%p6576_p4)
}
  0x5e   : > { %s6580_s8 = scalar_lea.vmem %s213_s17, 16  ;;  %s6587_s12 = scalar_lea.vmem %s213_s17, 32 }
  0x5f   : > { %p6581_p6 = scmp.ne.s32.totalorder %s213_s17, %s6580_s8  ;;  %p6588_p3 = scmp.lt.s32.totalorder %s213_s17, %s213_s17 }
  0x60   : > { %p6589_p5 = scmp.lt.s32.totalorder %s6587_s12, %s6580_s8 }
  0x61   : > { %p6583_p8 = pnand %p6581_p6, %p6808_p13 }
  0x62   : > { %p6590_p7 = por %p6589_p5, %p6588_p3 }
  0x63   : > { %p6584_p0 = pneg %p6583_p8 }
  0x65   : > { %p6591_p10 = pnand %p6590_p7, %p6584_p0 }
  0x67   : > { %6594 = shalt.err (!%p6591_p10)
}
  0x68   : > { %6164 = dma.hbm_to_vmem [thread:$0]  (!%p6792_p11), %s9673_s4, 16, %s213_s17, [#allocation9]  }
  0x69   : > { %s6885_s14 = sadd.s32 1, %s6699_s21   ;;  %s30_s28 = sadd.s32 1, %s6695_s20 }
  0x6a   : > { %s27_s6 = ssub.s32 %s6699_s21, %s6885_s14  ;;  %p37_p13 = scmp.ne.s32.totalorder %s6695_s20, %s6691_s19 }
  0x6b   : > { %p28_p9 = scmp.eq.s32.totalorder %s27_s6, 0  ;;  %p38_p12 = scmp.eq.s32.totalorder %s6699_s21, 0 }
  0x6c   : > { %p9720_p2 = scmp.eq.s32.totalorder %s6764_s22, 1  ;;  %p6177_p4 = scmp.lt.s32.totalorder %s6699_s21, 2 }
  0x6d   : > { %s6901_s16 = scalar_select %p28_p9, %s6695_s20, %s30_s28  }
  0x6e   : > { %p6895_p1 = por %p9720_p2, %p37_p13  ;;  %p39_p6 = por %p38_p12, %p37_p13 }
  0x6f   : > { %s223_s23 = sand.u32 1, %s6695_s20   ;;  %s5585_s17 = sshll.u32 %s6699_s21, 12 }
  0x70   : > { %s5339_s27 = sshll.u32 %s223_s23, 8  ;;  %s6908_s9 = scalar_lea.hbm %s9669_s0, %s5585_s17 }
  0x71   : > { %s227_s10 = scalar_lea.vmem [#allocation2], %s5339_s27  ;;  %p6912_p11 = pnand %p6177_p4, %p39_p6 }
  0x72   : > { %s234_s11 = sshll.u32 %s227_s10, 4  ;;  %s6916_s12 = scalar_lea.sflag [#allocation3], %s223_s23  ;;  %s6910_s11 = int_to_ptr.vmem [resolvable:$true] %s234_s11 }
  0x73   : > { %s6595_s13 = scalar_lea.hbm %s6908_s9, 4096  ;;  %p6597_p0 = pneg %p6912_p11 }
  0x74   : > { %p6596_p8 = scmp.ne.s32.totalorder %s6908_s9, %s6595_s13  ;;  %s6600_s6 = scalar_lea.hbm %s9669_s0, 8192 }
  0x75   : > { %p6601_p7 = scmp.lt.u32.totalorder %s6908_s9, %s9669_s0  ;;  %p6602_p10 = scmp.lt.u32.totalorder %s6600_s6, %s6595_s13 }
  0x76   : > { %p6598_p3 = pnand %p6597_p0, %p6596_p8  ;;  %p6604_p9 = scmp.lt.u32.totalorder %s6595_s13, %s6908_s9 }
  0x77   : > { %p6603_p13 = por %p6602_p10, %p6601_p7 }
  0x78   : > { %p6599_p5 = pneg %p6598_p3 }
  0x79   : > { %p6605_p12 = por %p6604_p9, %p6603_p13 }
  0x7b   : > { %p6606_p2 = pnand %p6605_p12, %p6599_p5 }
  0x7d   : > { %6609 = shalt.err (!%p6606_p2)
}
  0x7e   : > { %s6610_s23 = scalar_lea.vmem %s6910_s11, 4096  ;;  %s6707_s29 = smov [#allocation2]  }
  0x7f   : > { %p6611_p4 = scmp.ne.s32.totalorder %s6910_s11, %s6610_s23  ;;  %s6615_s7 = sshll.u32 %s6707_s29, 4  ;;  %s6616_s7 = int_to_ptr.vmem [resolvable:$false] %s6615_s7 }
  0x80   : > { %s6617_s10 = scalar_lea.vmem %s6616_s7, 8192  ;;  %p6618_p3 = scmp.lt.s32.totalorder %s6910_s11, %s6616_s7 }
  0x81   : > { %p6613_p6 = pnand %p6611_p4, %p6597_p0  ;;  %p6619_p7 = scmp.lt.s32.totalorder %s6617_s10, %s6610_s23 }
  0x83   : > { %p6614_p8 = pneg %p6613_p6  ;;  %p6620_p10 = por %p6619_p7, %p6618_p3 }
  0x85   : > { %p6621_p13 = pnand %p6620_p10, %p6614_p8 }
  0x87   : > { %6624 = shalt.err (!%p6621_p13)
}
  0x88   : > { %s6708_s13 = smov 128   ;;  %s6709_s30 = smov 8  }
  0x89   : > { %6168 = dma.hbm_to_vmem [thread:$0]  (!%p6912_p11), %s6908_s9, 4096, %s6910_s11, %s6916_s12, %s6708_s13, %s6708_s13, %s6709_s30  }
  0x8a   : > { %p9723_p0 = scmp.ne.s32.totalorder %s9717_s26, 0 }
  0x8c   : > { %246 = sbr.rel (%p9723_p0) target bundleno = 1192 (0x4a8), region = 40 }
  0x93   : > { %s6947_s28 = sand.u32 1, %s6691_s19   ;;  %p9724_p5 = scmp.ne.s32.totalorder %s9715_s24, 0 }
  0x94   : > { %s5343_s6 = sshll.u32 %s6947_s28, 8  ;;  %s249_s27 = scalar_lea.sflag [#allocation3], %s6947_s28 }
  0x95   : > { %s6953_s17 = scalar_lea.vmem [#allocation2], %s5343_s6 }
  0x96   : > { %6670 = dma.done.wait (%p9724_p5), %s249_s27, 4096  }
  0x97   : > { %6672 = vsyncadd (%p9724_p5), %s249_s27, 4294963200  ;;  %p9725_p11 = scmp.eq.s32.totalorder %s6764_s22, 0 }
  0x99   : > { %6674 = dma.done.wait (%p9725_p11), [#allocation6], 80   ;;  %p9726_p9 = pmov %p9725_p11 }
  0x9b   : > { %6676 = vsyncadd (%p9726_p9), [#allocation6], 4294967216  ;;  %p9727_p12 = pmov %p9726_p9 }
  0x9c   : > { %p9728_p2 = pmov %p9726_p9 }
  0x9d   : > { %6678 = dma.done.wait (%p9727_p12), [#allocation9], 144  }
  0x9e   : > { %6680 = vsyncadd (%p9728_p2), [#allocation9], 4294967152  ;;  %vm432_vm0 = vcmask 1043456   ;;  %vm335_vm1 = vcmask 31744   ;;  %v327_v0 = vld [vmem:[#allocation5] sm:$0xf] }
  0x9f   : > { %v295_v1 = vld [vmem:[%s6953_s17] sm:$0xff]  ;;  %v296_v2 = vld [vmem:[%s6953_s17 + $0x8] sm:$0xff]  ;;  %5752 = vmatprep.subr.msk.mxu0 %vm432_vm0, %v327_v0  ;;  %v297_v3 = vld [vmem:[%s6953_s17 + $0x10] sm:$0xff]  ;;  %vm1023_vm2 = vcmask 1041408   ;;  %vm3513_vm3 = vcmask 15360   ;;  %vm1184_vm4 = vcmask 1046528  }
  0xa0   : > { %5754 = vmatprep.mubr.msk.f32.mxu0 %vm335_vm1, %v295_v1  ;;  %5753 = vmatpush3.msk.msra.mxu0 %vm432_vm0, %v327_v0  ;;  %v298_v4 = vld [vmem:[%s6953_s17 + $0x18] sm:$0xff]  ;;  %v299_v5 = vld [vmem:[%s6953_s17 + $0x20] sm:$0xff]  ;;  %v300_v6 = vld [vmem:[%s6953_s17 + $0x28] sm:$0xff]  ;;  %vm1329_vm5 = vcmask 1045504   ;;  %vm1474_vm6 = vcmask 1044480   ;;  %vm5174_vm7 = vcmask 64512  }
  0xa1   : > { %5755 = vmatmul.mubr.msk.f32.vlgmr.msra.gmra.mrb[0].mxu0 %vm335_vm1, %v296_v2  ;;  %v301_v7 = vld [vmem:[%s6953_s17 + $0x30] sm:$0xff]  ;;  %v302_v8 = vld [vmem:[%s6953_s17 + $0x38] sm:$0xff]  ;;  %v303_v9 = vld [vmem:[%s6953_s17 + $0x40] sm:$0xff]  ;;  %s9509_s24 = scalar_lea.vmem [#allocation11], %s5343_s6  ;;  %s5586_s26 = sshll.u32 %s6764_s22, 12 }
  0xa2   : > { %5757 = vmatprep.mubr.msk.f32.mxu0 %vm335_vm1, %v297_v3  ;;  %v304_v10 = vld [vmem:[%s6953_s17 + $0x48] sm:$0xff]  ;;  %v305_v11 = vld [vmem:[%s6953_s17 + $0x50] sm:$0xff]  ;;  %v306_v12 = vld [vmem:[%s6953_s17 + $0x58] sm:$0xff]  ;;  %s5221_s9 = sshll.u32 %s9509_s24, 4  ;;  %s9619_s12 = scalar_lea.hbm %s9674_s5, %s5586_s26  ;;  %s9621_s9 = int_to_ptr.vmem [resolvable:$true] %s5221_s9 }
  0xa3   : > { %v307_v13 = vld [vmem:[%s6953_s17 + $0x60] sm:$0xff]  ;;  %v308_v14 = vld [vmem:[%s6953_s17 + $0x68] sm:$0xff]  ;;  %v309_v15 = vld [vmem:[%s6953_s17 + $0x70] sm:$0xff]  ;;  %s5208_s22 = scalar_lea.sflag [#allocation4], %s6947_s28  ;;  %s6625_s23 = scalar_lea.vmem %s9621_s9, 4096 }
  0xa4   : > { %v310_v16 = vld [vmem:[%s6953_s17 + $0x78] sm:$0xff]  ;;  %v311_v17 = vld [vmem:[%s6953_s17 + $0x80] sm:$0xff]  ;;  %v312_v18 = vld [vmem:[%s6953_s17 + $0x88] sm:$0xff]  ;;  %p6626_p4 = scmp.ne.s32.totalorder %s9621_s9, %s6625_s23  ;;  %s6710_s29 = smov [#allocation11]  }
  0xa5   : > { %5758 = vmatmul.mubr.msk.f32.gmra.mrb[2].mxu0 %vm335_vm1, %v298_v4  ;;  %v313_v19 = vld [vmem:[%s6953_s17 + $0x90] sm:$0xff]  ;;  %v314_v20 = vld [vmem:[%s6953_s17 + $0x98] sm:$0xff]  ;;  %v315_v21 = vld [vmem:[%s6953_s17 + $0xa0] sm:$0xff]  ;;  %s6629_s7 = sshll.u32 %s6710_s29, 4  ;;  %s6630_s7 = int_to_ptr.vmem [resolvable:$false] %s6629_s7 }
  0xa6   : > { %5760 = vmatprep.mubr.msk.f32.mxu0 %vm335_vm1, %v299_v5  ;;  %v316_v22 = vld [vmem:[%s6953_s17 + $0xa8] sm:$0xff]  ;;  %v317_v23 = vld [vmem:[%s6953_s17 + $0xb0] sm:$0xff]  ;;  %v318_v24 = vld [vmem:[%s6953_s17 + $0xb8] sm:$0xff]  ;;  %p6627_p6 = pnand %p6626_p4, %p6895_p1  ;;  %s6631_s10 = scalar_lea.vmem %s6630_s7, 8192 }
  0xa7   : > { %v319_v25 = vld [vmem:[%s6953_s17 + $0xc0] sm:$0xff]  ;;  %v320_v26 = vld [vmem:[%s6953_s17 + $0xc8] sm:$0xff]  ;;  %v321_v27 = vld [vmem:[%s6953_s17 + $0xd0] sm:$0xff]  ;;  %p6632_p3 = scmp.lt.s32.totalorder %s9621_s9, %s6630_s7  ;;  %p6633_p7 = scmp.lt.s32.totalorder %s6631_s10, %s6625_s23 }
  0xa8   : > { %v322_v28 = vld [vmem:[%s6953_s17 + $0xd8] sm:$0xff]  ;;  %v323_v29 = vld [vmem:[%s6953_s17 + $0xe0] sm:$0xff]  ;;  %v324_v30 = vld [vmem:[%s6953_s17 + $0xe8] sm:$0xff]  ;;  %p6628_p8 = pneg %p6627_p6 }
  0xa9   : > { %5761 = vmatmul.mubr.msk.f32.gmra.mrb[4].mxu0 %vm335_vm1, %v300_v6  ;;  %v325_v31 = vld [vmem:[%s6953_s17 + $0xf0] sm:$0xff]  ;;  %v326_v32 = vld [vmem:[%s6953_s17 + $0xf8] sm:$0xff]  ;;  %v3512_v33 = vld [vmem:[#allocation8] sm:$0x3]  ;;  %p6634_p10 = por %p6633_p7, %p6632_p3 }
  0xaa   : > { %5763 = vmatprep.mubr.msk.f32.mxu0 %vm335_vm1, %v301_v7  ;;  %5802 = vmatprep.subr.msk.mxu0 %vm1023_vm2, %v3512_v33  ;;  %v7035_v34 = vld [vmem:[#allocation7] ss:$0 sm:$0xff]  ;;  %v7068_v59 = vld [vmem:[#allocation8 + $0x2] sm:$0x3] }
  0xab   : > { %5803 = vmatpush3.msk.msra.mxu0 %vm1023_vm2, %v3512_v33  ;;  %6002 = vmatprep.subr.msk.mxu1 %vm1023_vm2, %v7068_v59  ;;  %p6635_p13 = pnand %p6634_p10, %p6628_p8 }
  0xac   : > { %5852 = vmatprep.subr.msk.mxu0 %vm1023_vm2, %v7068_v59  ;;  %6003 = vmatpush3.msk.msra.mxu1 %vm1023_vm2, %v7068_v59 }
  0xad   : > { %5764 = vmatmul.mubr.msk.f32.gmra.mrb[6].mxu0 %vm335_vm1, %v302_v8 }
  0xae   : > { %5766 = vmatprep.mubr.msk.f32.mxu0 %vm335_vm1, %v303_v9 }
  0xb1   : > { %5767 = vmatmul.mubr.msk.f32.gmra.mrb[8].mxu0 %vm335_vm1, %v304_v10 }
  0xb2   : > { %5769 = vmatprep.mubr.msk.f32.mxu0 %vm335_vm1, %v305_v11 }
  0xb5   : > { %5770 = vmatmul.mubr.msk.f32.gmra.mrb[10].mxu0 %vm335_vm1, %v306_v12 }
  0xb6   : > { %5772 = vmatprep.mubr.msk.f32.mxu0 %vm335_vm1, %v307_v13 }
  0xb9   : > { %5773 = vmatmul.mubr.msk.f32.gmra.mrb[12].mxu0 %vm335_vm1, %v308_v14 }
  0xba   : > { %5775 = vmatprep.mubr.msk.f32.mxu0 %vm335_vm1, %v309_v15 }
  0xbd   : > { %5776 = vmatmul.mubr.msk.f32.gmra.mrb[14].mxu0 %vm335_vm1, %v310_v16 }
  0xbe   : > { %5778 = vmatprep.mubr.msk.f32.mxu0 %vm335_vm1, %v311_v17 }
  0xc1   : > { %5779 = vmatmul.mubr.msk.f32.gmra.mrb[16].mxu0 %vm335_vm1, %v312_v18 }
  0xc2   : > { %5781 = vmatprep.mubr.msk.f32.mxu0 %vm335_vm1, %v313_v19 }
  0xc5   : > { %5782 = vmatmul.mubr.msk.f32.gmra.mrb[18].mxu0 %vm335_vm1, %v314_v20 }
  0xc6   : > { %5784 = vmatprep.mubr.msk.f32.mxu0 %vm335_vm1, %v315_v21 }
  0xc9   : > { %5785 = vmatmul.mubr.msk.f32.gmra.mrb[20].mxu0 %vm335_vm1, %v316_v22 }
  0xca   : > { %5787 = vmatprep.mubr.msk.f32.mxu0 %vm335_vm1, %v317_v23 }
  0xcd   : > { %5788 = vmatmul.mubr.msk.f32.gmra.mrb[22].mxu0 %vm335_vm1, %v318_v24 }
  0xce   : > { %5790 = vmatprep.mubr.msk.f32.mxu0 %vm335_vm1, %v319_v25 }
  0xd1   : > { %5791 = vmatmul.mubr.msk.f32.gmra.mrb[24].mxu0 %vm335_vm1, %v320_v26  ;;  %v4235_v26 = vld [vmem:[#allocation8 + $0x4] sm:$0x3] }
  0xd2   : > { %5793 = vmatprep.mubr.msk.f32.mxu0 %vm335_vm1, %v321_v27  ;;  %5902 = vmatprep.subr.msk.mxu1 %vm1023_vm2, %v4235_v26 }
  0xd5   : > { %5794 = vmatmul.mubr.msk.f32.gmra.mrb[26].mxu0 %vm335_vm1, %v322_v28 }
  0xd6   : > { %5796 = vmatprep.mubr.msk.f32.mxu0 %vm335_vm1, %v323_v29 }
  0xd9   : > { %5797 = vmatmul.mubr.msk.f32.gmra.mrb[28].mxu0 %vm335_vm1, %v324_v30 }
  0xda   : > { %5799 = vmatprep.mubr.msk.f32.mxu0 %vm335_vm1, %v325_v31 }
  0xdd   : > { %5800 = vmatmul.mubr.msk.f32.gmra.mrb[30].mxu0 %vm335_vm1, %v326_v32 }
 0x174   : > { %v5756_v35 = vpop.f32.mrb[0].mxu0 }
 0x175   : > { %v7038_v36 = vadd.f32 %v5756_v35, %v7035_v34  ;;  %v502_v37 = vpop.f32.mrb[1].mxu0 }
 0x176   : > { %v7041_v38 = vadd.f32 %v7035_v34, %v502_v37 }
 0x177   : > { %v5384_v39 = vmul.f32 -1.442695, %v7038_v36 }
 0x178   : > { %v5383_v40 = vmul.f32 -1.442695, %v7041_v38  ;;  %v5759_v41 = vpop.f32.mrb[2].mxu0 }
 0x179   : > { %6225 = vpow2.f32 %v5384_v39  ;;  %v7046_v42 = vadd.f32 %v5759_v41, %v7035_v34  ;;  %v512_v43 = vpop.f32.mrb[3].mxu0 }
 0x17a   : > { %6227 = vpow2.f32 %v5383_v40  ;;  %v7049_v44 = vadd.f32 %v7035_v34, %v512_v43 }
 0x17b   : > { %v5386_v45 = vmul.f32 -1.442695, %v7046_v42 }
 0x17c   : > { %v5385_v46 = vmul.f32 -1.442695, %v7049_v44  ;;  %v5762_v47 = vpop.f32.mrb[4].mxu0 }
 0x17d   : > { %6229 = vpow2.f32 %v5386_v45  ;;  %v7054_v48 = vadd.f32 %v5762_v47, %v7035_v34  ;;  %v522_v49 = vpop.f32.mrb[5].mxu0 }
 0x17e   : > { %6231 = vpow2.f32 %v5385_v46  ;;  %v7057_v50 = vadd.f32 %v7035_v34, %v522_v49 }
 0x17f   : > { %v5388_v51 = vmul.f32 -1.442695, %v7054_v48 }
 0x180   : > { %v5387_v52 = vmul.f32 -1.442695, %v7057_v50  ;;  %v5765_v53 = vpop.f32.mrb[6].mxu0 }
 0x181   : > { %6233 = vpow2.f32 %v5388_v51  ;;  %v7062_v54 = vadd.f32 %v5765_v53, %v7035_v34  ;;  %v532_v55 = vpop.f32.mrb[7].mxu0 }
 0x182   : > { %6235 = vpow2.f32 %v5387_v52  ;;  %v7065_v56 = vadd.f32 %v7035_v34, %v532_v55 }
 0x183   : > { %v6226_v57 = vpop.eup %6225  ;;  %v5390_v58 = vmul.f32 -1.442695, %v7062_v54 }
 0x184   : > { %v6228_v60 = vpop.eup %6227  ;;  %v758_v61 = vadd.f32 1.0, %v6226_v57  ;;  %v5389_v62 = vmul.f32 -1.442695, %v7065_v56  ;;  %v5768_v63 = vpop.f32.mrb[8].mxu0 }
 0x185   : > { %v757_v0 = vadd.f32 1.0, %v6228_v60  ;;  %6237 = vpow2.f32 %v5390_v58  ;;  %v7076_v1 = vadd.f32 %v5768_v63, %v7035_v34  ;;  %v542_v2 = vpop.f32.mrb[9].mxu0 }
 0x186   : > { %6239 = vrcp.f32 %v758_v61  ;;  %v7081_v3 = vadd.f32 %v7035_v34, %v542_v2 }
 0x187   : > { %v6230_v4 = vpop.eup %6229  ;;  %6241 = vrcp.f32 %v757_v0  ;;  %v5392_v5 = vmul.f32 -1.442695, %v7076_v1 }
 0x188   : > { %v6232_v6 = vpop.eup %6231  ;;  %v760_v7 = vadd.f32 1.0, %v6230_v4  ;;  %6243 = vpow2.f32 %v5389_v62  ;;  %v5391_v8 = vmul.f32 -1.442695, %v7081_v3  ;;  %v5771_v9 = vpop.f32.mrb[10].mxu0 }
 0x189   : > { %v759_v10 = vadd.f32 1.0, %v6232_v6  ;;  %6245 = vpow2.f32 %v5392_v5  ;;  %v7086_v11 = vadd.f32 %v5771_v9, %v7035_v34  ;;  %v552_v12 = vpop.f32.mrb[11].mxu0 }
 0x18a   : > { %6247 = vrcp.f32 %v760_v7  ;;  %v7089_v13 = vadd.f32 %v7035_v34, %v552_v12 }
 0x18b   : > { %v6234_v14 = vpop.eup %6233  ;;  %6249 = vrcp.f32 %v759_v10  ;;  %v5394_v15 = vmul.f32 -1.442695, %v7086_v11 }
 0x18c   : > { %v6236_v16 = vpop.eup %6235  ;;  %v762_v17 = vadd.f32 1.0, %v6234_v14  ;;  %6251 = vpow2.f32 %v5391_v8  ;;  %v5393_v18 = vmul.f32 -1.442695, %v7089_v13  ;;  %v5774_v19 = vpop.f32.mrb[12].mxu0 }
 0x18d   : > { %v761_v20 = vadd.f32 1.0, %v6236_v16  ;;  %6253 = vpow2.f32 %v5394_v15  ;;  %v7094_v21 = vadd.f32 %v5774_v19, %v7035_v34  ;;  %v562_v22 = vpop.f32.mrb[13].mxu0 }
 0x18e   : > { %6255 = vrcp.f32 %v762_v17  ;;  %v7097_v23 = vadd.f32 %v7035_v34, %v562_v22 }
 0x18f   : > { %v6238_v24 = vpop.eup %6237  ;;  %6257 = vrcp.f32 %v761_v20  ;;  %v5396_v25 = vmul.f32 -1.442695, %v7094_v21 }
 0x190   : > { %v6240_v27 = vpop.eup %6239  ;;  %v764_v28 = vadd.f32 1.0, %v6238_v24  ;;  %6259 = vpow2.f32 %v5393_v18  ;;  %v5395_v29 = vmul.f32 -1.442695, %v7097_v23  ;;  %v5777_v30 = vpop.f32.mrb[14].mxu0 }
 0x191   : > { %v6242_v31 = vpop.eup %6241  ;;  %6261 = vpow2.f32 %v5396_v25  ;;  %v7103_v32 = vadd.f32 %v5777_v30, %v7035_v34  ;;  %v572_v33 = vpop.f32.mrb[15].mxu0  ;;  %v854_v41 = vmul.f32 %v6240_v27, %v7038_v36 }
 0x192   : > { %v6244_v35 = vpop.eup %6243  ;;  %v853_v37 = vmul.f32 %v6242_v31, %v7041_v38  ;;  %6263 = vrcp.f32 %v764_v28  ;;  %v7107_v39 = vadd.f32 %v7035_v34, %v572_v33 }
 0x193   : > { %v6246_v40 = vpop.eup %6245  ;;  %v763_v43 = vadd.f32 1.0, %v6244_v35  ;;  %6265 = vpow2.f32 %v5395_v29  ;;  %v5398_v45 = vmul.f32 -1.442695, %v7103_v32 }
 0x194   : > { %v6248_v46 = vpop.eup %6247  ;;  %v766_v47 = vadd.f32 1.0, %v6246_v40  ;;  %v5397_v49 = vmul.f32 -1.442695, %v7107_v39  ;;  %v5780_v51 = vpop.f32.mrb[16].mxu0  ;;  %5804 = vmatprep.mubr.msk.f32.mxu0 %vm3513_vm3, %v853_v37 }
 0x195   : > { %v6250_v52 = vpop.eup %6249  ;;  %v856_v38 = vmul.f32 %v6248_v46, %v7046_v42  ;;  %6267 = vrcp.f32 %v763_v43  ;;  %v7115_v53 = vadd.f32 %v5780_v51, %v7035_v34  ;;  %v582_v55 = vpop.f32.mrb[17].mxu0  ;;  %5805 = vmatmul.mubr.msk.f32.vlgmr.msra.gmra.mrb[32].mxu0 %vm3513_vm3, %v854_v41 }
 0x196   : > { %v6252_v36 = vpop.eup %6251  ;;  %v7119_v57 = vmul.f32 %v6250_v52, %v7049_v44  ;;  %6269 = vrcp.f32 %v766_v47  ;;  %v7122_v58 = vadd.f32 %v7035_v34, %v582_v55  ;;  %5853 = vmatpush3.msk.msra.mxu0 %vm1023_vm2, %v7068_v59 }
 0x197   : > { %v6254_v60 = vpop.eup %6253  ;;  %v886_v42 = vmax.f32 %v854_v41, %v856_v38  ;;  %v765_v61 = vadd.f32 1.0, %v6252_v36  ;;  %6271 = vpow2.f32 %v5398_v45  ;;  %v5400_v62 = vmul.f32 -1.442695, %v7115_v53 }
 0x198   : > { %v6256_v63 = vpop.eup %6255  ;;  %v885_v0 = vmax.f32 %v853_v37, %v7119_v57  ;;  %v768_v2 = vadd.f32 1.0, %v6254_v60  ;;  %6273 = vpow2.f32 %v5397_v49  ;;  %v5399_v44 = vmul.f32 -1.442695, %v7122_v58  ;;  %v5783_v4 = vpop.f32.mrb[18].mxu0  ;;  %5807 = vmatprep.mubr.msk.f32.mxu0 %vm3513_vm3, %v7119_v57 }
 0x199   : > { %v6258_v5 = vpop.eup %6257  ;;  %v7132_v59 = vmul.f32 %v6256_v63, %v7054_v48  ;;  %6275 = vrcp.f32 %v765_v61  ;;  %v7135_v6 = vadd.f32 %v5783_v4, %v7035_v34  ;;  %v592_v7 = vpop.f32.mrb[19].mxu0  ;;  %5808 = vmatmul.mubr.msk.f32.gmra.mrb[34].mxu0 %vm3513_vm3, %v856_v38 }
 0x19a   : > { %v6260_v8 = vpop.eup %6259  ;;  %v7139_v9 = vmul.f32 %v6258_v5, %v7057_v50  ;;  %6277 = vrcp.f32 %v768_v2  ;;  %v7142_v10 = vadd.f32 %v7035_v34, %v592_v7 }
 0x19b   : > { %v6262_v12 = vpop.eup %6261  ;;  %v888_v14 = vmax.f32 %v856_v38, %v7132_v59  ;;  %v914_v48 = vmax.f32 %v886_v42, %v7132_v59  ;;  %v767_v15 = vadd.f32 1.0, %v6260_v8  ;;  %6279 = vpow2.f32 %v5400_v62 }
 0x19c   : > { %v6264_v16 = vpop.eup %6263  ;;  %v887_v17 = vmax.f32 %v7119_v57, %v7139_v9  ;;  %v913_v18 = vmax.f32 %v885_v0, %v7139_v9  ;;  %v770_v19 = vadd.f32 1.0, %v6262_v12  ;;  %6281 = vpow2.f32 %v5399_v44  ;;  %v5786_v50 = vpop.f32.mrb[20].mxu0  ;;  %5810 = vmatprep.mubr.msk.f32.mxu0 %vm3513_vm3, %v7139_v9 }
 0x19d   : > { %v6266_v20 = vpop.eup %6265  ;;  %v1025_v22 = vrot.slane %v914_v48, 6  ;;  %v7152_v24 = vmul.f32 %v6264_v16, %v7062_v54  ;;  %6283 = vrcp.f32 %v767_v15  ;;  %v7155_v25 = vmul.f32 -1.442695, %v7135_v6  ;;  %v7157_v26 = vpop.f32.mrb[21].mxu0  ;;  %5811 = vmatmul.mubr.msk.f32.gmra.mrb[36].mxu0 %vm3513_vm3, %v7132_v59 }
 0x19e   : > { %v1024_v27 = vrot.slane %v913_v18, 6  ;;  %6285 = vrcp.f32 %v770_v19  ;;  %v769_v28 = vadd.f32 1.0, %v6266_v20  ;;  %v7162_v29 = vmul.f32 -1.442695, %v7142_v10 }
 0x19f   : > { %v6268_v30 = vpop.eup %6267  ;;  %v7165_v31 = vsel %vm1023_vm2, %v1025_v22, -inf  ;;  %v890_v54 = vmax.f32 %v7132_v59, %v7152_v24  ;;  %v916_v33 = vmax.f32 %v888_v14, %v7152_v24  ;;  %v7171_v35 = vmax.f32 %v914_v48, %v7152_v24 }
 0x1a0   : > { %v6270_v37 = vpop.eup %6269  ;;  %v7177_v46 = vpop.f32.mrb[22].mxu0  ;;  %v7180_v49 = vsel %vm1023_vm2, %v1024_v27, %v1025_v22  ;;  %v7183_v51 = vsel %vm1023_vm2, -inf, %v1024_v27  ;;  %v859_v38 = vmul.f32 %v6268_v30, %v7065_v56  ;;  %6287 = vrcp.f32 %v769_v28 }
 0x1a1   : > { %v6272_v47 = vpop.eup %6271  ;;  %v7187_v55 = vpop.f32.mrb[23].mxu0  ;;  %v862_v57 = vmul.f32 %v6270_v37, %v7076_v1  ;;  %v7191_v42 = vadd.f32 %v5786_v50, %v7035_v34 }
 0x1a2   : > { %v6274_v36 = vpop.eup %6273  ;;  %v772_v60 = vadd.f32 1.0, %v6272_v47  ;;  %v889_v62 = vmax.f32 %v7139_v9, %v859_v38  ;;  %v915_v63 = vmax.f32 %v887_v17, %v859_v38  ;;  %v7194_v0 = vmax.f32 %v913_v18, %v859_v38  ;;  %5813 = vmatprep.mubr.msk.f32.mxu0 %vm3513_vm3, %v859_v38 }
 0x1a3   : > { %v6276_v61 = vpop.eup %6275  ;;  %v771_v2 = vadd.f32 1.0, %v6274_v36  ;;  %v892_v44 = vmax.f32 %v7152_v24, %v862_v57  ;;  %v918_v4 = vmax.f32 %v890_v54, %v862_v57  ;;  %v944_v5 = vmax.f32 %v916_v33, %v862_v57  ;;  %5814 = vmatmul.mubr.msk.f32.gmra.mrb[38].mxu0 %vm3513_vm3, %v7152_v24 }
 0x1a4   : > { %v6278_v56 = vpop.eup %6277  ;;  %v968_v1 = vmax.f32 %v7171_v35, %v862_v57  ;;  %v7201_v59 = vpop.f32.mrb[24].mxu0  ;;  %v9679_v8 = vrot.slane %v7194_v0, 6  ;;  %v861_v9 = vmul.f32 %v6276_v61, %v7081_v3  ;;  %6289 = vrcp.f32 %v772_v60 }
 0x1a5   : > { %v6280_v7 = vpop.eup %6279  ;;  %v7206_v12 = vmul.f32 %v6278_v56, %v7086_v11  ;;  %v7208_v14 = vpop.f32.mrb[25].mxu0  ;;  %6291 = vrcp.f32 %v771_v2  ;;  %v5404_v17 = vmul.f32 -1.442695, %v7191_v42 }
 0x1a6   : > { %v6282_v48 = vpop.eup %6281  ;;  %v7210_v15 = vrot.slane %v968_v1, 6  ;;  %v774_v16 = vadd.f32 1.0, %v6280_v7  ;;  %v7216_v19 = vsel %vm1023_vm2, -inf, %v9679_v8  ;;  %v891_v3 = vmax.f32 %v859_v38, %v861_v9  ;;  %5816 = vmatprep.mubr.msk.f32.mxu0 %vm3513_vm3, %v861_v9 }
 0x1a7   : > { %v6284_v18 = vpop.eup %6283  ;;  %v917_v50 = vmax.f32 %v889_v62, %v861_v9  ;;  %v943_v11 = vmax.f32 %v915_v63, %v861_v9  ;;  %v967_v22 = vmax.f32 %v7194_v0, %v861_v9  ;;  %v894_v24 = vmax.f32 %v862_v57, %v7206_v12  ;;  %5817 = vmatmul.mubr.msk.f32.gmra.mrb[40].mxu0 %vm3513_vm3, %v862_v57 }
 0x1a8   : > { %9729 = vst [vmem:[#allocation16_spill] sm:$0xff] %v7210_v15  ;;  %v6286_v20 = vpop.eup %6285  ;;  %v7222_v27 = vmax.f32 %v892_v44, %v7206_v12  ;;  %v946_v28 = vmax.f32 %v918_v4, %v7206_v12  ;;  %v7226_v30 = vpop.f32.mrb[26].mxu0  ;;  %v7229_v54 = vmax.f32 %v944_v5, %v7206_v12  ;;  %v7232_v33 = vmul.f32 %v6284_v18, %v7089_v13 }
 0x1a9   : > { %v7235_v37 = vmul.f32 %v6286_v20, %v7094_v21  ;;  %6293 = vrcp.f32 %v774_v16  ;;  %v7237_v47 = vpop.f32.mrb[27].mxu0  ;;  %v7239_v38 = vrot.slane %v967_v22, 6  ;;  %v773_v36 = vadd.f32 1.0, %v6282_v48 }
 0x1aa   : > { %9730 = vst [vmem:[#allocation17_spill] sm:$0xff] %v7229_v54  ;;  %6295 = vpow2.f32 %v7155_v25  ;;  %v7244_v57 = vadd.f32 %v7035_v34, %v7157_v26  ;;  %v893_v13 = vmax.f32 %v861_v9, %v7232_v33  ;;  %v919_v61 = vmax.f32 %v891_v3, %v7232_v33  ;;  %5819 = vmatprep.mubr.msk.f32.mxu0 %vm3513_vm3, %v7232_v33  ;;  %v6288_v62 = vpop.eup %6287 }
 0x1ab   : > { %9731 = vst [vmem:[#allocation18_spill] sm:$0xff] %v7239_v38  ;;  %v945_v21 = vmax.f32 %v917_v50, %v7232_v33  ;;  %v7253_v63 = vmax.f32 %v943_v11, %v7232_v33  ;;  %v896_v25 = vmax.f32 %v7206_v12, %v7235_v37  ;;  %v7258_v26 = vmax.f32 %v894_v24, %v7235_v37 }
 0x1ac   : > { %v948_v2 = vmax.f32 %v7222_v27, %v7235_v37  ;;  %5820 = vmatmul.mubr.msk.f32.gmra.mrb[42].mxu0 %vm3513_vm3, %v7206_v12  ;;  %v7264_v56 = vpop.f32.mrb[28].mxu0  ;;  %v972_v44 = vmax.f32 %v946_v28, %v7235_v37  ;;  %v7268_v4 = vmul.f32 %v6288_v62, %v7097_v23  ;;  %6297 = vrcp.f32 %v773_v36 }
 0x1ad   : > { %9732 = vst [vmem:[#allocation19_spill] sm:$0xff] %v7253_v63  ;;  %v5403_v5 = vmul.f32 -1.442695, %v7244_v57  ;;  %v7271_v1 = vpop.f32.mrb[29].mxu0  ;;  %v9678_v7 = vrot.slane %v7253_v63, 6  ;;  %6299 = vpow2.f32 %v7162_v29  ;;  %v7277_v9 = vadd.f32 %v7177_v46, %v7035_v34 }
 0x1ae   : > { %v7281_v12 = vadd.f32 %v7035_v34, %v7187_v55  ;;  %v6290_v48 = vpop.eup %6289  ;;  %v1037_v23 = vrot.slane %v972_v44, 6  ;;  %v895_v16 = vmax.f32 %v7232_v33, %v7268_v4  ;;  %v7286_v18 = vmax.f32 %v893_v13, %v7268_v4  ;;  %5822 = vmatprep.mubr.msk.f32.mxu0 %vm3513_vm3, %v7268_v4 }
 0x1af   : > { %v947_v3 = vmax.f32 %v919_v61, %v7268_v4  ;;  %v6292_v29 = vpop.eup %6291  ;;  %v7294_v46 = vsel %vm1023_vm2, -inf, %v9678_v7  ;;  %v971_v55 = vmax.f32 %v945_v21, %v7268_v4  ;;  %v7298_v50 = vmul.f32 %v6290_v48, %v7103_v32 }
 0x1b0   : > { %9733 = vst [vmem:[#allocation20_spill] sm:$0xff] %v7294_v46  ;;  %6301 = vpow2.f32 %v5404_v17  ;;  %5823 = vmatmul.mubr.msk.f32.gmra.mrb[44].mxu0 %vm3513_vm3, %v7235_v37  ;;  %v7302_v11 = vpop.f32.mrb[30].mxu0  ;;  %v1140_v20 = vsel %vm1023_vm2, %v1037_v23, -inf  ;;  %v7306_v22 = vmul.f32 %v6292_v29, %v7107_v39  ;;  %v7309_v24 = vmul.f32 -1.442695, %v7277_v9 }
 0x1b1   : > { %6303 = vpow2.f32 %v5403_v5  ;;  %v7311_v27 = vpop.f32.mrb[31].mxu0  ;;  %v1208_v28 = vrot.slane %v1140_v20, 1  ;;  %v1353_v32 = vrot.slane %v1140_v20, 2  ;;  %v1498_v33 = vrot.slane %v1140_v20, 3 }
 0x1b2   : > { %v1642_v17 = vrot.slane %v1140_v20, 4  ;;  %v1036_v13 = vrot.slane %v971_v55, 6  ;;  %v898_v61 = vmax.f32 %v7235_v37, %v7298_v50  ;;  %v7316_v21 = vmax.f32 %v896_v25, %v7298_v50  ;;  %5825 = vmatprep.mubr.msk.f32.mxu0 %vm3513_vm3, %v7306_v22 }
 0x1b3   : > { %v6294_v36 = vpop.eup %6293  ;;  %v974_v44 = vmax.f32 %v948_v2, %v7298_v50  ;;  %v7328_v48 = vmax.f32 %v895_v16, %v7306_v22  ;;  %v973_v55 = vmax.f32 %v947_v3, %v7306_v22 }
 0x1b4   : > { %v7322_v62 = vpop.eup %6295  ;;  %5826 = vmatmul.mubr.msk.f32.gmra.mrb[46].mxu0 %vm3513_vm3, %v7298_v50  ;;  %v1038_v25 = vsel %vm1023_vm2, %v1036_v13, %v1037_v23  ;;  %v1124_v29 = vsel %vm1023_vm2, -inf, %v1036_v13  ;;  %v7338_v2 = vmul.f32 %v6294_v36, %v7115_v53 }
 0x1b5   : > { %v1205_v20 = vrot.slane %v1124_v29, 1  ;;  %v1206_v7 = vrot.slane %v1038_v25, 1  ;;  %v1350_v60 = vrot.slane %v1124_v29, 2  ;;  %v1351_v16 = vrot.slane %v1038_v25, 2 }
 0x1b6   : > { %v6298_v8 = vpop.eup %6297  ;;  %v1495_v52 = vrot.slane %v1124_v29, 3  ;;  %v1496_v45 = vrot.slane %v1038_v25, 3  ;;  %v1639_v43 = vrot.slane %v1124_v29, 4  ;;  %v1640_v41 = vrot.slane %v1038_v25, 4 }
 0x1b7   : > { %v6300_v40 = vpop.eup %6299  ;;  %v1207_v37 = vsel %vm1184_vm4, %v1205_v20, %v1206_v7  ;;  %v1209_v23 = vsel %vm1184_vm4, %v1206_v7, %v1208_v28  ;;  %v1352_v13 = vsel %vm1329_vm5, %v1350_v60, %v1351_v16  ;;  %v1354_v3 = vsel %vm1329_vm5, %v1351_v16, %v1353_v32 }
 0x1b8   : > { %v1305_v53 = vmax.f32 %v1124_v29, %v1207_v37  ;;  %v1306_v36 = vmax.f32 %v1038_v25, %v1209_v23  ;;  %v1497_v5 = vsel %vm1474_vm6, %v1495_v52, %v1496_v45  ;;  %v1499_v39 = vsel %vm1474_vm6, %v1496_v45, %v1498_v33 }
 0x1b9   : > { %v1641_v63 = vsel %vm432_vm0, %v1639_v43, %v1640_v41  ;;  %v1643_v54 = vsel %vm432_vm0, %v1640_v41, %v1642_v17  ;;  %v1040_v38 = vrot.slane %v974_v44, 6  ;;  %v1039_v20 = vrot.slane %v973_v55, 6 }
 0x1ba   : > { %v7346_v46 = vpop.eup %6301  ;;  %v1450_v7 = vmax.f32 %v1305_v53, %v1352_v13  ;;  %v1451_v28 = vmax.f32 %v1306_v36, %v1354_v3  ;;  %v900_v60 = vmax.f32 %v7298_v50, %v7338_v2  ;;  %v7353_v32 = vmax.f32 %v898_v61, %v7338_v2 }
 0x1bb   : > { %v6304_v15 = vpop.eup %6303  ;;  %v1141_v52 = vsel %vm1023_vm2, %v1040_v38, -inf  ;;  %v1041_v45 = vsel %vm1023_vm2, %v1039_v20, %v1040_v38  ;;  %v1125_v33 = vsel %vm1023_vm2, -inf, %v1039_v20 }
 0x1bc   : > { %v1595_v43 = vmax.f32 %v1450_v7, %v1497_v5  ;;  %v1596_v17 = vmax.f32 %v1451_v28, %v1499_v39  ;;  %v1213_v44 = vrot.slane %v1141_v52, 1  ;;  %v1358_v37 = vrot.slane %v1141_v52, 2 }
 0x1bd   : > { %v1503_v25 = vrot.slane %v1141_v52, 3  ;;  %v1647_v29 = vrot.slane %v1141_v52, 4  ;;  %v1210_v55 = vrot.slane %v1125_v33, 1  ;;  %v1211_v16 = vrot.slane %v1041_v45, 1 }
 0x1be   : > { %v7360_v23 = vmax.f32 %v1595_v43, %v1641_v63  ;;  %v7362_v61 = vmax.f32 %v1596_v17, %v1643_v54  ;;  %v1355_v13 = vrot.slane %v1125_v33, 2  ;;  %v1356_v3 = vrot.slane %v1041_v45, 2 }
 0x1bf   : > { %v1212_v38 = vsel %vm1184_vm4, %v1210_v55, %v1211_v16  ;;  %v1214_v53 = vsel %vm1184_vm4, %v1211_v16, %v1213_v44  ;;  %v1500_v36 = vrot.slane %v1125_v33, 3  ;;  %v1501_v20 = vrot.slane %v1041_v45, 3 }
 0x1c0   : > { %v1307_v5 = vmax.f32 %v1125_v33, %v1212_v38  ;;  %v1308_v39 = vmax.f32 %v1041_v45, %v1214_v53  ;;  %v1357_v7 = vsel %vm1329_vm5, %v1355_v13, %v1356_v3  ;;  %v1359_v28 = vsel %vm1329_vm5, %v1356_v3, %v1358_v37 }
 0x1c1   : > { %v1502_v52 = vsel %vm1474_vm6, %v1500_v36, %v1501_v20  ;;  %v1504_v63 = vsel %vm1474_vm6, %v1501_v20, %v1503_v25  ;;  %v1644_v54 = vrot.slane %v1125_v33, 4  ;;  %v1645_v43 = vrot.slane %v1041_v45, 4 }
 0x1c2   : > { %v1452_v17 = vmax.f32 %v1307_v5, %v1357_v7  ;;  %v1453_v41 = vmax.f32 %v1308_v39, %v1359_v28  ;;  %v9734_v44 = vmax.f32 %v7258_v26, %v7298_v50  ;;  %v7375_v16 = vmul.f32 %v6298_v8, %v7122_v58 }
 0x1c3   : > { %v1646_v13 = vsel %vm432_vm0, %v1644_v54, %v1645_v43  ;;  %v1648_v37 = vsel %vm432_vm0, %v1645_v43, %v1647_v29  ;;  %v776_v3 = vadd.f32 1.0, %v7322_v62  ;;  %v775_v38 = vadd.f32 1.0, %v6300_v40 }
 0x1c4   : > { %v976_v55 = vmax.f32 %v9734_v44, %v7338_v2  ;;  %v1597_v25 = vmax.f32 %v1452_v17, %v1502_v52  ;;  %v1598_v33 = vmax.f32 %v1453_v41, %v1504_v63  ;;  %v899_v53 = vmax.f32 %v7306_v22, %v7375_v16  ;;  %5828 = vmatprep.mubr.msk.f32.mxu0 %vm3513_vm3, %v7375_v16 }
 0x1c5   : > { %v9735_v58 = vmax.f32 %v7268_v4, %v7306_v22  ;;  %v951_v26 = vmax.f32 %v7328_v48, %v7375_v16  ;;  %v9736_v40 = vmax.f32 %v7286_v18, %v7306_v22  ;;  %6305 = vrcp.f32 %v776_v3  ;;  %5829 = vmatmul.mubr.msk.f32.gmra.mrb[48].mxu0 %vm3513_vm3, %v7338_v2 }
 0x1c6   : > { %v1043_v45 = vrot.slane %v976_v55, 6  ;;  %v7398_v41 = vmax.f32 %v1597_v25, %v1646_v13  ;;  %v7400_v29 = vmax.f32 %v1598_v33, %v1648_v37  ;;  %6307 = vrcp.f32 %v775_v38 }
 0x1c7   : > { %v7388_v8 = vmax.f32 %v9735_v58, %v7375_v16  ;;  %v975_v62 = vmax.f32 %v9736_v40, %v7375_v16  ;;  %v778_v28 = vadd.f32 1.0, %v7346_v46  ;;  %v777_v18 = vadd.f32 1.0, %v6304_v15 }
 0x1c8   : > { %v1142_v4 = vsel %vm1023_vm2, %v1043_v45, -inf  ;;  %6309 = vpow2.f32 %v7309_v24  ;;  %v5405_v52 = vmul.f32 -1.442695, %v7281_v12  ;;  %v7408_v63 = vadd.f32 %v7201_v59, %v7035_v34 }
 0x1c9   : > { %v1218_v36 = vrot.slane %v1142_v4, 1  ;;  %v1363_v20 = vrot.slane %v1142_v4, 2  ;;  %v1508_v5 = vrot.slane %v1142_v4, 3  ;;  %v1652_v39 = vrot.slane %v1142_v4, 4 }
 0x1ca   : > { %v1042_v7 = vrot.slane %v975_v62, 6  ;;  %v7412_v54 = vadd.f32 %v7035_v34, %v7208_v14  ;;  %v7416_v43 = vadd.f32 %v7226_v30, %v7035_v34  ;;  %6311 = vrcp.f32 %v778_v28 }
 0x1cb   : > { %v7422_v46 = vadd.f32 %v7035_v34, %v7237_v47  ;;  %6313 = vrcp.f32 %v777_v18  ;;  %v5408_v28 = vmul.f32 -1.442695, %v7408_v63 }
 0x1cc   : > { %v1044_v17 = vsel %vm1023_vm2, %v1042_v7, %v1043_v45  ;;  %v1126_v15 = vsel %vm1023_vm2, -inf, %v1042_v7  ;;  %6315 = vpow2.f32 %v5405_v52  ;;  %v9737_v52 = vmax.f32 %v7316_v21, %v7338_v2 }
 0x1cd   : > { %v1215_v24 = vrot.slane %v1126_v15, 1  ;;  %v1216_v59 = vrot.slane %v1044_v17, 1  ;;  %v1360_v44 = vrot.slane %v1126_v15, 2  ;;  %v1361_v55 = vrot.slane %v1044_v17, 2 }
 0x1ce   : > { %v1505_v13 = vrot.slane %v1126_v15, 3  ;;  %v1506_v14 = vrot.slane %v1044_v17, 3  ;;  %v1649_v37 = vrot.slane %v1126_v15, 4  ;;  %v1650_v3 = vrot.slane %v1044_v17, 4 }
 0x1cf   : > { %v1217_v30 = vsel %vm1184_vm4, %v1215_v24, %v1216_v59  ;;  %v1219_v38 = vsel %vm1184_vm4, %v1216_v59, %v1218_v36  ;;  %v1362_v25 = vsel %vm1329_vm5, %v1360_v44, %v1361_v55  ;;  %v1364_v33 = vsel %vm1329_vm5, %v1361_v55, %v1363_v20  ;;  %v6306_v62 = vpop.eup %6305 }
 0x1d0   : > { %v1309_v45 = vmax.f32 %v1126_v15, %v1217_v30  ;;  %v1310_v58 = vmax.f32 %v1044_v17, %v1219_v38  ;;  %v1507_v47 = vsel %vm1474_vm6, %v1505_v13, %v1506_v14  ;;  %v1509_v40 = vsel %vm1474_vm6, %v1506_v14, %v1508_v5  ;;  %v6308_v24 = vpop.eup %6307 }
 0x1d1   : > { %v1651_v4 = vsel %vm432_vm0, %v1649_v37, %v1650_v3  ;;  %v1653_v7 = vsel %vm432_vm0, %v1650_v3, %v1652_v39  ;;  %v7434_v44 = vmul.f32 %v6306_v62, %v7135_v6  ;;  %v7437_v20 = vmul.f32 %v6308_v24, %v7142_v10 }
 0x1d2   : > { %v1454_v36 = vmax.f32 %v1309_v45, %v1362_v25  ;;  %v1455_v59 = vmax.f32 %v1310_v58, %v1364_v33  ;;  %6317 = vpow2.f32 %v5408_v28  ;;  %v5407_v5 = vmul.f32 -1.442695, %v7412_v54  ;;  %v6310_v15 = vpop.eup %6309 }
 0x1d3   : > { %v5410_v17 = vmul.f32 -1.442695, %v7416_v43  ;;  %v902_v55 = vmax.f32 %v7338_v2, %v7434_v44  ;;  %v7447_v6 = vmax.f32 %v900_v60, %v7434_v44  ;;  %v954_v10 = vmax.f32 %v7353_v32, %v7434_v44  ;;  %5831 = vmatprep.mubr.msk.f32.mxu0 %vm3513_vm3, %v7437_v20 }
 0x1d4   : > { %v1599_v39 = vmax.f32 %v1454_v36, %v1507_v47  ;;  %v1600_v18 = vmax.f32 %v1455_v59, %v1509_v40  ;;  %v978_v13 = vmax.f32 %v9737_v52, %v7434_v44  ;;  %v901_v14 = vmax.f32 %v7375_v16, %v7437_v20  ;;  %v6312_v50 = vpop.eup %6311  ;;  %5832 = vmatmul.mubr.msk.f32.gmra.mrb[50].mxu0 %vm3513_vm3, %v7434_v44 }
 0x1d5   : > { %v7461_v37 = vmax.f32 %v899_v53, %v7437_v20  ;;  %v953_v21 = vmax.f32 %v7388_v8, %v7437_v20  ;;  %v977_v2 = vmax.f32 %v951_v26, %v7437_v20  ;;  %v7478_v53 = vmul.f32 %v6312_v50, %v7191_v42  ;;  %v6314_v58 = vpop.eup %6313 }
 0x1d6   : > { %v7465_v60 = vmax.f32 %v1599_v39, %v1651_v4  ;;  %v7467_v32 = vmax.f32 %v1600_v18, %v1653_v7  ;;  %v1046_v22 = vrot.slane %v978_v13, 6  ;;  %v780_v3 = vadd.f32 1.0, %v6310_v15  ;;  %v6316_v4 = vpop.eup %6315 }
 0x1d7   : > { %6319 = vpow2.f32 %v5407_v5  ;;  %v1045_v30 = vrot.slane %v977_v2, 6  ;;  %v5409_v38 = vmul.f32 -1.442695, %v7422_v46  ;;  %v7483_v8 = vadd.f32 %v7264_v56, %v7035_v34 }
 0x1d8   : > { %6321 = vpow2.f32 %v5410_v17  ;;  %v7486_v48 = vsel %vm1023_vm2, %v1046_v22, -inf  ;;  %v904_v16 = vmax.f32 %v7434_v44, %v7478_v53  ;;  %v7491_v26 = vmax.f32 %v902_v55, %v7478_v53 }
 0x1d9   : > { %v956_v42 = vmax.f32 %v7447_v6, %v7478_v53  ;;  %v7497_v33 = vsel %vm1023_vm2, %v1045_v30, %v1046_v22  ;;  %v7500_v56 = vsel %vm1023_vm2, -inf, %v1045_v30  ;;  %v980_v45 = vmax.f32 %v954_v10, %v7478_v53 }
 0x1da   : > { %6323 = vrcp.f32 %v780_v3  ;;  %v5412_v47 = vmul.f32 -1.442695, %v7483_v8  ;;  %v7506_v40 = vadd.f32 %v7035_v34, %v7271_v1  ;;  %v7510_v62 = vadd.f32 %v7302_v11, %v7035_v34 }
 0x1db   : > { %v1049_v7 = vrot.slane %v980_v45, 6  ;;  %v7513_v28 = vmul.f32 %v6314_v58, %v7244_v57  ;;  %6325 = vpow2.f32 %v5409_v38  ;;  %v7517_v24 = vadd.f32 %v7035_v34, %v7311_v27 }
 0x1dc   : > { %v6318_v36 = vpop.eup %6317  ;;  %v779_v59 = vadd.f32 1.0, %v6316_v4  ;;  %6327 = vpow2.f32 %v5412_v47  ;;  %v5411_v1 = vmul.f32 -1.442695, %v7506_v40  ;;  %v5414_v5 = vmul.f32 -1.442695, %v7510_v62 }
 0x1dd   : > { %v7522_v11 = vsel %vm1023_vm2, %v1049_v7, -inf  ;;  %v903_v17 = vmax.f32 %v7437_v20, %v7513_v28  ;;  %v7527_v57 = vmax.f32 %v901_v14, %v7513_v28  ;;  %v955_v34 = vmax.f32 %v7461_v37, %v7513_v28  ;;  %5834 = vmatprep.mubr.msk.f32.mxu0 %vm3513_vm3, %v7513_v28 }
 0x1de   : > { %v1228_v27 = vrot.slane %v7522_v11, 1  ;;  %v979_v15 = vmax.f32 %v953_v21, %v7513_v28  ;;  %6329 = vrcp.f32 %v779_v59  ;;  %v782_v39 = vadd.f32 1.0, %v6318_v36  ;;  %5835 = vmatmul.mubr.msk.f32.gmra.mrb[52].mxu0 %vm3513_vm3, %v7478_v53 }
 0x1df   : > { %6331 = vpow2.f32 %v5411_v1  ;;  %v5413_v18 = vmul.f32 -1.442695, %v7517_v24  ;;  %v1373_v55 = vrot.slane %v7522_v11, 2  ;;  %v1518_v10 = vrot.slane %v7522_v11, 3 }
 0x1e0   : > { %v1048_v13 = vrot.slane %v979_v15, 6  ;;  %6333 = vrcp.f32 %v782_v39  ;;  %v1662_v14 = vrot.slane %v7522_v11, 4 }
 0x1e1   : > { %v6320_v52 = vpop.eup %6319  ;;  %6335 = vpow2.f32 %v5414_v5 }
 0x1e2   : > { %v6322_v21 = vpop.eup %6321  ;;  %v781_v2 = vadd.f32 1.0, %v6320_v52  ;;  %v7545_v30 = vsel %vm1023_vm2, %v1048_v13, %v1049_v7  ;;  %v1128_v38 = vsel %vm1023_vm2, -inf, %v1048_v13  ;;  %6337 = vpow2.f32 %v5413_v18 }
 0x1e3   : > { %v784_v45 = vadd.f32 1.0, %v6322_v21  ;;  %v1225_v58 = vrot.slane %v1128_v38, 1  ;;  %v1226_v47 = vrot.slane %v7545_v30, 1  ;;  %v1370_v4 = vrot.slane %v1128_v38, 2 }
 0x1e4   : > { %6339 = vrcp.f32 %v781_v2  ;;  %v6324_v36 = vpop.eup %6323  ;;  %v1371_v59 = vrot.slane %v7545_v30, 2  ;;  %v1515_v1 = vrot.slane %v1128_v38, 3  ;;  %v1516_v5 = vrot.slane %v7545_v30, 3 }
 0x1e5   : > { %6341 = vrcp.f32 %v784_v45  ;;  %v6326_v15 = vpop.eup %6325  ;;  %v7552_v7 = vmul.f32 %v6324_v36, %v7277_v9  ;;  %v1227_v39 = vsel %vm1184_vm4, %v1225_v58, %v1226_v47  ;;  %v1659_v52 = vrot.slane %v1128_v38, 4 }
 0x1e6   : > { %v1660_v18 = vrot.slane %v7545_v30, 4  ;;  %v6328_v13 = vpop.eup %6327  ;;  %v783_v21 = vadd.f32 1.0, %v6326_v15  ;;  %v1313_v2 = vmax.f32 %v1128_v38, %v1227_v39  ;;  %v1372_v25 = vsel %vm1329_vm5, %v1370_v4, %v1371_v59 }
 0x1e7   : > { %v1517_v45 = vsel %vm1474_vm6, %v1515_v1, %v1516_v5  ;;  %v906_v3 = vmax.f32 %v7478_v53, %v7552_v7  ;;  %v932_v9 = vmax.f32 %v904_v16, %v7552_v7  ;;  %v958_v58 = vmax.f32 %v7491_v26, %v7552_v7 }
 0x1e8   : > { %v982_v38 = vmax.f32 %v956_v42, %v7552_v7  ;;  %v6330_v4 = vpop.eup %6329  ;;  %6343 = vrcp.f32 %v783_v21  ;;  %v786_v36 = vadd.f32 1.0, %v6328_v13  ;;  %v1458_v1 = vmax.f32 %v1313_v2, %v1372_v25 }
 0x1e9   : > { %v1661_v15 = vsel %vm432_vm0, %v1659_v52, %v1660_v18  ;;  %v6332_v39 = vpop.eup %6331  ;;  %v7576_v44 = vmul.f32 %v6330_v4, %v7281_v12  ;;  %v1229_v16 = vsel %vm1184_vm4, %v1226_v47, %v1228_v27  ;;  %v1374_v26 = vsel %vm1329_vm5, %v1371_v59, %v1373_v55 }
 0x1ea   : > { %v1052_v50 = vrot.slane %v982_v38, 6  ;;  %v6334_v22 = vpop.eup %6333  ;;  %6345 = vrcp.f32 %v786_v36  ;;  %v785_v6 = vadd.f32 1.0, %v6332_v39  ;;  %v1603_v53 = vmax.f32 %v1458_v1, %v1517_v45 }
 0x1eb   : > { %v1314_v42 = vmax.f32 %v7545_v30, %v1229_v16  ;;  %v6336_v25 = vpop.eup %6335  ;;  %v905_v52 = vmax.f32 %v7513_v28, %v7576_v44  ;;  %v931_v12 = vmax.f32 %v903_v17, %v7576_v44  ;;  %v957_v27 = vmax.f32 %v7527_v57, %v7576_v44  ;;  %5837 = vmatprep.mubr.msk.f32.mxu0 %vm3513_vm3, %v7576_v44 }
 0x1ec   : > { %v7582_v13 = vsel %vm1023_vm2, %v1052_v50, -inf  ;;  %v6338_v55 = vpop.eup %6337  ;;  %v981_v59 = vmax.f32 %v955_v34, %v7576_v44  ;;  %v878_v21 = vmul.f32 %v6334_v22, %v7408_v63  ;;  %6347 = vrcp.f32 %v785_v6  ;;  %5838 = vmatmul.mubr.msk.f32.gmra.mrb[54].mxu0 %vm3513_vm3, %v7552_v7 }
 0x1ed   : > { %v1233_v47 = vrot.slane %v7582_v13, 1  ;;  %v788_v17 = vadd.f32 1.0, %v6336_v25  ;;  %v787_v57 = vadd.f32 1.0, %v6338_v55  ;;  %v7602_v2 = vmax.f32 %v1603_v53, %v1661_v15 }
 0x1ee   : > { %v6340_v20 = vpop.eup %6339  ;;  %v7604_v45 = vmax.f32 %v1314_v42, %v1374_v26  ;;  %v1051_v4 = vrot.slane %v981_v59, 6  ;;  %v960_v36 = vmax.f32 %v932_v9, %v878_v21  ;;  %v984_v1 = vmax.f32 %v958_v58, %v878_v21 }
 0x1ef   : > { %v6342_v38 = vpop.eup %6341  ;;  %v877_v37 = vmul.f32 %v6340_v20, %v7412_v54  ;;  %v934_v63 = vmax.f32 %v906_v3, %v878_v21  ;;  %6349 = vrcp.f32 %v788_v17  ;;  %v908_v34 = vmax.f32 %v7552_v7, %v878_v21  ;;  %5878 = vmatprep.mubr.msk.f32.mxu1 %vm3513_vm3, %v7602_v2 }
 0x1f0   : > { %v7608_v28 = vmul.f32 %v6342_v38, %v7416_v43  ;;  %v7614_v22 = vsel %vm1023_vm2, %v1051_v4, %v1052_v50  ;;  %v7617_v15 = vsel %vm1023_vm2, -inf, %v1051_v4  ;;  %v1055_v9 = vrot.slane %v984_v1, 6 }
 0x1f1   : > { %v959_v58 = vmax.f32 %v931_v12, %v877_v37  ;;  %5840 = vmatprep.mubr.msk.f32.mxu0 %vm3513_vm3, %v877_v37  ;;  %v983_v54 = vmax.f32 %v957_v27, %v877_v37  ;;  %v933_v39 = vmax.f32 %v905_v52, %v877_v37  ;;  %6351 = vrcp.f32 %v787_v57 }
 0x1f2   : > { %v986_v43 = vmax.f32 %v960_v36, %v7608_v28  ;;  %v962_v3 = vmax.f32 %v934_v63, %v7608_v28  ;;  %5841 = vmatmul.mubr.msk.f32.gmra.mrb[56].mxu0 %vm3513_vm3, %v878_v21  ;;  %v6344_v7 = vpop.eup %6343  ;;  %v7624_v16 = vsel %vm1023_vm2, %v1055_v9, -inf  ;;  %v910_v50 = vmax.f32 %v878_v21, %v7608_v28 }
 0x1f3   : > { %v936_v26 = vmax.f32 %v908_v34, %v7608_v28  ;;  %v1238_v6 = vrot.slane %v7624_v16, 1  ;;  %v1054_v53 = vrot.slane %v983_v54, 6  ;;  %v7630_v25 = vmul.f32 %v6344_v7, %v7422_v46 }
 0x1f4   : > { %v1058_v42 = vrot.slane %v986_v43, 6  ;;  %v6346_v12 = vpop.eup %6345  ;;  %v907_v52 = vmax.f32 %v7576_v44, %v877_v37  ;;  %v1519_v27 = vsel %vm1474_vm6, %v1516_v5, %v1518_v10  ;;  %v1663_v55 = vsel %vm432_vm0, %v1660_v18, %v1662_v14 }
 0x1f5   : > { %v1230_v59 = vrot.slane %v7617_v15, 1  ;;  %v7645_v46 = vsel %vm1023_vm2, %v1054_v53, %v1055_v9  ;;  %v7648_v21 = vsel %vm1023_vm2, -inf, %v1054_v53  ;;  %v985_v20 = vmax.f32 %v959_v58, %v7630_v25  ;;  %5843 = vmatprep.mubr.msk.f32.mxu0 %vm3513_vm3, %v7630_v25 }
 0x1f6   : > { %v7651_v44 = vsel %vm1023_vm2, %v1058_v42, -inf  ;;  %v6348_v11 = vpop.eup %6347  ;;  %v882_v14 = vmul.f32 %v6346_v12, %v7483_v8  ;;  %v961_v30 = vmax.f32 %v933_v39, %v7630_v25  ;;  %v909_v5 = vmax.f32 %v877_v37, %v7630_v25  ;;  %5844 = vmatmul.mubr.msk.f32.gmra.mrb[58].mxu0 %vm3513_vm3, %v7608_v28 }
 0x1f7   : > { %v1243_v10 = vrot.slane %v7651_v44, 1  ;;  %v1057_v18 = vrot.slane %v985_v20, 6  ;;  %v7663_v17 = vmul.f32 %v6348_v11, %v7506_v40  ;;  %v7666_v57 = vmax.f32 %v907_v52, %v7630_v25 }
 0x1f8   : > { %v1604_v38 = vmax.f32 %v7604_v45, %v1519_v27  ;;  %v988_v4 = vmax.f32 %v962_v3, %v882_v14  ;;  %v912_v36 = vmax.f32 %v7608_v28, %v882_v14  ;;  %v938_v8 = vmax.f32 %v910_v50, %v882_v14 }
 0x1f9   : > { %v964_v1 = vmax.f32 %v936_v26, %v882_v14  ;;  %v6350_v63 = vpop.eup %6349  ;;  %v7671_v37 = vsel %vm1023_vm2, %v1057_v18, %v1058_v42  ;;  %v7674_v34 = vsel %vm1023_vm2, -inf, %v1057_v18  ;;  %v987_v40 = vmax.f32 %v961_v30, %v7663_v17  ;;  %5846 = vmatprep.mubr.msk.f32.mxu0 %vm3513_vm3, %v7663_v17 }
 0x1fa   : > { %v911_v9 = vmax.f32 %v7630_v25, %v7663_v17  ;;  %v1061_v45 = vrot.slane %v988_v4, 6  ;;  %v884_v28 = vmul.f32 %v6350_v63, %v7510_v62  ;;  %v937_v58 = vmax.f32 %v909_v5, %v7663_v17  ;;  %5847 = vmatmul.mubr.msk.f32.gmra.mrb[60].mxu0 %vm3513_vm3, %v882_v14  ;;  %v4593_v25 = vld [vmem:[#allocation8 + $0x6] sm:$0x3]  ;;  %v6481_v5 = vld [vmem:[#allocation8 + $0x4] sm:$0x3] }
 0x1fb   : > { %v963_v54 = vmax.f32 %v7666_v57, %v7663_v17  ;;  %v1060_v43 = vrot.slane %v987_v40, 6  ;;  %v7686_v3 = vmax.f32 %v1604_v38, %v1663_v55  ;;  %v1231_v39 = vrot.slane %v7614_v22, 1  ;;  %v6352_v50 = vpop.eup %6351 }
 0x1fc   : > { %v1375_v7 = vrot.slane %v7617_v15, 2  ;;  %v7691_v26 = vsel %vm1023_vm2, %v1061_v45, -inf  ;;  %v940_v53 = vmax.f32 %v912_v36, %v884_v28  ;;  %v966_v62 = vmax.f32 %v938_v8, %v884_v28 }
 0x1fd   : > { %v990_v42 = vmax.f32 %v964_v1, %v884_v28  ;;  %5879 = vmatmul.mubr.msk.f32.vlgmr.msra.gmra.mrb[0].mxu1 %vm3513_vm3, %v7686_v3  ;;  %v7700_v20 = vsel %vm1023_vm2, %v1060_v43, %v1061_v45  ;;  %v7703_v11 = vsel %vm1023_vm2, -inf, %v1060_v43  ;;  %v883_v27 = vmul.f32 %v6352_v50, %v7517_v24 }
 0x1fe   : > { %v1067_v30 = vrot.slane %v966_v62, 6  ;;  %5903 = vmatpush3.msk.msra.mxu1 %vm1023_vm2, %v6481_v5  ;;  %v1070_v36 = vrot.slane %v940_v53, 6  ;;  %v1232_v40 = vsel %vm1184_vm4, %v1230_v59, %v1231_v39  ;;  %v1376_v45 = vrot.slane %v7614_v22, 2 }
 0x1ff   : > { %v1064_v14 = vrot.slane %v990_v42, 6  ;;  %5952 = vmatprep.subr.msk.mxu1 %vm1023_vm2, %v4593_v25  ;;  %v1315_v43 = vmax.f32 %v7617_v15, %v1232_v40  ;;  %v1520_v42 = vrot.slane %v7617_v15, 3  ;;  %v1521_v53 = vrot.slane %v7614_v22, 3  ;;  %5849 = vmatprep.mubr.msk.f32.mxu0 %vm3513_vm3, %v883_v27 }
 0x200   : > { %v7716_v1 = vsel %vm1023_vm2, %v1067_v30, -inf  ;;  %v7723_v62 = vsel %vm1023_vm2, %v1070_v36, -inf  ;;  %v939_v52 = vmax.f32 %v911_v9, %v883_v27  ;;  %v965_v25 = vmax.f32 %v937_v58, %v883_v27  ;;  %5850 = vmatmul.mubr.msk.f32.gmra.mrb[62].mxu0 %vm3513_vm3, %v884_v28 }
 0x201   : > { %v7713_v8 = vsel %vm1023_vm2, %v1064_v14, -inf  ;;  %v989_v12 = vmax.f32 %v963_v54, %v883_v27  ;;  %v1664_v5 = vrot.slane %v7617_v15, 4  ;;  %v1377_v24 = vsel %vm1329_vm5, %v1375_v7, %v1376_v45 }
 0x202   : > { %v1253_v63 = vrot.slane %v7713_v8, 1  ;;  %v1522_v50 = vsel %vm1474_vm6, %v1520_v42, %v1521_v53  ;;  %v1665_v59 = vrot.slane %v7614_v22, 4  ;;  %v1234_v40 = vsel %vm1184_vm4, %v1231_v39, %v1233_v47 }
 0x203   : > { %v1063_v55 = vrot.slane %v989_v12, 6  ;;  %v1066_v9 = vrot.slane %v965_v25, 6  ;;  %v1069_v58 = vrot.slane %v939_v52, 6  ;;  %v1460_v54 = vmax.f32 %v1315_v43, %v1377_v24 }
 0x204   : > { %v1666_v27 = vsel %vm432_vm0, %v1664_v5, %v1665_v59  ;;  %v1316_v15 = vmax.f32 %v7614_v22, %v1234_v40  ;;  %v1378_v7 = vrot.slane %v7582_v13, 2  ;;  %v1523_v42 = vrot.slane %v7582_v13, 3 }
 0x205   : > { %v7752_v4 = vsel %vm1023_vm2, %v1063_v55, %v1064_v14  ;;  %v7755_v28 = vsel %vm1023_vm2, %v1066_v9, %v1067_v30  ;;  %v7758_v47 = vsel %vm1023_vm2, %v1069_v58, %v1070_v36  ;;  %v7761_v39 = vsel %vm1023_vm2, -inf, %v1063_v55 }
 0x206   : > { %v7764_v12 = vsel %vm1023_vm2, -inf, %v1066_v9  ;;  %v7767_v22 = vsel %vm1023_vm2, -inf, %v1069_v58  ;;  %v1250_v52 = vrot.slane %v7761_v39, 1  ;;  %v1251_v14 = vrot.slane %v7752_v4, 1 }
 0x207   : > { %v1395_v36 = vrot.slane %v7761_v39, 2  ;;  %v9686_v25 = vrot.slane %v7752_v4, 2  ;;  %v1605_v24 = vmax.f32 %v1460_v54, %v1522_v50  ;;  %v1524_v40 = vsel %vm1474_vm6, %v1521_v53, %v1523_v42 }
 0x208   : > { %v1252_v55 = vsel %vm1184_vm4, %v1250_v52, %v1251_v14  ;;  %v7777_v5 = vsel %vm1184_vm4, %v1251_v14, %v1253_v63  ;;  %v1667_v58 = vrot.slane %v7582_v13, 4  ;;  %v9740_v52 = vrot.slane %v7183_v51, 1 }
 0x209   : > { %v1323_v9 = vmax.f32 %v7761_v39, %v1252_v55  ;;  %v1397_v43 = vsel %vm1329_vm5, %v1395_v36, %v9686_v25  ;;  %v1379_v55 = vsel %vm1329_vm5, %v1376_v45, %v1378_v7  ;;  %v7796_v38 = vmax.f32 %v1605_v24, %v1666_v27 }
 0x20a   : > { %v1461_v36 = vmax.f32 %v1316_v15, %v1379_v55  ;;  %v9739_v25 = vrot.slane %v7180_v49, 1  ;;  %v9741_v14 = vrot.slane %v7165_v31, 1  ;;  %v1668_v45 = vsel %vm432_vm0, %v1665_v59, %v1667_v58 }
 0x20b   : > { %v7791_v57 = vmax.f32 %v1323_v9, %v1397_v43  ;;  %9738 = vst [vmem:[#allocation21_spill] sm:$0xff] %v7796_v38  ;;  %v1331_v13 = vrot.slane %v7180_v49, 2  ;;  %v1475_v27 = vrot.slane %v7183_v51, 3  ;;  %v1779_v15 = vmax.f32 %v7602_v2, %v7796_v38  ;;  %5881 = vmatprep.mubr.msk.f32.mxu1 %vm3513_vm3, %v7796_v38 }
 0x20c   : > { %v1187_v63 = vsel %vm1184_vm4, %v9740_v52, %v9739_v25  ;;  %v9742_v50 = vmov %v9739_v25  ;;  %v1606_v7 = vmax.f32 %v1461_v36, %v1524_v40  ;;  %v1476_v42 = vrot.slane %v7180_v49, 3 }
 0x20d   : > { %v1189_v54 = vsel %vm1184_vm4, %v9742_v50, %v9741_v14  ;;  %v1297_v53 = vmax.f32 %v7183_v51, %v1187_v63  ;;  %v1619_v43 = vrot.slane %v7183_v51, 4  ;;  %v9743_v25 = vrot.slane %v7183_v51, 2 }
 0x20e   : > { %v9744_v24 = vrot.slane %v7165_v31, 2  ;;  %v1620_v58 = vrot.slane %v7180_v49, 4  ;;  %v1235_v52 = vrot.slane %v7648_v21, 1  ;;  %v7826_v63 = vmax.f32 %v1606_v7, %v1668_v45 }
 0x20f   : > { %v1332_v59 = vsel %vm1329_vm5, %v9743_v25, %v1331_v13  ;;  %v1477_v40 = vsel %vm1474_vm6, %v1475_v27, %v1476_v42  ;;  %v9745_v55 = vrot.slane %v7165_v31, 3  ;;  %v9746_v50 = vrot.slane %v7165_v31, 4 }
 0x210   : > { %v1334_v9 = vsel %vm1329_vm5, %v1331_v13, %v9744_v24  ;;  %v1442_v14 = vmax.f32 %v1297_v53, %v1332_v59  ;;  %v1621_v51 = vsel %vm432_vm0, %v1619_v43, %v1620_v58  ;;  %v1236_v13 = vrot.slane %v7645_v46, 1  ;;  %5882 = vmatmul.mubr.msk.f32.gmra.mrb[2].mxu1 %vm3513_vm3, %v7826_v63 }
 0x211   : > { %v1479_v36 = vsel %vm1474_vm6, %v1476_v42, %v9745_v55  ;;  %v1623_v25 = vsel %vm432_vm0, %v1620_v58, %v9746_v50  ;;  %v1380_v24 = vrot.slane %v7648_v21, 2  ;;  %v1780_v45 = vmax.f32 %v7686_v3, %v7826_v63 }
 0x212   : > { %v1587_v53 = vmax.f32 %v1442_v14, %v1477_v40  ;;  %v1381_v27 = vrot.slane %v7645_v46, 2  ;;  %v1525_v7 = vrot.slane %v7648_v21, 3  ;;  %v1237_v42 = vsel %vm1184_vm4, %v1235_v52, %v1236_v13 }
 0x213   : > { %v1526_v31 = vrot.slane %v7645_v46, 3  ;;  %v1669_v43 = vrot.slane %v7648_v21, 4  ;;  %v1670_v59 = vrot.slane %v7645_v46, 4  ;;  %v1317_v55 = vmax.f32 %v7648_v21, %v1237_v42 }
 0x214   : > { %v7848_v58 = vmax.f32 %v1587_v53, %v1621_v51  ;;  %v1382_v50 = vsel %vm1329_vm5, %v1380_v24, %v1381_v27  ;;  %v1298_v14 = vmax.f32 %v7180_v49, %v1189_v54  ;;  %v1239_v52 = vsel %vm1184_vm4, %v1236_v13, %v1238_v6 }
 0x215   : > { %v1527_v40 = vsel %vm1474_vm6, %v1525_v7, %v1526_v31  ;;  %v1671_v30 = vsel %vm432_vm0, %v1669_v43, %v1670_v59  ;;  %v1383_v18 = vrot.slane %v7624_v16, 2  ;;  %v1462_v51 = vmax.f32 %v1317_v55, %v1382_v50 }
 0x216   : > { %5854 = vmatprep.mubr.msk.f32.mxu0 %vm3513_vm3, %v7848_v58  ;;  %v1443_v53 = vmax.f32 %v1298_v14, %v1334_v9  ;;  %v1318_v21 = vmax.f32 %v7645_v46, %v1239_v52  ;;  %v1528_v24 = vrot.slane %v7624_v16, 3  ;;  %v1672_v54 = vrot.slane %v7624_v16, 4 }
 0x217   : > { %v1384_v49 = vsel %vm1329_vm5, %v1381_v27, %v1383_v18  ;;  %v9747_v7 = vrot.slane %v7171_v35, 6  ;;  %v9748_v42 = vrot.slane %v7194_v0, 6  ;;  %v1190_v13 = vrot.slane %v7216_v19, 1 }
 0x218   : > { %v1607_v43 = vmax.f32 %v1462_v51, %v1527_v40  ;;  %v1588_v55 = vmax.f32 %v1443_v53, %v1479_v36  ;;  %v1463_v9 = vmax.f32 %v1318_v21, %v1384_v49  ;;  %v1529_v46 = vsel %vm1474_vm6, %v1526_v31, %v1528_v24 }
 0x219   : > { %v7870_v6 = vsel %vm1023_vm2, %v9748_v42, %v9747_v7  ;;  %v1673_v50 = vsel %vm432_vm0, %v1670_v59, %v1672_v54  ;;  %v1335_v16 = vrot.slane %v7216_v19, 2  ;;  %v1480_v7 = vrot.slane %v7216_v19, 3 }
 0x21a   : > { %v1191_v18 = vrot.slane %v7870_v6, 1  ;;  %v1336_v27 = vrot.slane %v7870_v6, 2  ;;  %v7878_v14 = vmax.f32 %v1607_v43, %v1671_v30  ;;  %v7880_v0 = vmax.f32 %v1588_v55, %v1623_v25 }
 0x21b   : > { %v1608_v52 = vmax.f32 %v1463_v9, %v1529_v46  ;;  %v1481_v31 = vrot.slane %v7870_v6, 3  ;;  %v1624_v59 = vrot.slane %v7216_v19, 4  ;;  %v1625_v25 = vrot.slane %v7870_v6, 4 }
 0x21c   : > { %v1192_v36 = vsel %vm1184_vm4, %v1190_v13, %v1191_v18  ;;  %v1337_v40 = vsel %vm1329_vm5, %v1335_v16, %v1336_v27  ;;  %v1781_v51 = vmax.f32 %v7796_v38, %v7878_v14  ;;  %v7890_v53 = vmax.f32 %v1779_v15, %v7878_v14  ;;  %5884 = vmatprep.mubr.msk.f32.mxu1 %vm3513_vm3, %v7878_v14 }
 0x21d   : > { %5855 = vmatmul.mubr.msk.f32.vlgmr.msra.gmra.mrb[32].mxu0 %vm3513_vm3, %v7880_v0  ;;  %v7896_v30 = vmax.f32 %v1608_v52, %v1673_v50  ;;  %v1299_v21 = vmax.f32 %v7216_v19, %v1192_v36  ;;  %v1482_v24 = vsel %vm1474_vm6, %v1480_v7, %v1481_v31  ;;  %v1240_v49 = vrot.slane %v7674_v34, 1 }
 0x21e   : > { %9749 = vst [vmem:[#allocation22_spill] sm:$0xff] %v7890_v53  ;;  %v1241_v54 = vrot.slane %v7671_v37, 1  ;;  %v1626_v13 = vsel %vm432_vm0, %v1624_v59, %v1625_v25  ;;  %v1385_v43 = vrot.slane %v7674_v34, 2  ;;  %v1386_v9 = vrot.slane %v7671_v37, 2 }
 0x21f   : > { %v7906_v42 = vmax.f32 %v1780_v45, %v7896_v30  ;;  %5885 = vmatmul.mubr.msk.f32.gmra.mrb[4].mxu1 %vm3513_vm3, %v7896_v30  ;;  %v1444_v19 = vmax.f32 %v1299_v21, %v1337_v40  ;;  %v1530_v46 = vrot.slane %v7674_v34, 3  ;;  %v1531_v16 = vrot.slane %v7671_v37, 3 }
 0x220   : > { %v1242_v55 = vsel %vm1184_vm4, %v1240_v49, %v1241_v54  ;;  %v1674_v45 = vrot.slane %v7674_v34, 4  ;;  %v1675_v52 = vrot.slane %v7671_v37, 4  ;;  %v1387_v36 = vsel %vm1329_vm5, %v1385_v43, %v1386_v9 }
 0x221   : > { %9750 = vst [vmem:[#allocation23_spill] sm:$0xff] %v7906_v42  ;;  %v1319_v50 = vmax.f32 %v7674_v34, %v1242_v55  ;;  %v1589_v7 = vmax.f32 %v1444_v19, %v1482_v24  ;;  %v9751_v59 = vrot.slane %v7171_v35, 6  ;;  %v1244_v21 = vsel %vm1184_vm4, %v1241_v54, %v1243_v10 }
 0x222   : > { %v1532_v55 = vsel %vm1474_vm6, %v1530_v46, %v1531_v16  ;;  %v1676_v17 = vsel %vm432_vm0, %v1674_v45, %v1675_v52  ;;  %v1388_v38 = vrot.slane %v7651_v44, 2  ;;  %v9763_v42 = vrot.slane %v7691_v26, 3 }
 0x223   : > { %v1137_v40 = vsel %vm1023_vm2, %v9751_v59, -inf  ;;  %v1464_v49 = vmax.f32 %v1319_v50, %v1387_v36  ;;  %v7928_v34 = vmax.f32 %v1589_v7, %v1626_v13  ;;  %v1320_v59 = vmax.f32 %v7671_v37, %v1244_v21  ;;  %v9753_v21 = vld [vmem:[#allocation18_spill] sm:$0xff] }
 0x224   : > { %v1193_v15 = vrot.slane %v1137_v40, 1  ;;  %v1338_v53 = vrot.slane %v1137_v40, 2  ;;  %v1483_v24 = vrot.slane %v1137_v40, 3  ;;  %v1627_v19 = vrot.slane %v1137_v40, 4  ;;  %v9752_v40 = vld [vmem:[#allocation16_spill] sm:$0xff] }
 0x225   : > { %v1609_v43 = vmax.f32 %v1464_v49, %v1532_v55  ;;  %5857 = vmatprep.mubr.msk.f32.mxu0 %vm3513_vm3, %v7928_v34  ;;  %v1389_v37 = vsel %vm1329_vm5, %v1386_v9, %v1388_v38  ;;  %v1677_v36 = vrot.slane %v7651_v44, 4  ;;  %v1122_v38 = vsel %vm1023_vm2, -inf, %v9753_v21 }
 0x226   : > { %v1194_v35 = vsel %vm1184_vm4, %v1191_v18, %v1193_v15  ;;  %v1339_v13 = vsel %vm1329_vm5, %v1336_v27, %v1338_v53  ;;  %v1484_v46 = vsel %vm1474_vm6, %v1481_v31, %v1483_v24  ;;  %v1628_v18 = vsel %vm432_vm0, %v1625_v25, %v1627_v19 }
 0x227   : > { %v1300_v54 = vmax.f32 %v7870_v6, %v1194_v35  ;;  %v7940_v50 = vmax.f32 %v1609_v43, %v1676_v17  ;;  %v1533_v15 = vrot.slane %v7651_v44, 3  ;;  %v1465_v7 = vmax.f32 %v1320_v59, %v1389_v37 }
 0x228   : > { %v7949_v6 = vsel %vm1023_vm2, %v9753_v21, %v9752_v40  ;;  %v1678_v25 = vsel %vm432_vm0, %v1675_v52, %v1677_v36  ;;  %v1195_v9 = vrot.slane %v1122_v38, 1  ;;  %v1340_v49 = vrot.slane %v1122_v38, 2 }
 0x229   : > { %v1445_v45 = vmax.f32 %v1300_v54, %v1339_v13  ;;  %v7952_v27 = vmax.f32 %v1781_v51, %v7940_v50  ;;  %5887 = vmatprep.mubr.msk.f32.mxu1 %vm3513_vm3, %v7940_v50  ;;  %v1534_v17 = vsel %vm1474_vm6, %v1531_v16, %v1533_v15  ;;  %v1196_v31 = vrot.slane %v7949_v6, 1 }
 0x22a   : > { %v1610_v44 = vmax.f32 %v1465_v7, %v1534_v17  ;;  %v1341_v55 = vrot.slane %v7949_v6, 2  ;;  %v1485_v51 = vrot.slane %v1122_v38, 3  ;;  %v1486_v24 = vrot.slane %v7949_v6, 3 }
 0x22b   : > { %9754 = vst [vmem:[#allocation16_spill] sm:$0xff] %v7952_v27  ;;  %v1590_v53 = vmax.f32 %v1445_v45, %v1484_v46  ;;  %v1197_v16 = vsel %vm1184_vm4, %v1195_v9, %v1196_v31  ;;  %v1629_v35 = vrot.slane %v1122_v38, 4  ;;  %v1630_v52 = vrot.slane %v7949_v6, 4 }
 0x22c   : > { %v7965_v43 = vmax.f32 %v1610_v44, %v1678_v25  ;;  %v1301_v59 = vmax.f32 %v1122_v38, %v1197_v16  ;;  %v1342_v54 = vsel %vm1329_vm5, %v1340_v49, %v1341_v55  ;;  %v1487_v13 = vsel %vm1474_vm6, %v1485_v51, %v1486_v24 }
 0x22d   : > { %v7963_v19 = vmax.f32 %v1590_v53, %v1628_v18  ;;  %v9755_v18 = vmax.f32 %v7826_v63, %v7896_v30  ;;  %v1536_v45 = vrot.slane %v7700_v20, 3  ;;  %v1631_v36 = vsel %vm432_vm0, %v1629_v35, %v1630_v52 }
 0x22e   : > { %5888 = vmatmul.mubr.msk.f32.gmra.mrb[6].mxu1 %vm3513_vm3, %v7965_v43  ;;  %v1446_v7 = vmax.f32 %v1301_v59, %v1342_v54  ;;  %v9756_v21 = vrot.slane %v7700_v20, 1  ;;  %v9757_v17 = vrot.slane %v7703_v11, 1  ;;  %v9758_v53 = vrot.slane %v7700_v20, 2 }
 0x22f   : > { %5858 = vmatmul.mubr.msk.f32.gmra.mrb[34].mxu0 %vm3513_vm3, %v7963_v19  ;;  %v7979_v37 = vmax.f32 %v9755_v18, %v7965_v43  ;;  %v9759_v44 = vrot.slane %v7703_v11, 2  ;;  %v9760_v49 = vrot.slane %v7703_v11, 3  ;;  %v1679_v16 = vrot.slane %v7703_v11, 4 }
 0x230   : > { %v1247_v38 = vsel %vm1184_vm4, %v9757_v17, %v9756_v21  ;;  %v1680_v35 = vrot.slane %v7700_v20, 4  ;;  %v1591_v59 = vmax.f32 %v1446_v7, %v1487_v13  ;;  %v1138_v54 = vsel %vm1023_vm2, %v9752_v40, -inf }
 0x231   : > { %v1392_v25 = vsel %vm1329_vm5, %v9759_v44, %v9758_v53  ;;  %v1321_v9 = vmax.f32 %v7703_v11, %v1247_v38  ;;  %v1537_v51 = vsel %vm1474_vm6, %v9760_v49, %v1536_v45  ;;  %v9761_v18 = vrot.slane %v7691_v26, 1 }
 0x232   : > { %v9762_v38 = vrot.slane %v7691_v26, 2  ;;  %v1681_v11 = vsel %vm432_vm0, %v1679_v16, %v1680_v35  ;;  %v1198_v15 = vrot.slane %v1138_v54, 1  ;;  %v1343_v13 = vrot.slane %v1138_v54, 2 }
 0x233   : > { %v1249_v17 = vsel %vm1184_vm4, %v9756_v21, %v9761_v18  ;;  %v1466_v49 = vmax.f32 %v1321_v9, %v1392_v25  ;;  %v8016_v7 = vmax.f32 %v1591_v59, %v1631_v36  ;;  %v1488_v40 = vrot.slane %v1138_v54, 3  ;;  %v9766_v59 = vld [vmem:[#allocation17_spill] sm:$0xff] }
 0x234   : > { %v1394_v44 = vsel %vm1329_vm5, %v9758_v53, %v9762_v38  ;;  %v1632_v46 = vrot.slane %v1138_v54, 4  ;;  %v1322_v10 = vmax.f32 %v7700_v20, %v1249_v17  ;;  %v1199_v18 = vsel %vm1184_vm4, %v1196_v31, %v1198_v15  ;;  %v9768_v17 = vld [vmem:[#allocation19_spill] sm:$0xff] }
 0x235   : > { %v1611_v27 = vmax.f32 %v1466_v49, %v1537_v51  ;;  %v1344_v21 = vsel %vm1329_vm5, %v1341_v55, %v1343_v13  ;;  %v1539_v38 = vsel %vm1474_vm6, %v1536_v45, %v9763_v42  ;;  %v1765_v25 = vmax.f32 %v7928_v34, %v8016_v7  ;;  %5860 = vmatprep.mubr.msk.f32.mxu0 %vm3513_vm3, %v8016_v7  ;;  %v9770_v49 = vld [vmem:[#allocation20_spill] sm:$0xff] }
 0x236   : > { %v9764_v36 = vmax.f32 %v7848_v58, %v7928_v34  ;;  %v1302_v20 = vmax.f32 %v7949_v6, %v1199_v18  ;;  %v1489_v31 = vsel %vm1474_vm6, %v1486_v24, %v1488_v40  ;;  %v1633_v42 = vsel %vm432_vm0, %v1630_v52, %v1632_v46 }
 0x237   : > { %v8036_v55 = vmax.f32 %v1611_v27, %v1681_v11  ;;  %v1467_v15 = vmax.f32 %v1322_v10, %v1394_v44  ;;  %v9765_v45 = vrot.slane %v7691_v26, 4  ;;  %v9767_v54 = vrot.slane %v9766_v59, 6 }
 0x238   : > { %v8030_v9 = vmax.f32 %v9764_v36, %v8016_v7  ;;  %v1447_v16 = vmax.f32 %v1302_v20, %v1344_v21  ;;  %v9769_v53 = vrot.slane %v9768_v17, 6  ;;  %v1200_v24 = vrot.slane %v9770_v49, 1 }
 0x239   : > { %v1683_v51 = vsel %vm432_vm0, %v1680_v35, %v9765_v45  ;;  %5890 = vmatprep.mubr.msk.f32.mxu1 %vm3513_vm3, %v8036_v55  ;;  %v1612_v27 = vmax.f32 %v1467_v15, %v1539_v38  ;;  %v1345_v26 = vrot.slane %v9770_v49, 2  ;;  %v1490_v35 = vrot.slane %v9770_v49, 3 }
 0x23a   : > { %v1035_v6 = vsel %vm1023_vm2, %v9769_v53, %v9767_v54  ;;  %v1592_v46 = vmax.f32 %v1447_v16, %v1489_v31  ;;  %v1634_v11 = vrot.slane %v9770_v49, 4  ;;  %v9771_v31 = vrot.slane %v7752_v4, 3 }
 0x23b   : > { %v1201_v10 = vrot.slane %v1035_v6, 1  ;;  %v1346_v52 = vrot.slane %v1035_v6, 2  ;;  %v1491_v44 = vrot.slane %v1035_v6, 3  ;;  %v8054_v13 = vmax.f32 %v1612_v27, %v1683_v51 }
 0x23c   : > { %v1635_v21 = vrot.slane %v1035_v6, 4  ;;  %v8058_v36 = vmax.f32 %v1592_v46, %v1633_v42  ;;  %v9772_v15 = vrot.slane %v7761_v39, 3  ;;  %v9773_v54 = vrot.slane %v7752_v4, 4 }
 0x23d   : > { %v1202_v40 = vsel %vm1184_vm4, %v1200_v24, %v1201_v10  ;;  %v1347_v18 = vsel %vm1329_vm5, %v1345_v26, %v1346_v52  ;;  %v1492_v20 = vsel %vm1474_vm6, %v1490_v35, %v1491_v44  ;;  %5891 = vmatmul.mubr.msk.f32.gmra.mrb[8].mxu1 %vm3513_vm3, %v8054_v13  ;;  %v9774_v17 = vrot.slane %v7761_v39, 4 }
 0x23e   : > { %v1303_v38 = vmax.f32 %v9770_v49, %v1202_v40  ;;  %v1542_v45 = vsel %vm1474_vm6, %v9772_v15, %v9771_v31  ;;  %v1636_v16 = vsel %vm432_vm0, %v1634_v11, %v1635_v21  ;;  %v1766_v49 = vmax.f32 %v7963_v19, %v8058_v36  ;;  %5861 = vmatmul.mubr.msk.f32.gmra.mrb[36].mxu0 %vm3513_vm3, %v8058_v36 }
 0x23f   : > { %v1613_v42 = vmax.f32 %v7791_v57, %v1542_v45  ;;  %v1686_v53 = vsel %vm432_vm0, %v9774_v17, %v9773_v54  ;;  %v9775_v24 = vmax.f32 %v7880_v0, %v7963_v19  ;;  %v9776_v57 = vrot.slane %v9766_v59, 6 }
 0x240   : > { %v1448_v26 = vmax.f32 %v1303_v38, %v1347_v18  ;;  %v9777_v0 = vrot.slane %v7713_v8, 2  ;;  %v9778_v19 = vrot.slane %v7752_v4, 2  ;;  %v1401_v34 = vrot.slane %v7755_v28, 2 }
 0x241   : > { %v8084_v27 = vmax.f32 %v9775_v24, %v8058_v36  ;;  %v1139_v46 = vsel %vm1023_vm2, %v9776_v57, -inf  ;;  %v8091_v39 = vmax.f32 %v1613_v42, %v1686_v53  ;;  %v9779_v42 = vmax.f32 %v7752_v4, %v7777_v5 }
 0x242   : > { %v1203_v35 = vrot.slane %v1139_v46, 1  ;;  %v1348_v11 = vrot.slane %v1139_v46, 2  ;;  %v1493_v40 = vrot.slane %v1139_v46, 3  ;;  %v1593_v15 = vmax.f32 %v1448_v26, %v1492_v20 }
 0x243   : > { %v9696_v31 = vrot.slane %v8084_v27, 6  ;;  %v1637_v45 = vrot.slane %v1139_v46, 4  ;;  %v1399_v54 = vsel %vm1329_vm5, %v9778_v19, %v9777_v0  ;;  %5893 = vmatprep.mubr.msk.f32.mxu1 %vm3513_vm3, %v8091_v39  ;;  %v9780_v57 = vrot.slane %v7713_v8, 3 }
 0x244   : > { %v1204_v59 = vsel %vm1184_vm4, %v1201_v10, %v1203_v35  ;;  %v1349_v18 = vsel %vm1329_vm5, %v1346_v52, %v1348_v11  ;;  %v1494_v38 = vsel %vm1474_vm6, %v1491_v44, %v1493_v40  ;;  %v1469_v20 = vmax.f32 %v9779_v42, %v1399_v54 }
 0x245   : > { %v8110_v17 = vsel %vm1023_vm2, %v9696_v31, -inf  ;;  %v8112_v53 = vmax.f32 %v1593_v15, %v1636_v16  ;;  %v1304_v24 = vmax.f32 %v1035_v6, %v1204_v59  ;;  %v1638_v26 = vsel %vm432_vm0, %v1635_v21, %v1637_v45 }
 0x246   : > { %v9781_v5 = vrot.slane %v7752_v4, 3  ;;  %v9782_v40 = vrot.slane %v7713_v8, 4  ;;  %v9783_v15 = vrot.slane %v7752_v4, 4  ;;  %v9784_v0 = vrot.slane %v7755_v28, 1 }
 0x247   : > { %v1767_v35 = vmax.f32 %v8016_v7, %v8112_v53  ;;  %v1769_v6 = vmax.f32 %v8112_v53, %v7360_v23  ;;  %v8131_v21 = vmax.f32 %v1765_v25, %v8112_v53  ;;  %5863 = vmatprep.mubr.msk.f32.mxu0 %vm3513_vm3, %v8112_v53  ;;  %v1449_v16 = vmax.f32 %v1304_v24, %v1349_v18 }
 0x248   : > { %v1544_v46 = vsel %vm1474_vm6, %v9781_v5, %v9780_v57  ;;  %v1688_v45 = vsel %vm432_vm0, %v9783_v15, %v9782_v40  ;;  %v9785_v19 = vrot.slane %v7764_v12, 1  ;;  %v9786_v42 = vrot.slane %v7764_v12, 2 }
 0x249   : > { %v1614_v11 = vmax.f32 %v1469_v20, %v1544_v46  ;;  %v1795_v7 = vmax.f32 %v1767_v35, %v7360_v23  ;;  %v8148_v25 = vmax.f32 %v1769_v6, %v7398_v41  ;;  %v1594_v59 = vmax.f32 %v1449_v16, %v1494_v38 }
 0x24a   : > { %v1257_v54 = vsel %vm1184_vm4, %v9785_v19, %v9784_v0  ;;  %v1402_v20 = vsel %vm1329_vm5, %v9786_v42, %v1401_v34  ;;  %v1546_v24 = vrot.slane %v7755_v28, 3  ;;  %v1689_v35 = vrot.slane %v7764_v12, 4 }
 0x24b   : > { %v8152_v4 = vmax.f32 %v1614_v11, %v1688_v45  ;;  %v1325_v18 = vmax.f32 %v7764_v12, %v1257_v54  ;;  %v1823_v57 = vmax.f32 %v1795_v7, %v7398_v41  ;;  %v1738_v46 = vmax.f32 %v1594_v59, %v1638_v26 }
 0x24c   : > { %v9787_v6 = vrot.slane %v7764_v12, 3  ;;  %v1690_v11 = vrot.slane %v7755_v28, 4  ;;  %v1783_v40 = vmax.f32 %v7878_v14, %v7940_v50  ;;  %v1697_v58 = vrot.slane %v7723_v62, 4 }
 0x24d   : > { %5894 = vmatmul.mubr.msk.f32.gmra.mrb[10].mxu1 %vm3513_vm3, %v8152_v4  ;;  %v1470_v38 = vmax.f32 %v1325_v18, %v1402_v20  ;;  %v8172_v15 = vmax.f32 %v1823_v57, %v7465_v60  ;;  %v1768_v26 = vmax.f32 %v8058_v36, %v1738_v46  ;;  %v1770_v45 = vmax.f32 %v1738_v46, %v7362_v61 }
 0x24e   : > { %v1547_v16 = vsel %vm1474_vm6, %v9787_v6, %v1546_v24  ;;  %v1794_v0 = vmax.f32 %v1766_v49, %v1738_v46  ;;  %5864 = vmatmul.mubr.msk.f32.gmra.mrb[38].mxu0 %vm3513_vm3, %v1738_v46  ;;  %v8178_v19 = vmax.f32 %v8084_v27, %v1738_v46  ;;  %v1691_v54 = vsel %vm432_vm0, %v1689_v35, %v1690_v11 }
 0x24f   : > { %5866 = vmatprep.mubr.msk.f32.mxu0 %vm3513_vm3, %v7360_v23  ;;  %v1615_v12 = vmax.f32 %v1470_v38, %v1547_v16  ;;  %v1811_v7 = vmax.f32 %v1783_v40, %v8036_v55  ;;  %v9691_v59 = vrot.slane %v8172_v15, 6  ;;  %v1796_v36 = vmax.f32 %v1768_v26, %v7362_v61 }
 0x250   : > { %v8187_v18 = vmax.f32 %v1770_v45, %v7400_v29  ;;  %v1822_v49 = vmax.f32 %v1794_v0, %v7362_v61  ;;  %v9788_v57 = vrot.slane %v7716_v1, 1  ;;  %v9789_v46 = vrot.slane %v7755_v28, 1 }
 0x251   : > { %v8190_v42 = vmax.f32 %v1615_v12, %v1691_v54  ;;  %v1839_v20 = vmax.f32 %v1811_v7, %v8091_v39  ;;  %v9790_v38 = vrot.slane %v7716_v1, 2  ;;  %v1824_v16 = vmax.f32 %v1796_v36, %v7400_v29 }
 0x252   : > { %v1259_v35 = vsel %vm1184_vm4, %v9789_v46, %v9788_v57  ;;  %v8205_v26 = vmax.f32 %v1822_v49, %v7400_v29  ;;  %5867 = vmatmul.mubr.msk.f32.gmra.mrb[40].mxu0 %vm3513_vm3, %v7362_v61  ;;  %v9792_v54 = vrot.slane %v7716_v1, 4  ;;  %v1784_v36 = vmax.f32 %v7896_v30, %v7965_v43 }
 0x253   : > { %v1404_v6 = vsel %vm1329_vm5, %v1401_v34, %v9790_v38  ;;  %v1326_v45 = vmax.f32 %v7755_v28, %v1259_v35  ;;  %v8211_v0 = vmax.f32 %v1839_v20, %v8190_v42  ;;  %5896 = vmatprep.mubr.msk.f32.mxu1 %vm3513_vm3, %v8190_v42  ;;  %v9791_v34 = vrot.slane %v7716_v1, 3  ;;  %5869 = vmatprep.mubr.msk.f32.mxu0 %vm3513_vm3, %v7398_v41 }
 0x254   : > { %v1693_v7 = vsel %vm432_vm0, %v1690_v11, %v9792_v54  ;;  %v1850_v49 = vmax.f32 %v1824_v16, %v7467_v32  ;;  %v1260_v20 = vrot.slane %v7767_v22, 1  ;;  %v1261_v57 = vrot.slane %v7758_v47, 1 }
 0x255   : > { %v1549_v12 = vsel %vm1474_vm6, %v1546_v24, %v9791_v34  ;;  %v1471_v28 = vmax.f32 %v1326_v45, %v1404_v6  ;;  %v9690_v46 = vrot.slane %v8211_v0, 6  ;;  %v1812_v24 = vmax.f32 %v1784_v36, %v8054_v13 }
 0x256   : > { %v1405_v1 = vrot.slane %v7767_v22, 2  ;;  %v1406_v11 = vrot.slane %v7758_v47, 2  ;;  %v1914_v35 = vrot.slane %v1850_v49, 6  ;;  %v1262_v16 = vsel %vm1184_vm4, %v1260_v20, %v1261_v57  ;;  %5870 = vmatmul.mubr.msk.f32.gmra.mrb[42].mxu0 %vm3513_vm3, %v7400_v29 }
 0x257   : > { %v1616_v38 = vmax.f32 %v1471_v28, %v1549_v12  ;;  %v1550_v6 = vrot.slane %v7767_v22, 3  ;;  %v8239_v45 = vsel %vm1023_vm2, -inf, %v9690_v46  ;;  %v1840_v34 = vmax.f32 %v1812_v24, %v8152_v4  ;;  %5872 = vmatprep.mubr.msk.f32.mxu0 %vm3513_vm3, %v7465_v60 }
 0x258   : > { %v1327_v54 = vmax.f32 %v7767_v22, %v1262_v16  ;;  %v1407_v36 = vsel %vm1329_vm5, %v1405_v1, %v1406_v11  ;;  %v8249_v12 = vsel %vm1023_vm2, %v9691_v59, %v1914_v35  ;;  %v2017_v49 = vsel %vm1023_vm2, %v1914_v35, -inf }
 0x259   : > { %v8252_v28 = vmax.f32 %v1616_v38, %v1693_v7  ;;  %v1551_v20 = vrot.slane %v7758_v47, 3  ;;  %v9692_v24 = vrot.slane %v8249_v12, 1  ;;  %v2084_v46 = vrot.slane %v2017_v49, 1 }
 0x25a   : > { %v9695_v16 = vrot.slane %v8249_v12, 2  ;;  %v2228_v1 = vrot.slane %v2017_v49, 2  ;;  %v9694_v51 = vrot.slane %v8249_v12, 3  ;;  %v2372_v40 = vrot.slane %v2017_v49, 3  ;;  %5873 = vmatmul.mubr.msk.f32.gmra.mrb[44].mxu0 %vm3513_vm3, %v7467_v32 }
 0x25b   : > { %v9693_v5 = vrot.slane %v8249_v12, 4  ;;  %v2516_v8 = vrot.slane %v2017_v49, 4  ;;  %5897 = vmatmul.mubr.msk.f32.gmra.mrb[12].mxu1 %vm3513_vm3, %v8252_v28  ;;  %v2085_v7 = vsel %vm1184_vm4, %v9692_v24, %v2084_v46  ;;  %v8270_v38 = vmax.f32 %v1840_v34, %v8252_v28 }
 0x25c   : > { %v2229_v35 = vsel %vm1329_vm5, %v9695_v16, %v2228_v1  ;;  %v1472_v59 = vmax.f32 %v1327_v54, %v1407_v36  ;;  %v2182_v49 = vmax.f32 %v8249_v12, %v2085_v7  ;;  %v2373_v44 = vsel %vm1474_vm6, %v9694_v51, %v2372_v40 }
 0x25d   : > { %v2517_v52 = vsel %vm432_vm0, %v9693_v5, %v2516_v8  ;;  %v1552_v46 = vsel %vm1474_vm6, %v1550_v6, %v1551_v20  ;;  %v1694_v1 = vrot.slane %v7767_v22, 4  ;;  %v1695_v34 = vrot.slane %v7758_v47, 4 }
 0x25e   : > { %v1617_v10 = vmax.f32 %v1472_v59, %v1552_v46  ;;  %v2326_v54 = vmax.f32 %v2182_v49, %v2229_v35  ;;  %v1785_v36 = vmax.f32 %v7940_v50, %v8036_v55  ;;  %v1787_v40 = vmax.f32 %v8036_v55, %v8091_v39 }
 0x25f   : > { %v1789_v7 = vmax.f32 %v8091_v39, %v8190_v42  ;;  %v1696_v8 = vsel %vm432_vm0, %v1694_v1, %v1695_v34  ;;  %v9793_v6 = vrot.slane %v7723_v62, 1  ;;  %v1408_v22 = vrot.slane %v7723_v62, 2 }
 0x260   : > { %v1553_v46 = vrot.slane %v7723_v62, 3  ;;  %v2470_v35 = vmax.f32 %v2326_v54, %v2373_v44  ;;  %v1761_v49 = vmax.f32 %v1617_v10, %v1696_v8  ;;  %v1813_v24 = vmax.f32 %v1785_v36, %v8091_v39 }
 0x261   : > { %v1264_v59 = vsel %vm1184_vm4, %v1261_v57, %v9793_v6  ;;  %v1815_v5 = vmax.f32 %v1787_v40, %v8190_v42  ;;  %v1409_v16 = vsel %vm1329_vm5, %v1406_v11, %v1408_v22  ;;  %v1698_v54 = vsel %vm432_vm0, %v1695_v34, %v1697_v58 }
 0x262   : > { %v1328_v51 = vmax.f32 %v7758_v47, %v1264_v59  ;;  %v1554_v1 = vsel %vm1474_vm6, %v1551_v20, %v1553_v46  ;;  %v8301_v31 = vmax.f32 %v2470_v35, %v2517_v52  ;;  %v8303_v57 = vmax.f32 %v1789_v7, %v1761_v49  ;;  %5899 = vmatprep.mubr.msk.f32.mxu1 %vm3513_vm3, %v1761_v49 }
 0x263   : > { %v1841_v6 = vmax.f32 %v1813_v24, %v8190_v42  ;;  %v1843_v44 = vmax.f32 %v1815_v5, %v1761_v49  ;;  %v1786_v47 = vmax.f32 %v7965_v43, %v8054_v13  ;;  %v1788_v11 = vmax.f32 %v8054_v13, %v8152_v4 }
 0x264   : > { %9794 = vst [vmem:[#allocation18_spill] sm:$0xff] %v8303_v57  ;;  %v1473_v10 = vmax.f32 %v1328_v51, %v1409_v16  ;;  %v9697_v52 = vrot.slane %v8303_v57, 6  ;;  %v1790_v36 = vmax.f32 %v8152_v4, %v8252_v28  ;;  %v9795_v58 = vrot.slane %v8084_v27, 6 }
 0x265   : > { %v1867_v20 = vmax.f32 %v1841_v6, %v1761_v49  ;;  %v1943_v62 = vrot.slane %v1843_v44, 6  ;;  %v1814_v5 = vmax.f32 %v1786_v47, %v8152_v4  ;;  %v1816_v51 = vmax.f32 %v1788_v11, %v8252_v28 }
 0x266   : > { %v1618_v42 = vmax.f32 %v1473_v10, %v1554_v1  ;;  %v9796_v24 = vrot.slane %v8030_v9, 6  ;;  %v8328_v7 = vsel %vm1023_vm2, -inf, %v9697_v52  ;;  %v9803_v47 = vrot.slane %v8110_v17, 2 }
 0x267   : > { %v1940_v34 = vrot.slane %v1867_v20, 6  ;;  %v8323_v40 = vsel %vm1023_vm2, -inf, %v1943_v62  ;;  %9798 = vst [vmem:[#allocation19_spill] sm:$0xff] %v8328_v7  ;;  %v1842_v27 = vmax.f32 %v1814_v5, %v8252_v28  ;;  %v9802_v5 = vrot.slane %v8110_v17, 1 }
 0x268   : > { %v1903_v16 = vsel %vm1023_vm2, %v9796_v24, %v9795_v58  ;;  %9797 = vst [vmem:[#allocation17_spill] sm:$0xff] %v8323_v40  ;;  %v9799_v8 = vmov %v9796_v24  ;;  %v1762_v22 = vmax.f32 %v1618_v42, %v1698_v54 }
 0x269   : > { %v1997_v59 = vsel %vm1023_vm2, -inf, %v9799_v8  ;;  %v2062_v35 = vrot.slane %v1903_v16, 1  ;;  %v8335_v49 = vsel %vm1023_vm2, -inf, %v1940_v34  ;;  %v2206_v6 = vrot.slane %v1903_v16, 2 }
 0x26a   : > { %v2061_v46 = vrot.slane %v1997_v59, 1  ;;  %9800 = vst [vmem:[#allocation20_spill] sm:$0xff] %v8335_v49  ;;  %v2205_v1 = vrot.slane %v1997_v59, 2  ;;  %v2349_v44 = vrot.slane %v1997_v59, 3  ;;  %v8340_v20 = vmax.f32 %v1790_v36, %v1762_v22  ;;  %5900 = vmatmul.mubr.msk.f32.gmra.mrb[14].mxu1 %vm3513_vm3, %v1762_v22 }
 0x26b   : > { %v1844_v54 = vmax.f32 %v1816_v51, %v1762_v22  ;;  %v1868_v28 = vmax.f32 %v1842_v27, %v1762_v22  ;;  %v2065_v58 = vsel %vm1184_vm4, %v2062_v35, %v9802_v5  ;;  %v2209_v36 = vsel %vm1329_vm5, %v2206_v6, %v9803_v47 }
 0x26c   : > { %9801 = vst [vmem:[#allocation24_spill] sm:$0xff] %v8340_v20  ;;  %v2063_v42 = vsel %vm1184_vm4, %v2061_v46, %v2062_v35  ;;  %v2207_v52 = vsel %vm1329_vm5, %v2205_v1, %v2206_v6  ;;  %v2350_v7 = vrot.slane %v1903_v16, 3  ;;  %v2493_v51 = vrot.slane %v1997_v59, 4 }
 0x26d   : > { %v2173_v8 = vmax.f32 %v1997_v59, %v2063_v42  ;;  %v1941_v11 = vrot.slane %v1868_v28, 6  ;;  %v1944_v10 = vrot.slane %v1844_v54, 6  ;;  %v2494_v27 = vrot.slane %v1903_v16, 4 }
 0x26e   : > { %v2496_v46 = vrot.slane %v8110_v17, 4  ;;  %v2174_v57 = vmax.f32 %v1903_v16, %v2065_v58  ;;  %v9808_v28 = vrot.slane %v8110_v17, 3  ;;  %v1220_v59 = vrot.slane %v7500_v56, 1 }
 0x26f   : > { %v2317_v22 = vmax.f32 %v2173_v8, %v2207_v52  ;;  %v8354_v35 = vsel %vm1023_vm2, %v1940_v34, %v1941_v11  ;;  %v8357_v42 = vsel %vm1023_vm2, %v1943_v62, %v1944_v10  ;;  %v8360_v1 = vsel %vm1023_vm2, %v1941_v11, -inf }
 0x270   : > { %9804 = vst [vmem:[#allocation25_spill] sm:$0xff] %v8354_v35  ;;  %9805 = vst [vmem:[#allocation26_spill] sm:$0xff] %v8357_v42  ;;  %v8363_v6 = vsel %vm1023_vm2, %v1944_v10, -inf  ;;  %v2351_v11 = vsel %vm1474_vm6, %v2349_v44, %v2350_v7  ;;  %v2353_v10 = vsel %vm1474_vm6, %v2350_v7, %v9808_v28  ;;  %v2495_v58 = vsel %vm432_vm0, %v2493_v51, %v2494_v27 }
 0x271   : > { %9806 = vst [vmem:[#allocation27_spill] sm:$0xff] %v8360_v1  ;;  %9807 = vst [vmem:[#allocation28_spill] sm:$0xff] %v8363_v6  ;;  %v2461_v5 = vmax.f32 %v2317_v22, %v2351_v11  ;;  %v2497_v8 = vsel %vm432_vm0, %v2494_v27, %v2496_v46  ;;  %v2318_v24 = vmax.f32 %v2174_v57, %v2209_v36  ;;  %v1221_v34 = vrot.slane %v7497_v33, 1 }
 0x272   : > { %v1365_v54 = vrot.slane %v7500_v56, 2  ;;  %v1366_v44 = vrot.slane %v7497_v33, 2  ;;  %v1510_v17 = vrot.slane %v7500_v56, 3  ;;  %v1511_v7 = vrot.slane %v7497_v33, 3 }
 0x273   : > { %v8381_v52 = vmax.f32 %v2461_v5, %v2495_v58  ;;  %v2462_v22 = vmax.f32 %v2318_v24, %v2353_v10  ;;  %v1222_v51 = vsel %vm1184_vm4, %v1220_v59, %v1221_v34  ;;  %v1654_v27 = vrot.slane %v7500_v56, 4 }
 0x274   : > { %v1655_v57 = vrot.slane %v7497_v33, 4  ;;  %v1311_v36 = vmax.f32 %v7500_v56, %v1222_v51  ;;  %v1367_v46 = vsel %vm1329_vm5, %v1365_v54, %v1366_v44  ;;  %v1512_v11 = vsel %vm1474_vm6, %v1510_v17, %v1511_v7 }
 0x275   : > { %5904 = vmatprep.mubr.msk.f32.mxu1 %vm3513_vm3, %v8381_v52  ;;  %v1773_v28 = vmax.f32 %v7398_v41, %v7465_v60  ;;  %v8396_v5 = vmax.f32 %v2462_v22, %v2497_v8  ;;  %v1819_v59 = vmax.f32 %v8030_v9, %v8112_v53  ;;  %v1905_v10 = vrot.slane %v8178_v19, 6  ;;  %v6482_v53 = vld [vmem:[#allocation8 + $0x6] sm:$0x3] }
 0x276   : > { %v1656_v24 = vsel %vm432_vm0, %v1654_v27, %v1655_v57  ;;  %v1456_v58 = vmax.f32 %v1311_v36, %v1367_v46  ;;  %v9809_v62 = vrot.slane %v7486_v48, 1  ;;  %v1368_v54 = vrot.slane %v7486_v48, 2 }
 0x277   : > { %v1513_v17 = vrot.slane %v7486_v48, 3  ;;  %5905 = vmatmul.mubr.msk.f32.vlgmr.msra.gmra.mrb[16].mxu1 %vm3513_vm3, %v8396_v5  ;;  %v1904_v8 = vrot.slane %v1819_v59, 6  ;;  %v1657_v51 = vrot.slane %v7486_v48, 4  ;;  %v1772_v9 = vmax.f32 %v7362_v61, %v7400_v29 }
 0x278   : > { %v1224_v56 = vsel %vm1184_vm4, %v1221_v34, %v9809_v62  ;;  %5953 = vmatpush3.msk.msra.mxu1 %vm1023_vm2, %v6482_v53  ;;  %v1601_v27 = vmax.f32 %v1456_v58, %v1512_v11  ;;  %v1369_v34 = vsel %vm1329_vm5, %v1366_v44, %v1368_v54  ;;  %v1774_v36 = vmax.f32 %v7400_v29, %v7467_v32 }
 0x279   : > { %v1312_v22 = vmax.f32 %v7497_v33, %v1224_v56  ;;  %v1514_v62 = vsel %vm1474_vm6, %v1511_v7, %v1513_v17  ;;  %v1906_v46 = vsel %vm1023_vm2, %v1904_v8, %v1905_v10  ;;  %v1998_v33 = vsel %vm1023_vm2, -inf, %v1904_v8 }
 0x27a   : > { %v1658_v48 = vsel %vm432_vm0, %v1655_v57, %v1657_v51  ;;  %v8421_v16 = vmax.f32 %v1601_v27, %v1656_v24  ;;  %v2066_v47 = vrot.slane %v1998_v33, 1  ;;  %v2067_v20 = vrot.slane %v1906_v46, 1 }
 0x27b   : > { %v1457_v56 = vmax.f32 %v1312_v22, %v1369_v34  ;;  %v2210_v53 = vrot.slane %v1998_v33, 2  ;;  %v2211_v11 = vrot.slane %v1906_v46, 2  ;;  %v2354_v58 = vrot.slane %v1998_v33, 3 }
 0x27c   : > { %v2355_v44 = vrot.slane %v1906_v46, 3  ;;  %v2498_v54 = vrot.slane %v1998_v33, 4  ;;  %v8428_v17 = vmax.f32 %v1773_v28, %v8421_v16  ;;  %5875 = vmatprep.mubr.msk.f32.mxu0 %vm3513_vm3, %v8421_v16  ;;  %v2068_v57 = vsel %vm1184_vm4, %v2066_v47, %v2067_v20 }
 0x27d   : > { %v2175_v24 = vmax.f32 %v1998_v33, %v2068_v57  ;;  %v2212_v8 = vsel %vm1329_vm5, %v2210_v53, %v2211_v11  ;;  %v2499_v51 = vrot.slane %v1906_v46, 4  ;;  %v1602_v27 = vmax.f32 %v1457_v56, %v1514_v62 }
 0x27e   : > { %v2356_v22 = vsel %vm1474_vm6, %v2354_v58, %v2355_v44  ;;  %v8436_v34 = vmax.f32 %v1772_v9, %v7467_v32  ;;  %v2014_v29 = vsel %vm1023_vm2, %v1905_v10, -inf  ;;  %v1845_v28 = vmax.f32 %v1819_v59, %v7360_v23 }
 0x27f   : > { %v2319_v7 = vmax.f32 %v2175_v24, %v2212_v8  ;;  %v2500_v6 = vsel %vm432_vm0, %v2498_v54, %v2499_v51  ;;  %v2069_v42 = vrot.slane %v2014_v29, 1  ;;  %v2213_v40 = vrot.slane %v2014_v29, 2 }
 0x280   : > { %v8441_v47 = vmax.f32 %v1602_v27, %v1658_v48  ;;  %v2357_v33 = vrot.slane %v2014_v29, 3  ;;  %v2501_v53 = vrot.slane %v2014_v29, 4  ;;  %v1846_v58 = vmax.f32 %v8178_v19, %v7362_v61 }
 0x281   : > { %v2463_v62 = vmax.f32 %v2319_v7, %v2356_v22  ;;  %v2070_v9 = vsel %vm1184_vm4, %v2067_v20, %v2069_v42  ;;  %v2214_v56 = vsel %vm1329_vm5, %v2211_v11, %v2213_v40  ;;  %v1907_v10 = vrot.slane %v1845_v28, 6 }
 0x282   : > { %v1776_v59 = vmax.f32 %v7467_v32, %v8441_v47  ;;  %v1778_v54 = vmax.f32 %v8441_v47, %v7686_v3  ;;  %v8452_v48 = vmax.f32 %v1774_v36, %v8441_v47  ;;  %5876 = vmatmul.mubr.msk.f32.gmra.mrb[46].mxu0 %vm3513_vm3, %v8441_v47  ;;  %v2176_v19 = vmax.f32 %v1906_v46, %v2070_v9 }
 0x283   : > { %v8458_v61 = vmax.f32 %v2463_v62, %v2500_v6  ;;  %v2358_v40 = vsel %vm1474_vm6, %v2355_v44, %v2357_v33  ;;  %v2502_v20 = vsel %vm432_vm0, %v2499_v51, %v2501_v53  ;;  %v1908_v36 = vrot.slane %v1846_v58, 6 }
 0x284   : > { %v8463_v42 = vmax.f32 %v1776_v59, %v7686_v3  ;;  %v8466_v11 = vmax.f32 %v1778_v54, %v7826_v63  ;;  %v1999_v7 = vsel %vm1023_vm2, -inf, %v1907_v10  ;;  %v2320_v6 = vmax.f32 %v2176_v19, %v2214_v56 }
 0x285   : > { %v2637_v57 = vmax.f32 %v8381_v52, %v8458_v61  ;;  %5907 = vmatprep.mubr.msk.f32.mxu1 %vm3513_vm3, %v8458_v61  ;;  %v2071_v46 = vrot.slane %v1999_v7, 1  ;;  %v2215_v44 = vrot.slane %v1999_v7, 2  ;;  %v1909_v24 = vsel %vm1023_vm2, %v1907_v10, %v1908_v36 }
 0x286   : > { %v2359_v8 = vrot.slane %v1999_v7, 3  ;;  %v2503_v22 = vrot.slane %v1999_v7, 4  ;;  %v2015_v51 = vsel %vm1023_vm2, %v1908_v36, -inf  ;;  %v2464_v27 = vmax.f32 %v2320_v6, %v2358_v40 }
 0x287   : > { %v2072_v28 = vrot.slane %v1909_v24, 1  ;;  %v2216_v33 = vrot.slane %v1909_v24, 2  ;;  %v2360_v53 = vrot.slane %v1909_v24, 3  ;;  %v2504_v58 = vrot.slane %v1909_v24, 4 }
 0x288   : > { %v2074_v62 = vrot.slane %v2015_v51, 1  ;;  %v2218_v9 = vrot.slane %v2015_v51, 2  ;;  %v2362_v52 = vrot.slane %v2015_v51, 3  ;;  %v8475_v59 = vmax.f32 %v2464_v27, %v2502_v20 }
 0x289   : > { %v2073_v56 = vsel %vm1184_vm4, %v2071_v46, %v2072_v28  ;;  %v2217_v54 = vsel %vm1329_vm5, %v2215_v44, %v2216_v33  ;;  %v2361_v10 = vsel %vm1474_vm6, %v2359_v8, %v2360_v53  ;;  %v2505_v29 = vsel %vm432_vm0, %v2503_v22, %v2504_v58 }
 0x28a   : > { %v2177_v19 = vmax.f32 %v1999_v7, %v2073_v56  ;;  %v2075_v40 = vsel %vm1184_vm4, %v2072_v28, %v2074_v62  ;;  %v2219_v36 = vsel %vm1329_vm5, %v2216_v33, %v2218_v9  ;;  %v2638_v6 = vmax.f32 %v8396_v5, %v8475_v59  ;;  %5908 = vmatmul.mubr.msk.f32.gmra.mrb[18].mxu1 %vm3513_vm3, %v8475_v59 }
 0x28b   : > { %v2178_v20 = vmax.f32 %v1909_v24, %v2075_v40  ;;  %v2363_v46 = vsel %vm1474_vm6, %v2360_v53, %v2362_v52  ;;  %v2506_v27 = vrot.slane %v2015_v51, 4  ;;  %v9810_v7 = vmax.f32 %v8131_v21, %v7360_v23 }
 0x28c   : > { %v2321_v44 = vmax.f32 %v2177_v19, %v2217_v54  ;;  %v1911_v22 = vrot.slane %v8205_v26, 6  ;;  %v9811_v28 = vrot.slane %v8172_v15, 6 }
 0x28d   : > { %v1847_v8 = vmax.f32 %v9810_v7, %v7398_v41  ;;  %v2322_v5 = vmax.f32 %v2178_v20, %v2219_v36  ;;  %v2507_v62 = vsel %vm432_vm0, %v2504_v58, %v2506_v27 }
 0x28e   : > { %v8496_v33 = vsel %vm1023_vm2, -inf, %v9811_v28  ;;  %v2465_v53 = vmax.f32 %v2321_v44, %v2361_v10  ;;  %v2016_v52 = vsel %vm1023_vm2, %v1911_v22, -inf }
 0x28f   : > { %v2081_v24 = vrot.slane %v8496_v33, 1  ;;  %v2225_v51 = vrot.slane %v8496_v33, 2  ;;  %v1910_v9 = vrot.slane %v1847_v8, 6  ;;  %v2369_v21 = vrot.slane %v8496_v33, 3 }
 0x290   : > { %v2466_v56 = vmax.f32 %v2322_v5, %v2363_v46  ;;  %v2079_v26 = vrot.slane %v2016_v52, 1  ;;  %v2223_v54 = vrot.slane %v2016_v52, 2  ;;  %v2367_v15 = vrot.slane %v2016_v52, 3 }
 0x291   : > { %v8503_v19 = vmax.f32 %v2465_v53, %v2505_v29  ;;  %v1912_v40 = vsel %vm1023_vm2, %v1910_v9, %v1911_v22  ;;  %v2000_v58 = vsel %vm1023_vm2, -inf, %v1910_v9  ;;  %v2511_v36 = vrot.slane %v2016_v52, 4 }
 0x292   : > { %v8507_v20 = vmax.f32 %v2466_v56, %v2507_v62  ;;  %v2076_v27 = vrot.slane %v2000_v58, 1  ;;  %v2077_v10 = vrot.slane %v1912_v40, 1  ;;  %v2220_v44 = vrot.slane %v2000_v58, 2 }
 0x293   : > { %v2639_v7 = vmax.f32 %v8458_v61, %v8503_v19  ;;  %v8512_v46 = vmax.f32 %v2637_v57, %v8503_v19  ;;  %5910 = vmatprep.mubr.msk.f32.mxu1 %vm3513_vm3, %v8503_v19  ;;  %v2221_v29 = vrot.slane %v1912_v40, 2  ;;  %v2364_v8 = vrot.slane %v2000_v58, 3 }
 0x294   : > { %v2640_v22 = vmax.f32 %v8475_v59, %v8507_v20  ;;  %v8519_v28 = vmax.f32 %v2638_v6, %v8507_v20  ;;  %5911 = vmatmul.mubr.msk.f32.gmra.mrb[20].mxu1 %vm3513_vm3, %v8507_v20  ;;  %v2078_v5 = vsel %vm1184_vm4, %v2076_v27, %v2077_v10  ;;  %v2365_v61 = vrot.slane %v1912_v40, 3 }
 0x295   : > { %v2179_v62 = vmax.f32 %v2000_v58, %v2078_v5  ;;  %v2222_v53 = vsel %vm1329_vm5, %v2220_v44, %v2221_v29  ;;  %v2508_v9 = vrot.slane %v2000_v58, 4  ;;  %v2509_v59 = vrot.slane %v1912_v40, 4 }
 0x296   : > { %v2776_v52 = vrot.slane %v8519_v28, 6  ;;  %v2366_v56 = vsel %vm1474_vm6, %v2364_v8, %v2365_v61  ;;  %v2080_v6 = vsel %vm1184_vm4, %v2077_v10, %v2079_v26  ;;  %v2224_v35 = vsel %vm1329_vm5, %v2221_v29, %v2223_v54 }
 0x297   : > { %v2323_v1 = vmax.f32 %v2179_v62, %v2222_v53  ;;  %v2180_v49 = vmax.f32 %v1912_v40, %v2080_v6  ;;  %v2368_v27 = vsel %vm1474_vm6, %v2365_v61, %v2367_v15  ;;  %v2510_v58 = vsel %vm432_vm0, %v2508_v9, %v2509_v59 }
 0x298   : > { %v8534_v5 = vsel %vm1023_vm2, %v2776_v52, -inf  ;;  %v2512_v44 = vsel %vm432_vm0, %v2509_v59, %v2511_v36  ;;  %v9812_v8 = vrot.slane %v8249_v12, 1  ;;  %v9813_v61 = vrot.slane %v8249_v12, 2 }
 0x299   : > { %v2938_v26 = vrot.slane %v8534_v5, 1  ;;  %v3082_v40 = vrot.slane %v8534_v5, 2  ;;  %v2467_v15 = vmax.f32 %v2323_v1, %v2366_v56  ;;  %v2324_v10 = vmax.f32 %v2180_v49, %v2224_v35 }
 0x29a   : > { %v2083_v57 = vsel %vm1184_vm4, %v2081_v24, %v9812_v8  ;;  %v2227_v62 = vsel %vm1329_vm5, %v2225_v51, %v9813_v61  ;;  %v9814_v36 = vrot.slane %v8249_v12, 3  ;;  %v2513_v24 = vrot.slane %v8496_v33, 4 }
 0x29b   : > { %v2181_v29 = vmax.f32 %v8496_v33, %v2083_v57  ;;  %v8551_v9 = vmax.f32 %v2467_v15, %v2510_v58  ;;  %v9815_v59 = vmax.f32 %v8148_v25, %v7465_v60  ;;  %v9816_v49 = vmax.f32 %v8187_v18, %v7467_v32 }
 0x29c   : > { %v2371_v53 = vsel %vm1474_vm6, %v2369_v21, %v9814_v36  ;;  %v2468_v57 = vmax.f32 %v2324_v10, %v2368_v27  ;;  %v1771_v56 = vmax.f32 %v7360_v23, %v7398_v41  ;;  %v9817_v21 = vmax.f32 %v8436_v34, %v8441_v47 }
 0x29d   : > { %v1851_v1 = vmax.f32 %v9815_v59, %v8421_v16  ;;  %v1852_v35 = vmax.f32 %v9816_v49, %v8441_v47  ;;  %v2325_v51 = vmax.f32 %v2181_v29, %v2227_v62  ;;  %v8573_v6 = vmax.f32 %v2639_v7, %v8551_v9  ;;  %5913 = vmatprep.mubr.msk.f32.mxu1 %vm3513_vm3, %v8551_v9 }
 0x29e   : > { %v8568_v33 = vmax.f32 %v9817_v21, %v7686_v3  ;;  %v9818_v32 = vrot.slane %v8249_v12, 4  ;;  %v8580_v41 = vmax.f32 %v2468_v57, %v2512_v44  ;;  %v1799_v47 = vmax.f32 %v1771_v56, %v7465_v60 }
 0x29f   : > { %v1916_v23 = vrot.slane %v1851_v1, 6  ;;  %v2469_v27 = vmax.f32 %v2325_v51, %v2371_v53  ;;  %v1917_v34 = vrot.slane %v1852_v35, 6  ;;  %v1829_v7 = vmax.f32 %v8428_v17, %v7602_v2 }
 0x2a0   : > { %v2515_v18 = vsel %vm432_vm0, %v2513_v24, %v9818_v32  ;;  %v1920_v8 = vrot.slane %v8568_v33, 6  ;;  %v1830_v15 = vmax.f32 %v8452_v48, %v7686_v3  ;;  %v2642_v12 = vmax.f32 %v8507_v20, %v8580_v41  ;;  %5914 = vmatmul.mubr.msk.f32.gmra.mrb[22].mxu1 %vm3513_vm3, %v8580_v41 }
 0x2a1   : > { %v2002_v58 = vsel %vm1023_vm2, -inf, %v1916_v23  ;;  %v8594_v10 = vmax.f32 %v2640_v22, %v8580_v41  ;;  %v8598_v29 = vmax.f32 %v8519_v28, %v8580_v41  ;;  %v8602_v17 = vmax.f32 %v2469_v27, %v2515_v18 }
 0x2a2   : > { %v1918_v3 = vsel %vm1023_vm2, %v1916_v23, %v1917_v34  ;;  %v2086_v48 = vrot.slane %v2002_v58, 1  ;;  %v2230_v61 = vrot.slane %v2002_v58, 2  ;;  %v8606_v20 = vmax.f32 %v2642_v12, %v8301_v31 }
 0x2a3   : > { %v2087_v62 = vrot.slane %v1918_v3, 1  ;;  %v2231_v36 = vrot.slane %v1918_v3, 2  ;;  %v2374_v22 = vrot.slane %v2002_v58, 3  ;;  %5916 = vmatprep.mubr.msk.f32.mxu1 %vm3513_vm3, %v8602_v17  ;;  %v2375_v53 = vrot.slane %v1918_v3, 3 }
 0x2a4   : > { %v2518_v24 = vrot.slane %v2002_v58, 4  ;;  %v2519_v59 = vrot.slane %v1918_v3, 4  ;;  %v2018_v1 = vsel %vm1023_vm2, %v1917_v34, -inf  ;;  %5917 = vmatmul.mubr.msk.f32.gmra.mrb[24].mxu1 %vm3513_vm3, %v8301_v31  ;;  %v1827_v34 = vmax.f32 %v1799_v47, %v8421_v16 }
 0x2a5   : > { %v2088_v49 = vsel %vm1184_vm4, %v2086_v48, %v2087_v62  ;;  %v2232_v35 = vsel %vm1329_vm5, %v2230_v61, %v2231_v36  ;;  %v2089_v57 = vrot.slane %v2018_v1, 1  ;;  %v2233_v51 = vrot.slane %v2018_v1, 2 }
 0x2a6   : > { %v2183_v56 = vmax.f32 %v2002_v58, %v2088_v49  ;;  %v2376_v21 = vsel %vm1474_vm6, %v2374_v22, %v2375_v53  ;;  %v2520_v33 = vsel %vm432_vm0, %v2518_v24, %v2519_v59  ;;  %v2377_v32 = vrot.slane %v2018_v1, 3 }
 0x2a7   : > { %v2090_v18 = vsel %vm1184_vm4, %v2087_v62, %v2089_v57  ;;  %v2234_v23 = vsel %vm1329_vm5, %v2231_v36, %v2233_v51  ;;  %v2521_v27 = vrot.slane %v2018_v1, 4  ;;  %v2019_v61 = vsel %vm1023_vm2, %v1920_v8, -inf  ;;  %v9819_v1 = vld [vmem:[#allocation21_spill] sm:$0xff] }
 0x2a8   : > { %v2327_v12 = vmax.f32 %v2183_v56, %v2232_v35  ;;  %v2184_v44 = vmax.f32 %v1918_v3, %v2090_v18  ;;  %v2378_v48 = vsel %vm1474_vm6, %v2375_v53, %v2377_v32  ;;  %v1853_v22 = vmax.f32 %v1827_v34, %v7602_v2 }
 0x2a9   : > { %v2522_v58 = vsel %vm432_vm0, %v2519_v59, %v2521_v27  ;;  %v2094_v49 = vrot.slane %v2019_v61, 1  ;;  %v2238_v24 = vrot.slane %v2019_v61, 2  ;;  %v2382_v62 = vrot.slane %v2019_v61, 3 }
 0x2aa   : > { %v2471_v25 = vmax.f32 %v2327_v12, %v2376_v21  ;;  %v2328_v54 = vmax.f32 %v2184_v44, %v2234_v23  ;;  %v2526_v57 = vrot.slane %v2019_v61, 4  ;;  %v1919_v36 = vrot.slane %v1853_v22, 6 }
 0x2ab   : > { %v1855_v51 = vmax.f32 %v1829_v7, %v9819_v1  ;;  %v1856_v47 = vmax.f32 %v1830_v15, %v7826_v63  ;;  %v9820_v3 = vmax.f32 %v7465_v60, %v8421_v16  ;;  %v1832_v56 = vmax.f32 %v8463_v42, %v7826_v63 }
 0x2ac   : > { %v8632_v59 = vmax.f32 %v2471_v25, %v2520_v33  ;;  %v2472_v35 = vmax.f32 %v2328_v54, %v2378_v48  ;;  %v9821_v44 = vmax.f32 %v8421_v16, %v7602_v2  ;;  %v1921_v7 = vsel %vm1023_vm2, %v1919_v36, %v1920_v8 }
 0x2ad   : > { %v8630_v53 = vmax.f32 %v9820_v3, %v7602_v2  ;;  %v2003_v15 = vsel %vm1023_vm2, -inf, %v1919_v36  ;;  %v1922_v32 = vrot.slane %v1855_v51, 6  ;;  %v1923_v60 = vrot.slane %v1856_v47, 6 }
 0x2ae   : > { %v8640_v21 = vmax.f32 %v9821_v44, %v9819_v1  ;;  %5919 = vmatprep.mubr.msk.f32.mxu1 %vm3513_vm3, %v8632_v59  ;;  %v8646_v25 = vmax.f32 %v2472_v35, %v2522_v58  ;;  %v2091_v54 = vrot.slane %v2003_v15, 1  ;;  %v2092_v33 = vrot.slane %v1921_v7, 1 }
 0x2af   : > { %v2235_v63 = vrot.slane %v2003_v15, 2  ;;  %v2236_v42 = vrot.slane %v1921_v7, 2  ;;  %v2379_v18 = vrot.slane %v2003_v15, 3  ;;  %v2380_v23 = vrot.slane %v1921_v7, 3 }
 0x2b0   : > { %v2523_v2 = vrot.slane %v2003_v15, 4  ;;  %5920 = vmatmul.mubr.msk.f32.gmra.mrb[26].mxu1 %vm3513_vm3, %v8646_v25  ;;  %v2093_v16 = vsel %vm1184_vm4, %v2091_v54, %v2092_v33  ;;  %v2524_v8 = vrot.slane %v1921_v7, 4  ;;  %v2095_v27 = vsel %vm1184_vm4, %v2092_v33, %v2094_v49 }
 0x2b1   : > { %v1924_v34 = vsel %vm1023_vm2, %v1922_v32, %v1923_v60  ;;  %v2185_v12 = vmax.f32 %v2003_v15, %v2093_v16  ;;  %v2237_v48 = vsel %vm1329_vm5, %v2235_v63, %v2236_v42  ;;  %v2381_v61 = vsel %vm1474_vm6, %v2379_v18, %v2380_v23 }
 0x2b2   : > { %v2186_v58 = vmax.f32 %v1921_v7, %v2095_v27  ;;  %v2525_v22 = vsel %vm432_vm0, %v2523_v2, %v2524_v8  ;;  %v2239_v36 = vsel %vm1329_vm5, %v2236_v42, %v2238_v24  ;;  %v2383_v51 = vsel %vm1474_vm6, %v2380_v23, %v2382_v62 }
 0x2b3   : > { %v2527_v47 = vsel %vm432_vm0, %v2524_v8, %v2526_v57  ;;  %v2329_v3 = vmax.f32 %v2185_v12, %v2237_v48  ;;  %v2004_v49 = vsel %vm1023_vm2, -inf, %v1922_v32  ;;  %v2097_v44 = vrot.slane %v1924_v34, 1 }
 0x2b4   : > { %v2330_v35 = vmax.f32 %v2186_v58, %v2239_v36  ;;  %v2096_v54 = vrot.slane %v2004_v49, 1  ;;  %v2240_v15 = vrot.slane %v2004_v49, 2  ;;  %v2241_v33 = vrot.slane %v1924_v34, 2 }
 0x2b5   : > { %v2384_v63 = vrot.slane %v2004_v49, 3  ;;  %v2473_v16 = vmax.f32 %v2329_v3, %v2381_v61  ;;  %v2385_v7 = vrot.slane %v1924_v34, 3  ;;  %v2528_v27 = vrot.slane %v2004_v49, 4 }
 0x2b6   : > { %v2474_v18 = vmax.f32 %v2330_v35, %v2383_v51  ;;  %v2098_v2 = vsel %vm1184_vm4, %v2096_v54, %v2097_v44  ;;  %v2242_v24 = vsel %vm1329_vm5, %v2240_v15, %v2241_v33  ;;  %v2529_v62 = vrot.slane %v1924_v34, 4 }
 0x2b7   : > { %v2020_v57 = vsel %vm1023_vm2, %v1923_v60, -inf  ;;  %v8663_v42 = vmax.f32 %v2473_v16, %v2525_v22  ;;  %v2187_v32 = vmax.f32 %v2004_v49, %v2098_v2  ;;  %v2386_v8 = vsel %vm1474_vm6, %v2384_v63, %v2385_v7 }
 0x2b8   : > { %v8665_v23 = vmax.f32 %v2474_v18, %v2527_v47  ;;  %v2530_v12 = vsel %vm432_vm0, %v2528_v27, %v2529_v62  ;;  %v2099_v48 = vrot.slane %v2020_v57, 1  ;;  %v2243_v61 = vrot.slane %v2020_v57, 2 }
 0x2b9   : > { %v2387_v58 = vrot.slane %v2020_v57, 3  ;;  %5922 = vmatprep.mubr.msk.f32.mxu1 %vm3513_vm3, %v8663_v42  ;;  %v2331_v36 = vmax.f32 %v2187_v32, %v2242_v24  ;;  %v2531_v51 = vrot.slane %v2020_v57, 4  ;;  %v1831_v60 = vmax.f32 %v8630_v53, %v9819_v1 }
 0x2ba   : > { %v1858_v22 = vmax.f32 %v1832_v56, %v7896_v30  ;;  %5923 = vmatmul.mubr.msk.f32.gmra.mrb[28].mxu1 %vm3513_vm3, %v8665_v23  ;;  %v2100_v47 = vsel %vm1184_vm4, %v2097_v44, %v2099_v48  ;;  %v2244_v3 = vsel %vm1329_vm5, %v2241_v33, %v2243_v61  ;;  %v1833_v49 = vmax.f32 %v8640_v21, %v7878_v14  ;;  %v9822_v44 = vld [vmem:[#allocation22_spill] sm:$0xff]  ;;  %v9823_v21 = vld [vmem:[#allocation23_spill] sm:$0xff] }
 0x2bb   : > { %v2388_v35 = vsel %vm1474_vm6, %v2385_v7, %v2387_v58  ;;  %v2475_v54 = vmax.f32 %v2331_v36, %v2386_v8  ;;  %v2188_v15 = vmax.f32 %v1924_v34, %v2100_v47  ;;  %v2532_v63 = vsel %vm432_vm0, %v2529_v62, %v2531_v51 }
 0x2bc   : > { %v1857_v1 = vmax.f32 %v1831_v60, %v7878_v14  ;;  %v1926_v53 = vrot.slane %v1858_v22, 6  ;;  %v1834_v56 = vmax.f32 %v8466_v11, %v7896_v30  ;;  %v1859_v16 = vmax.f32 %v1833_v49, %v7940_v50 }
 0x2bd   : > { %v1835_v33 = vmax.f32 %v9822_v44, %v7940_v50  ;;  %v8688_v18 = vmax.f32 %v2475_v54, %v2530_v12  ;;  %v2332_v7 = vmax.f32 %v2188_v15, %v2244_v3  ;;  %v9824_v34 = vmax.f32 %v9823_v21, %v7965_v43 }
 0x2be   : > { %v1925_v27 = vrot.slane %v1857_v1, 6  ;;  %v2021_v14 = vsel %vm1023_vm2, %v1926_v53, -inf  ;;  %v1860_v24 = vmax.f32 %v1834_v56, %v7965_v43  ;;  %v1928_v30 = vrot.slane %v1859_v16, 6 }
 0x2bf   : > { %v8694_v2 = vmax.f32 %v9824_v34, %v8054_v13  ;;  %v8699_v11 = vmax.f32 %v1835_v33, %v8036_v55  ;;  %5925 = vmatprep.mubr.msk.f32.mxu1 %vm3513_vm3, %v8688_v18  ;;  %v2476_v50 = vmax.f32 %v2332_v7, %v2388_v35  ;;  %v2104_v32 = vrot.slane %v2021_v14, 1 }
 0x2c0   : > { %v1927_v62 = vsel %vm1023_vm2, %v1925_v27, %v1926_v53  ;;  %v2005_v57 = vsel %vm1023_vm2, -inf, %v1925_v27  ;;  %v2248_v15 = vrot.slane %v2021_v14, 2  ;;  %v2392_v1 = vrot.slane %v2021_v14, 3 }
 0x2c1   : > { %v2101_v8 = vrot.slane %v2005_v57, 1  ;;  %v2102_v12 = vrot.slane %v1927_v62, 1  ;;  %v2245_v48 = vrot.slane %v2005_v57, 2  ;;  %v2246_v61 = vrot.slane %v1927_v62, 2 }
 0x2c2   : > { %v8705_v58 = vmax.f32 %v2476_v50, %v2532_v63  ;;  %v2389_v43 = vrot.slane %v2005_v57, 3  ;;  %v2390_v36 = vrot.slane %v1927_v62, 3  ;;  %v2533_v51 = vrot.slane %v2005_v57, 4 }
 0x2c3   : > { %v2103_v60 = vsel %vm1184_vm4, %v2101_v8, %v2102_v12  ;;  %v2247_v22 = vsel %vm1329_vm5, %v2245_v48, %v2246_v61  ;;  %v2534_v47 = vrot.slane %v1927_v62, 4  ;;  %v2105_v3 = vsel %vm1184_vm4, %v2102_v12, %v2104_v32 }
 0x2c4   : > { %5926 = vmatmul.mubr.msk.f32.gmra.mrb[30].mxu1 %vm3513_vm3, %v8705_v58  ;;  %v2189_v35 = vmax.f32 %v2005_v57, %v2103_v60  ;;  %v2391_v49 = vsel %vm1474_vm6, %v2389_v43, %v2390_v36  ;;  %v2190_v54 = vmax.f32 %v1927_v62, %v2105_v3  ;;  %v2536_v53 = vrot.slane %v2021_v14, 4 }
 0x2c5   : > { %v2535_v63 = vsel %vm432_vm0, %v2533_v51, %v2534_v47  ;;  %v1929_v56 = vrot.slane %v1860_v24, 6  ;;  %v2249_v44 = vsel %vm1329_vm5, %v2246_v61, %v2248_v15  ;;  %v2006_v33 = vsel %vm1023_vm2, -inf, %v1928_v30 }
 0x2c6   : > { %v2333_v16 = vmax.f32 %v2189_v35, %v2247_v22  ;;  %v1931_v7 = vrot.slane %v8699_v11, 6  ;;  %v2334_v27 = vmax.f32 %v2190_v54, %v2249_v44  ;;  %v2393_v21 = vsel %vm1474_vm6, %v2390_v36, %v2392_v1 }
 0x2c7   : > { %v2537_v34 = vsel %vm432_vm0, %v2534_v47, %v2536_v53  ;;  %v1930_v50 = vsel %vm1023_vm2, %v1928_v30, %v1929_v56  ;;  %v2106_v57 = vrot.slane %v2006_v33, 1  ;;  %v2250_v8 = vrot.slane %v2006_v33, 2 }
 0x2c8   : > { %v2477_v62 = vmax.f32 %v2333_v16, %v2391_v49  ;;  %v2107_v32 = vrot.slane %v1930_v50, 1  ;;  %v2478_v14 = vmax.f32 %v2334_v27, %v2393_v21  ;;  %v2251_v24 = vrot.slane %v1930_v50, 2 }
 0x2c9   : > { %v2394_v12 = vrot.slane %v2006_v33, 3  ;;  %v2395_v48 = vrot.slane %v1930_v50, 3  ;;  %v2538_v11 = vrot.slane %v2006_v33, 4  ;;  %v2539_v51 = vrot.slane %v1930_v50, 4 }
 0x2ca   : > { %v8720_v61 = vmax.f32 %v2477_v62, %v2535_v63  ;;  %v2108_v43 = vsel %vm1184_vm4, %v2106_v57, %v2107_v32  ;;  %v8723_v60 = vmax.f32 %v2478_v14, %v2537_v34  ;;  %v2252_v22 = vsel %vm1329_vm5, %v2250_v8, %v2251_v24 }
 0x2cb   : > { %v2191_v36 = vmax.f32 %v2006_v33, %v2108_v43  ;;  %v2396_v30 = vsel %vm1474_vm6, %v2394_v12, %v2395_v48  ;;  %v2540_v47 = vsel %vm432_vm0, %v2538_v11, %v2539_v51  ;;  %v2022_v3 = vsel %vm1023_vm2, %v1929_v56, -inf }
 0x2cc   : > { %5928 = vmatprep.mubr.msk.f32.mxu1 %vm3513_vm3, %v8720_v61  ;;  %v1932_v35 = vrot.slane %v8694_v2, 6  ;;  %v2007_v49 = vsel %vm1023_vm2, -inf, %v1931_v7  ;;  %v2109_v15 = vrot.slane %v2022_v3, 1  ;;  %v2253_v63 = vrot.slane %v2022_v3, 2 }
 0x2cd   : > { %5929 = vmatmul.mubr.msk.f32.gmra.mrb[0].mxu1 %vm3513_vm3, %v8723_v60  ;;  %v2335_v54 = vmax.f32 %v2191_v36, %v2252_v22  ;;  %v2397_v1 = vrot.slane %v2022_v3, 3  ;;  %v2541_v53 = vrot.slane %v2022_v3, 4  ;;  %v2111_v44 = vrot.slane %v2007_v49, 1 }
 0x2ce   : > { %v1933_v16 = vsel %vm1023_vm2, %v1931_v7, %v1932_v35  ;;  %v2255_v33 = vrot.slane %v2007_v49, 2  ;;  %v2110_v21 = vsel %vm1184_vm4, %v2107_v32, %v2109_v15  ;;  %v2254_v56 = vsel %vm1329_vm5, %v2251_v24, %v2253_v63 }
 0x2cf   : > { %v2479_v27 = vmax.f32 %v2335_v54, %v2396_v30  ;;  %v2398_v2 = vsel %vm1474_vm6, %v2395_v48, %v2397_v1  ;;  %v2192_v34 = vmax.f32 %v1930_v50, %v2110_v21  ;;  %v2542_v62 = vsel %vm432_vm0, %v2539_v51, %v2541_v53  ;;  %v9825_v51 = vld [vmem:[#allocation16_spill] sm:$0xff] }
 0x2d0   : > { %v2112_v57 = vrot.slane %v1933_v16, 1  ;;  %v2256_v8 = vrot.slane %v1933_v16, 2  ;;  %v2399_v12 = vrot.slane %v2007_v49, 3  ;;  %v2400_v43 = vrot.slane %v1933_v16, 3 }
 0x2d1   : > { %v8740_v14 = vmax.f32 %v2479_v27, %v2540_v47  ;;  %v2543_v11 = vrot.slane %v2007_v49, 4  ;;  %v2336_v7 = vmax.f32 %v2192_v34, %v2254_v56  ;;  %v2544_v32 = vrot.slane %v1933_v16, 4 }
 0x2d2   : > { %v2113_v36 = vsel %vm1184_vm4, %v2111_v44, %v2112_v57  ;;  %v2257_v22 = vsel %vm1329_vm5, %v2255_v33, %v2256_v8  ;;  %v2401_v50 = vsel %vm1474_vm6, %v2399_v12, %v2400_v43  ;;  %v2023_v48 = vsel %vm1023_vm2, %v1932_v35, -inf }
 0x2d3   : > { %5931 = vmatprep.mubr.msk.f32.mxu1 %vm3513_vm3, %v8740_v14  ;;  %v2193_v24 = vmax.f32 %v2007_v49, %v2113_v36  ;;  %v1837_v30 = vmax.f32 %v9825_v51, %v8036_v55  ;;  %v2480_v47 = vmax.f32 %v2336_v7, %v2398_v2  ;;  %v2545_v3 = vsel %vm432_vm0, %v2543_v11, %v2544_v32 }
 0x2d4   : > { %v2114_v54 = vrot.slane %v2023_v48, 1  ;;  %v2258_v15 = vrot.slane %v2023_v48, 2  ;;  %v2402_v1 = vrot.slane %v2023_v48, 3  ;;  %v2546_v53 = vrot.slane %v2023_v48, 4 }
 0x2d5   : > { %v2337_v63 = vmax.f32 %v2193_v24, %v2257_v22  ;;  %v1863_v44 = vmax.f32 %v1837_v30, %v8091_v39  ;;  %v8752_v33 = vmax.f32 %v2480_v47, %v2542_v62  ;;  %v9826_v55 = vmax.f32 %v7979_v37, %v8054_v13 }
 0x2d6   : > { %v2115_v49 = vsel %vm1184_vm4, %v2112_v57, %v2114_v54  ;;  %v2259_v27 = vsel %vm1329_vm5, %v2256_v8, %v2258_v15  ;;  %v2403_v2 = vsel %vm1474_vm6, %v2400_v43, %v2402_v1  ;;  %v2547_v34 = vsel %vm432_vm0, %v2544_v32, %v2546_v53 }
 0x2d7   : > { %v1864_v35 = vmax.f32 %v9826_v55, %v8152_v4  ;;  %v2481_v21 = vmax.f32 %v2337_v63, %v2401_v50  ;;  %v2194_v56 = vmax.f32 %v1933_v16, %v2115_v49  ;;  %5932 = vmatmul.mubr.msk.f32.gmra.mrb[2].mxu1 %vm3513_vm3, %v8752_v33  ;;  %v1934_v39 = vrot.slane %v1863_v44, 6 }
 0x2d8   : > { %v9827_v57 = vrot.slane %v8270_v38, 6  ;;  %v9828_v8 = vrot.slane %v8211_v0, 6  ;;  %v2121_v37 = vrot.slane %v8239_v45, 1  ;;  %v2265_v43 = vrot.slane %v8239_v45, 2 }
 0x2d9   : > { %v1935_v62 = vrot.slane %v1864_v35, 6  ;;  %v8772_v13 = vmax.f32 %v2481_v21, %v2545_v3  ;;  %v2338_v4 = vmax.f32 %v2194_v56, %v2259_v27  ;;  %v2008_v7 = vsel %vm1023_vm2, -inf, %v1934_v39 }
 0x2da   : > { %v8769_v12 = vsel %vm1023_vm2, %v9828_v8, %v9827_v57  ;;  %v2116_v32 = vrot.slane %v2008_v7, 1  ;;  %v2260_v50 = vrot.slane %v2008_v7, 2  ;;  %v2404_v51 = vrot.slane %v2008_v7, 3 }
 0x2db   : > { %v2122_v16 = vrot.slane %v8769_v12, 1  ;;  %v1936_v11 = vsel %vm1023_vm2, %v1934_v39, %v1935_v62  ;;  %v2024_v36 = vsel %vm1023_vm2, %v1935_v62, -inf  ;;  %v2266_v0 = vrot.slane %v8769_v12, 2  ;;  %5934 = vmatprep.mubr.msk.f32.mxu1 %vm3513_vm3, %v8772_v13 }
 0x2dc   : > { %v2482_v22 = vmax.f32 %v2338_v4, %v2403_v2  ;;  %v2117_v24 = vrot.slane %v1936_v11, 1  ;;  %v2261_v48 = vrot.slane %v1936_v11, 2  ;;  %v2405_v30 = vrot.slane %v1936_v11, 3 }
 0x2dd   : > { %v2548_v47 = vrot.slane %v2008_v7, 4  ;;  %v2549_v15 = vrot.slane %v1936_v11, 4  ;;  %v2119_v63 = vrot.slane %v2024_v36, 1  ;;  %v2263_v49 = vrot.slane %v2024_v36, 2 }
 0x2de   : > { %v8782_v3 = vmax.f32 %v2482_v22, %v2547_v34  ;;  %v2118_v54 = vsel %vm1184_vm4, %v2116_v32, %v2117_v24  ;;  %v2262_v53 = vsel %vm1329_vm5, %v2260_v50, %v2261_v48  ;;  %v2406_v44 = vsel %vm1474_vm6, %v2404_v51, %v2405_v30 }
 0x2df   : > { %v2195_v1 = vmax.f32 %v2008_v7, %v2118_v54  ;;  %v2550_v27 = vsel %vm432_vm0, %v2548_v47, %v2549_v15  ;;  %v2120_v55 = vsel %vm1184_vm4, %v2117_v24, %v2119_v63  ;;  %v2407_v35 = vrot.slane %v2024_v36, 3 }
 0x2e0   : > { %5935 = vmatmul.mubr.msk.f32.gmra.mrb[4].mxu1 %vm3513_vm3, %v8782_v3  ;;  %v2551_v21 = vrot.slane %v2024_v36, 4  ;;  %v2196_v2 = vmax.f32 %v1936_v11, %v2120_v55  ;;  %v2264_v34 = vsel %vm1329_vm5, %v2261_v48, %v2263_v49  ;;  %v2123_v39 = vsel %vm1184_vm4, %v2121_v37, %v2122_v16 }
 0x2e1   : > { %v2339_v56 = vmax.f32 %v2195_v1, %v2262_v53  ;;  %v2408_v62 = vsel %vm1474_vm6, %v2405_v30, %v2407_v35  ;;  %v2197_v8 = vmax.f32 %v8239_v45, %v2123_v39  ;;  %v2267_v4 = vsel %vm1329_vm5, %v2265_v43, %v2266_v0 }
 0x2e2   : > { %v2552_v57 = vsel %vm432_vm0, %v2549_v15, %v2551_v21  ;;  %v2340_v22 = vmax.f32 %v2196_v2, %v2264_v34  ;;  %v2409_v32 = vrot.slane %v8239_v45, 3  ;;  %v2410_v36 = vrot.slane %v8769_v12, 3 }
 0x2e3   : > { %v2483_v7 = vmax.f32 %v2339_v56, %v2406_v44  ;;  %v2341_v24 = vmax.f32 %v2197_v8, %v2267_v4  ;;  %v2553_v11 = vrot.slane %v8239_v45, 4  ;;  %v2554_v50 = vrot.slane %v8769_v12, 4  ;;  %v9830_v44 = vld [vmem:[#allocation25_spill] sm:$0xff] }
 0x2e4   : > { %v9829_v37 = vrot.slane %v8270_v38, 6  ;;  %v2484_v30 = vmax.f32 %v2340_v22, %v2408_v62  ;;  %v2411_v43 = vsel %vm1474_vm6, %v2409_v32, %v2410_v36  ;;  %v9831_v49 = vrot.slane %v9830_v44, 1  ;;  %v9836_v22 = vld [vmem:[#allocation27_spill] sm:$0xff] }
 0x2e5   : > { %v8804_v51 = vmax.f32 %v2483_v7, %v2550_v27  ;;  %v2485_v54 = vmax.f32 %v2341_v24, %v2411_v43  ;;  %v2555_v15 = vsel %vm432_vm0, %v2553_v11, %v2554_v50  ;;  %v9832_v27 = vld [vmem:[#allocation20_spill] sm:$0xff]  ;;  %v9834_v62 = vrot.slane %v9830_v44, 2 }
 0x2e6   : > { %v2025_v48 = vsel %vm1023_vm2, %v9829_v37, -inf  ;;  %v8810_v45 = vmax.f32 %v2484_v30, %v2552_v57  ;;  %v9833_v55 = vrot.slane %v9832_v27, 1  ;;  %v9835_v57 = vrot.slane %v9832_v27, 2 }
 0x2e7   : > { %v2124_v47 = vrot.slane %v2025_v48, 1  ;;  %v2268_v63 = vrot.slane %v2025_v48, 2  ;;  %v2412_v1 = vrot.slane %v2025_v48, 3  ;;  %5937 = vmatprep.mubr.msk.f32.mxu1 %vm3513_vm3, %v8804_v51  ;;  %v2556_v53 = vrot.slane %v2025_v48, 4 }
 0x2e8   : > { %v2128_v35 = vsel %vm1184_vm4, %v9833_v55, %v9831_v49  ;;  %v8818_v21 = vmax.f32 %v2485_v54, %v2555_v15  ;;  %5938 = vmatmul.mubr.msk.f32.gmra.mrb[6].mxu1 %vm3513_vm3, %v8810_v45  ;;  %v2272_v8 = vsel %vm1329_vm5, %v9835_v57, %v9834_v62  ;;  %v2415_v4 = vrot.slane %v9830_v44, 3  ;;  %v9844_v55 = vld [vmem:[#allocation17_spill] sm:$0xff] }
 0x2e9   : > { %v2125_v38 = vsel %vm1184_vm4, %v2122_v16, %v2124_v47  ;;  %v2269_v2 = vsel %vm1329_vm5, %v2266_v0, %v2268_v63  ;;  %v2413_v34 = vsel %vm1474_vm6, %v2410_v36, %v2412_v1  ;;  %v2557_v16 = vsel %vm432_vm0, %v2554_v50, %v2556_v53 }
 0x2ea   : > { %v2198_v56 = vmax.f32 %v8769_v12, %v2125_v38  ;;  %v2199_v39 = vmax.f32 %v9832_v27, %v2128_v35  ;;  %5940 = vmatprep.mubr.msk.f32.mxu1 %vm3513_vm3, %v8818_v21  ;;  %v2558_v0 = vrot.slane %v9832_v27, 4  ;;  %v2559_v7 = vrot.slane %v9830_v44, 4 }
 0x2eb   : > { %v9837_v32 = vrot.slane %v9836_v22, 1  ;;  %v9838_v36 = vmov %v9831_v49  ;;  %v9839_v50 = vrot.slane %v9832_v27, 3  ;;  %v9840_v30 = vrot.slane %v9836_v22, 2 }
 0x2ec   : > { %v2342_v12 = vmax.f32 %v2198_v56, %v2269_v2  ;;  %v2343_v11 = vmax.f32 %v2199_v39, %v2272_v8  ;;  %v9841_v43 = vmov %v9834_v62  ;;  %v2560_v15 = vsel %vm432_vm0, %v2558_v0, %v2559_v7  ;;  %v9845_v56 = vld [vmem:[#allocation26_spill] sm:$0xff] }
 0x2ed   : > { %v2130_v24 = vsel %vm1184_vm4, %v9838_v36, %v9837_v32  ;;  %v2416_v37 = vsel %vm1474_vm6, %v9839_v50, %v2415_v4  ;;  %v2274_v47 = vsel %vm1329_vm5, %v9841_v43, %v9840_v30  ;;  %v9842_v63 = vrot.slane %v9836_v22, 3 }
 0x2ee   : > { %v2200_v48 = vmax.f32 %v9830_v44, %v2130_v24  ;;  %v2486_v54 = vmax.f32 %v2342_v12, %v2413_v34  ;;  %v9843_v38 = vrot.slane %v9836_v22, 4  ;;  %v2487_v49 = vmax.f32 %v2343_v11, %v2416_v37  ;;  %v9846_v24 = vld [vmem:[#allocation28_spill] sm:$0xff] }
 0x2ef   : > { %v2418_v1 = vsel %vm1474_vm6, %v2415_v4, %v9842_v63  ;;  %v2131_v35 = vrot.slane %v9844_v55, 1  ;;  %v2132_v2 = vrot.slane %v9845_v56, 1  ;;  %v2275_v34 = vrot.slane %v9844_v55, 2  ;;  %v9848_v63 = vld [vmem:[#allocation24_spill] sm:$0xff] }
 0x2f0   : > { %v2562_v53 = vsel %vm432_vm0, %v2559_v7, %v9843_v38  ;;  %v2344_v27 = vmax.f32 %v2200_v48, %v2274_v47  ;;  %v8860_v44 = vmax.f32 %v2486_v54, %v2557_v16  ;;  %v2276_v39 = vrot.slane %v9845_v56, 2  ;;  %v9850_v38 = vld [vmem:[#allocation18_spill] sm:$0xff] }
 0x2f1   : > { %v2419_v62 = vrot.slane %v9844_v55, 3  ;;  %v8865_v57 = vmax.f32 %v2487_v49, %v2560_v15  ;;  %v2133_v4 = vsel %vm1184_vm4, %v2131_v35, %v2132_v2  ;;  %v2420_v12 = vrot.slane %v9845_v56, 3 }
 0x2f2   : > { %v2488_v8 = vmax.f32 %v2344_v27, %v2418_v1  ;;  %5941 = vmatmul.mubr.msk.f32.gmra.mrb[8].mxu1 %vm3513_vm3, %v8860_v44  ;;  %v2201_v0 = vmax.f32 %v9844_v55, %v2133_v4  ;;  %v2277_v16 = vsel %vm1329_vm5, %v2275_v34, %v2276_v39  ;;  %v2563_v7 = vrot.slane %v9844_v55, 4  ;;  %v9852_v27 = vld [vmem:[#allocation19_spill] sm:$0xff] }
 0x2f3   : > { %v2564_v22 = vrot.slane %v9845_v56, 4  ;;  %5943 = vmatprep.mubr.msk.f32.mxu1 %vm3513_vm3, %v8865_v57  ;;  %v2421_v36 = vsel %vm1474_vm6, %v2419_v62, %v2420_v12  ;;  %v9847_v11 = vrot.slane %v9846_v24, 1  ;;  %v2278_v37 = vrot.slane %v9846_v24, 2 }
 0x2f4   : > { %v8877_v32 = vmax.f32 %v2488_v8, %v2562_v53  ;;  %v2345_v48 = vmax.f32 %v2201_v0, %v2277_v16  ;;  %v2422_v47 = vrot.slane %v9846_v24, 3  ;;  %v2566_v15 = vrot.slane %v9846_v24, 4 }
 0x2f5   : > { %v2135_v50 = vsel %vm1184_vm4, %v2132_v2, %v9847_v11  ;;  %v2565_v30 = vsel %vm432_vm0, %v2563_v7, %v2564_v22  ;;  %v2279_v54 = vsel %vm1329_vm5, %v2276_v39, %v2278_v37  ;;  %v9849_v1 = vrot.slane %v9848_v63, 6 }
 0x2f6   : > { %v2202_v43 = vmax.f32 %v9845_v56, %v2135_v50  ;;  %v9851_v53 = vrot.slane %v9850_v38, 6  ;;  %v2136_v55 = vrot.slane %v9852_v27, 1  ;;  %5944 = vmatmul.mubr.msk.f32.gmra.mrb[10].mxu1 %vm3513_vm3, %v8877_v32  ;;  %v2489_v35 = vmax.f32 %v2345_v48, %v2421_v36 }
 0x2f7   : > { %v2423_v56 = vsel %vm1474_vm6, %v2420_v12, %v2422_v47  ;;  %v2567_v39 = vsel %vm432_vm0, %v2564_v22, %v2566_v15  ;;  %v2280_v62 = vrot.slane %v9852_v27, 2  ;;  %v2424_v4 = vrot.slane %v9852_v27, 3 }
 0x2f8   : > { %v1948_v49 = vsel %vm1023_vm2, %v9851_v53, %v9849_v1  ;;  %v2346_v2 = vmax.f32 %v2202_v43, %v2279_v54  ;;  %v8901_v0 = vmax.f32 %v2489_v35, %v2565_v30  ;;  %v2568_v12 = vrot.slane %v9852_v27, 4 }
 0x2f9   : > { %v2137_v34 = vrot.slane %v1948_v49, 1  ;;  %v2281_v8 = vrot.slane %v1948_v49, 2  ;;  %v2425_v24 = vrot.slane %v1948_v49, 3  ;;  %v2569_v50 = vrot.slane %v1948_v49, 4 }
 0x2fa   : > { %v2490_v16 = vmax.f32 %v2346_v2, %v2423_v56  ;;  %5946 = vmatprep.mubr.msk.f32.mxu1 %vm3513_vm3, %v8901_v0  ;;  %v2659_v48 = vmax.f32 %v8804_v51, %v8818_v21  ;;  %v2661_v30 = vmax.f32 %v8818_v21, %v8865_v57  ;;  %v2663_v54 = vmax.f32 %v8865_v57, %v8901_v0 }
 0x2fb   : > { %v2138_v7 = vsel %vm1184_vm4, %v2136_v55, %v2137_v34  ;;  %v2282_v36 = vsel %vm1329_vm5, %v2280_v62, %v2281_v8  ;;  %v2426_v37 = vsel %vm1474_vm6, %v2424_v4, %v2425_v24  ;;  %v2570_v47 = vsel %vm432_vm0, %v2568_v12, %v2569_v50 }
 0x2fc   : > { %v2203_v11 = vmax.f32 %v9852_v27, %v2138_v7  ;;  %v8909_v22 = vmax.f32 %v2490_v16, %v2567_v39  ;;  %v9853_v15 = vmov %v9849_v1  ;;  %v2687_v38 = vmax.f32 %v2659_v48, %v8865_v57 }
 0x2fd   : > { %v2028_v1 = vsel %vm1023_vm2, %v9853_v15, -inf  ;;  %v2689_v53 = vmax.f32 %v2661_v30, %v8901_v0  ;;  %v2660_v39 = vmax.f32 %v8810_v45, %v8860_v44  ;;  %v2662_v16 = vmax.f32 %v8860_v44, %v8877_v32 }
 0x2fe   : > { %v2347_v43 = vmax.f32 %v2203_v11, %v2282_v36  ;;  %5947 = vmatmul.mubr.msk.f32.gmra.mrb[12].mxu1 %vm3513_vm3, %v8909_v22  ;;  %v2139_v27 = vrot.slane %v2028_v1, 1  ;;  %v2283_v55 = vrot.slane %v2028_v1, 2  ;;  %v2427_v2 = vrot.slane %v2028_v1, 3 }
 0x2ff   : > { %v2571_v56 = vrot.slane %v2028_v1, 4  ;;  %v2715_v62 = vmax.f32 %v2687_v38, %v8901_v0  ;;  %v2688_v48 = vmax.f32 %v2660_v39, %v8877_v32  ;;  %v2690_v30 = vmax.f32 %v2662_v16, %v8909_v22 }
 0x300   : > { %v2491_v35 = vmax.f32 %v2347_v43, %v2426_v37  ;;  %v2140_v63 = vsel %vm1184_vm4, %v2137_v34, %v2139_v27  ;;  %v2284_v4 = vsel %vm1329_vm5, %v2281_v8, %v2283_v55  ;;  %v2428_v36 = vsel %vm1474_vm6, %v2425_v24, %v2427_v2 }
 0x301   : > { %v2204_v11 = vmax.f32 %v1948_v49, %v2140_v63  ;;  %v2572_v12 = vsel %vm432_vm0, %v2569_v50, %v2571_v56  ;;  %v2664_v37 = vmax.f32 %v8877_v32, %v8909_v22  ;;  %v9854_v34 = vrot.slane %v8512_v46, 6 }
 0x302   : > { %v2635_v7 = vmax.f32 %v2491_v35, %v2570_v47  ;;  %v2716_v50 = vmax.f32 %v2688_v48, %v8909_v22 }
 0x303   : > { %v2777_v8 = vsel %vm1023_vm2, %v9854_v34, %v2776_v52  ;;  %v2348_v24 = vmax.f32 %v2204_v11, %v2284_v4  ;;  %v9855_v15 = vmov %v9854_v34 }
 0x304   : > { %v8944_v43 = vmax.f32 %v2663_v54, %v2635_v7  ;;  %v2717_v49 = vmax.f32 %v2689_v53, %v2635_v7  ;;  %v8946_v47 = vmax.f32 %v2715_v62, %v2635_v7  ;;  %5949 = vmatprep.mubr.msk.f32.mxu1 %vm3513_vm3, %v2635_v7  ;;  %v2871_v1 = vsel %vm1023_vm2, -inf, %v9855_v15 }
 0x305   : > { %v2936_v38 = vrot.slane %v2777_v8, 1  ;;  %v3080_v28 = vrot.slane %v2777_v8, 2  ;;  %v2492_v54 = vmax.f32 %v2348_v24, %v2428_v36  ;;  %v2935_v53 = vrot.slane %v2871_v1, 1 }
 0x306   : > { %v9713_v27 = vrot.slane %v8946_v47, 6  ;;  %v8954_v55 = vrot.slane %v2717_v49, 6  ;;  %v9712_v52 = vrot.slane %v8944_v43, 6  ;;  %v3079_v2 = vrot.slane %v2871_v1, 2 }
 0x307   : > { %v2939_v35 = vsel %vm1184_vm4, %v2936_v38, %v2938_v26  ;;  %v3083_v56 = vsel %vm1329_vm5, %v3080_v28, %v3082_v40  ;;  %v2636_v26 = vmax.f32 %v2492_v54, %v2572_v12  ;;  %v2937_v4 = vsel %vm1184_vm4, %v2935_v53, %v2936_v38 }
 0x308   : > { %v8966_v39 = vsel %vm1023_vm2, -inf, %v9713_v27  ;;  %v8970_v62 = vsel %vm1023_vm2, -inf, %v8954_v55  ;;  %v8975_v63 = vsel %vm1023_vm2, -inf, %v9712_v52  ;;  %v3081_v16 = vsel %vm1329_vm5, %v3079_v2, %v3080_v28 }
 0x309   : > { %9856 = vst [vmem:[#allocation21_spill] sm:$0xff] %v8975_v63  ;;  %v3223_v40 = vrot.slane %v2871_v1, 3  ;;  %v3224_v7 = vrot.slane %v2777_v8, 3  ;;  %v8979_v11 = vmax.f32 %v2664_v37, %v2636_v26  ;;  %v2718_v36 = vmax.f32 %v2690_v30, %v2636_v26  ;;  %5950 = vmatmul.mubr.msk.f32.gmra.mrb[14].mxu1 %vm3513_vm3, %v2636_v26 }
 0x30a   : > { %v8981_v48 = vmax.f32 %v2716_v50, %v2636_v26  ;;  %v3047_v34 = vmax.f32 %v2871_v1, %v2937_v4  ;;  %v9857_v24 = vrot.slane %v8534_v5, 3  ;;  %v3367_v15 = vrot.slane %v2871_v1, 4 }
 0x30b   : > { %v3225_v49 = vsel %vm1474_vm6, %v3223_v40, %v3224_v7  ;;  %v3368_v38 = vrot.slane %v2777_v8, 4  ;;  %v8989_v54 = vrot.slane %v2718_v36, 6  ;;  %v3370_v53 = vrot.slane %v8534_v5, 4 }
 0x30c   : > { %v3227_v12 = vsel %vm1474_vm6, %v3224_v7, %v9857_v24  ;;  %v3191_v30 = vmax.f32 %v3047_v34, %v3081_v16  ;;  %v3048_v2 = vmax.f32 %v2777_v8, %v2939_v35  ;;  %v2693_v26 = vmax.f32 %v8512_v46, %v8551_v9 }
 0x30d   : > { %v3369_v50 = vsel %vm432_vm0, %v3367_v15, %v3368_v38  ;;  %v2779_v40 = vrot.slane %v8598_v29, 6  ;;  %v2720_v1 = vmax.f32 %v8598_v29, %v8301_v31  ;;  %v2695_v7 = vmax.f32 %v8573_v6, %v8602_v17 }
 0x30e   : > { %v3335_v4 = vmax.f32 %v3191_v30, %v3225_v49  ;;  %v3371_v36 = vsel %vm432_vm0, %v3368_v38, %v3370_v53  ;;  %v3192_v16 = vmax.f32 %v3048_v2, %v3083_v56  ;;  %v2778_v34 = vrot.slane %v2693_v26, 6 }
 0x30f   : > { %v2719_v24 = vmax.f32 %v2693_v26, %v8602_v17  ;;  %v2888_v8 = vsel %vm1023_vm2, %v2779_v40, -inf  ;;  %v2782_v35 = vrot.slane %v2720_v1, 6  ;;  %v2696_v46 = vmax.f32 %v8594_v10, %v8301_v31 }
 0x310   : > { %v3479_v5 = vmax.f32 %v3335_v4, %v3369_v50  ;;  %v3336_v49 = vmax.f32 %v3192_v16, %v3227_v12  ;;  %v2780_v15 = vsel %vm1023_vm2, %v2778_v34, %v2779_v40  ;;  %v2872_v29 = vsel %vm1023_vm2, -inf, %v2778_v34 }
 0x311   : > { %v2943_v30 = vrot.slane %v2888_v8, 1  ;;  %v2940_v6 = vrot.slane %v2872_v29, 1  ;;  %v2941_v56 = vrot.slane %v2780_v15, 1  ;;  %v3084_v38 = vrot.slane %v2872_v29, 2 }
 0x312   : > { %5954 = vmatprep.mubr.msk.f32.mxu1 %vm3513_vm3, %v3479_v5  ;;  %v3085_v53 = vrot.slane %v2780_v15, 2  ;;  %v3480_v2 = vmax.f32 %v3336_v49, %v3371_v36  ;;  %v3228_v50 = vrot.slane %v2872_v29, 3  ;;  %v3229_v26 = vrot.slane %v2780_v15, 3 }
 0x313   : > { %v3372_v4 = vrot.slane %v2872_v29, 4  ;;  %v2942_v1 = vsel %vm1184_vm4, %v2940_v6, %v2941_v56  ;;  %v3373_v12 = vrot.slane %v2780_v15, 4  ;;  %v2944_v40 = vsel %vm1184_vm4, %v2941_v56, %v2943_v30 }
 0x314   : > { %v3086_v10 = vsel %vm1329_vm5, %v3084_v38, %v3085_v53  ;;  %5955 = vmatmul.mubr.msk.f32.vlgmr.msra.gmra.mrb[16].mxu1 %vm3513_vm3, %v3480_v2  ;;  %v3049_v16 = vmax.f32 %v2872_v29, %v2942_v1  ;;  %v3230_v34 = vsel %vm1474_vm6, %v3228_v50, %v3229_v26  ;;  %v3050_v5 = vmax.f32 %v2780_v15, %v2944_v40 }
 0x315   : > { %v3087_v52 = vrot.slane %v2888_v8, 2  ;;  %v3374_v37 = vsel %vm432_vm0, %v3372_v4, %v3373_v12  ;;  %v3231_v36 = vrot.slane %v2888_v8, 3  ;;  %v3375_v49 = vrot.slane %v2888_v8, 4 }
 0x316   : > { %v2781_v27 = vrot.slane %v2719_v24, 6  ;;  %v3193_v28 = vmax.f32 %v3049_v16, %v3086_v10  ;;  %v2889_v38 = vsel %vm1023_vm2, %v2782_v35, -inf  ;;  %v2721_v63 = vmax.f32 %v2695_v7, %v8632_v59 }
 0x317   : > { %v3088_v6 = vsel %vm1329_vm5, %v3085_v53, %v3087_v52  ;;  %v3232_v56 = vsel %vm1474_vm6, %v3229_v26, %v3231_v36  ;;  %v3376_v29 = vsel %vm432_vm0, %v3373_v12, %v3375_v49  ;;  %v2948_v36 = vrot.slane %v2889_v38, 1 }
 0x318   : > { %v3194_v30 = vmax.f32 %v3050_v5, %v3088_v6  ;;  %v2783_v15 = vsel %vm1023_vm2, %v2781_v27, %v2782_v35  ;;  %v3337_v2 = vmax.f32 %v3193_v28, %v3230_v34  ;;  %v2873_v50 = vsel %vm1023_vm2, -inf, %v2781_v27 }
 0x319   : > { %v2946_v4 = vrot.slane %v2783_v15, 1  ;;  %v3090_v8 = vrot.slane %v2783_v15, 2  ;;  %v2945_v1 = vrot.slane %v2873_v50, 1  ;;  %v3089_v10 = vrot.slane %v2873_v50, 2 }
 0x31a   : > { %v3338_v24 = vmax.f32 %v3194_v30, %v3232_v56  ;;  %v3233_v52 = vrot.slane %v2873_v50, 3  ;;  %v3481_v53 = vmax.f32 %v3337_v2, %v3374_v37  ;;  %v3234_v40 = vrot.slane %v2783_v15, 3 }
 0x31b   : > { %v3377_v16 = vrot.slane %v2873_v50, 4  ;;  %v3378_v7 = vrot.slane %v2783_v15, 4  ;;  %v2947_v26 = vsel %vm1184_vm4, %v2945_v1, %v2946_v4  ;;  %v3091_v12 = vsel %vm1329_vm5, %v3089_v10, %v3090_v8 }
 0x31c   : > { %v3482_v5 = vmax.f32 %v3338_v24, %v3376_v29  ;;  %5957 = vmatprep.mubr.msk.f32.mxu1 %vm3513_vm3, %v3481_v53  ;;  %v3051_v28 = vmax.f32 %v2873_v50, %v2947_v26  ;;  %v3235_v27 = vsel %vm1474_vm6, %v3233_v52, %v3234_v40  ;;  %v3092_v34 = vrot.slane %v2889_v38, 2 }
 0x31d   : > { %v3379_v35 = vsel %vm432_vm0, %v3377_v16, %v3378_v7  ;;  %v2949_v37 = vsel %vm1184_vm4, %v2946_v4, %v2948_v36  ;;  %v3236_v49 = vrot.slane %v2889_v38, 3  ;;  %v3380_v6 = vrot.slane %v2889_v38, 4  ;;  %v9041_v36 = vpop.f32.mrb[48].mxu0 }
 0x31e   : > { %5958 = vmatmul.mubr.msk.f32.gmra.mrb[18].mxu1 %vm3513_vm3, %v3482_v5  ;;  %v2722_v30 = vmax.f32 %v2696_v46, %v8646_v25  ;;  %v3195_v56 = vmax.f32 %v3051_v28, %v3091_v12  ;;  %v3052_v29 = vmax.f32 %v2783_v15, %v2949_v37  ;;  %v3093_v2 = vsel %vm1329_vm5, %v3090_v8, %v3092_v34  ;;  %v9044_v37 = vpop.f32.mrb[49].mxu0 }
 0x31f   : > { %v2784_v24 = vrot.slane %v2721_v63, 6  ;;  %v3237_v50 = vsel %vm1474_vm6, %v3234_v40, %v3236_v49  ;;  %v3381_v1 = vsel %vm432_vm0, %v3378_v7, %v3380_v6  ;;  %v9858_v52 = vmax.f32 %v8503_v19, %v8551_v9 }
 0x320   : > { %v2785_v10 = vrot.slane %v2722_v30, 6  ;;  %v3339_v4 = vmax.f32 %v3195_v56, %v3235_v27  ;;  %v3196_v16 = vmax.f32 %v3052_v29, %v3093_v2  ;;  %v2698_v46 = vmax.f32 %v8606_v20, %v8646_v25  ;;  %v9049_v30 = vpop.f32.mrb[50].mxu0 }
 0x321   : > { %v2669_v53 = vmax.f32 %v9858_v52, %v8602_v17  ;;  %v2874_v38 = vsel %vm1023_vm2, -inf, %v2784_v24 }
 0x322   : > { %v2786_v15 = vsel %vm1023_vm2, %v2784_v24, %v2785_v10  ;;  %v2950_v63 = vrot.slane %v2874_v38, 1  ;;  %v3094_v8 = vrot.slane %v2874_v38, 2  ;;  %v3238_v40 = vrot.slane %v2874_v38, 3 }
 0x323   : > { %v3483_v5 = vmax.f32 %v3339_v4, %v3379_v35  ;;  %v3340_v7 = vmax.f32 %v3196_v16, %v3237_v50  ;;  %v2951_v26 = vrot.slane %v2786_v15, 1  ;;  %v3095_v12 = vrot.slane %v2786_v15, 2  ;;  %v9053_v50 = vpop.f32.mrb[51].mxu0 }
 0x324   : > { %v3239_v19 = vrot.slane %v2786_v15, 3  ;;  %v3382_v28 = vrot.slane %v2874_v38, 4  ;;  %v3383_v27 = vrot.slane %v2786_v15, 4  ;;  %v2890_v34 = vsel %vm1023_vm2, %v2785_v10, -inf  ;;  %v9058_v16 = vpop.f32.mrb[52].mxu0 }
 0x325   : > { %5960 = vmatprep.mubr.msk.f32.mxu1 %vm3513_vm3, %v3483_v5  ;;  %v3484_v20 = vmax.f32 %v3340_v7, %v3381_v1  ;;  %v2952_v49 = vsel %vm1184_vm4, %v2950_v63, %v2951_v26  ;;  %v3096_v6 = vsel %vm1329_vm5, %v3094_v8, %v3095_v12  ;;  %v2953_v35 = vrot.slane %v2890_v34, 1  ;;  %v9062_v5 = vpop.f32.mrb[53].mxu0 }
 0x326   : > { %v3053_v56 = vmax.f32 %v2874_v38, %v2952_v49  ;;  %v3240_v29 = vsel %vm1474_vm6, %v3238_v40, %v3239_v19  ;;  %v3384_v2 = vsel %vm432_vm0, %v3382_v28, %v3383_v27  ;;  %v3097_v24 = vrot.slane %v2890_v34, 2 }
 0x327   : > { %5961 = vmatmul.mubr.msk.f32.gmra.mrb[20].mxu1 %vm3513_vm3, %v3484_v20  ;;  %v2954_v10 = vsel %vm1184_vm4, %v2951_v26, %v2953_v35  ;;  %v3241_v1 = vrot.slane %v2890_v34, 3  ;;  %v3385_v52 = vrot.slane %v2890_v34, 4  ;;  %v2697_v4 = vmax.f32 %v2669_v53, %v8632_v59  ;;  %v9069_v53 = vpop.f32.mrb[54].mxu0 }
 0x328   : > { %v3197_v63 = vmax.f32 %v3053_v56, %v3096_v6  ;;  %v3054_v8 = vmax.f32 %v2786_v15, %v2954_v10  ;;  %v3098_v38 = vsel %vm1329_vm5, %v3095_v12, %v3097_v24  ;;  %v2724_v40 = vmax.f32 %v2698_v46, %v8665_v23  ;;  %9859 = vst [vmem:[#allocation22_spill] sm:$0xff] %v9069_v53  ;;  %v9075_v6 = vpop.f32.mrb[55].mxu0 }
 0x329   : > { %v3242_v7 = vsel %vm1474_vm6, %v3239_v19, %v3241_v1  ;;  %v3386_v28 = vsel %vm432_vm0, %v3383_v27, %v3385_v52  ;;  %v2723_v26 = vmax.f32 %v2697_v4, %v8663_v42  ;;  %v2643_v34 = vmax.f32 %v8551_v9, %v8602_v17  ;;  %9861 = vst [vmem:[#allocation23_spill] sm:$0xff] %v9075_v6  ;;  %v9082_v56 = vpop.f32.mrb[56].mxu0 }
 0x32a   : > { %v3341_v20 = vmax.f32 %v3197_v63, %v3240_v29  ;;  %v3198_v49 = vmax.f32 %v3054_v8, %v3098_v38  ;;  %v2788_v15 = vrot.slane %v2724_v40, 6  ;;  %v9860_v46 = vmax.f32 %v8580_v41, %v8301_v31  ;;  %9862 = vst [vmem:[#allocation16_spill] sm:$0xff] %v9082_v56  ;;  %v9086_v1 = vpop.f32.mrb[57].mxu0 }
 0x32b   : > { %v2787_v19 = vrot.slane %v2723_v26, 6  ;;  %v2671_v27 = vmax.f32 %v2643_v34, %v8632_v59  ;;  %v2645_v35 = vmax.f32 %v8602_v17, %v8632_v59  ;;  %v2646_v9 = vmax.f32 %v8301_v31, %v8646_v25  ;;  %9863 = vst [vmem:[#allocation25_spill] sm:$0xff] %v9086_v1  ;;  %v9090_v17 = vpop.f32.mrb[58].mxu0 }
 0x32c   : > { %v2672_v12 = vmax.f32 %v9860_v46, %v8646_v25  ;;  %v3485_v29 = vmax.f32 %v3341_v20, %v3384_v2  ;;  %v3342_v24 = vmax.f32 %v3198_v49, %v3242_v7  ;;  %v2891_v10 = vsel %vm1023_vm2, %v2788_v15, -inf  ;;  %9864 = vst [vmem:[#allocation20_spill] sm:$0xff] %v9090_v17  ;;  %v9093_v7 = vpop.f32.mrb[59].mxu0 }
 0x32d   : > { %v2789_v52 = vsel %vm1023_vm2, %v2787_v19, %v2788_v15  ;;  %v2875_v4 = vsel %vm1023_vm2, -inf, %v2787_v19  ;;  %v2958_v63 = vrot.slane %v2891_v10, 1  ;;  %v3102_v8 = vrot.slane %v2891_v10, 2  ;;  %9865 = vst [vmem:[#allocation27_spill] sm:$0xff] %v9093_v7  ;;  %v9095_v46 = vpop.f32.mrb[60].mxu0 }
 0x32e   : > { %v2700_v41 = vmax.f32 %v2672_v12, %v8665_v23  ;;  %5963 = vmatprep.mubr.msk.f32.mxu1 %vm3513_vm3, %v3485_v29  ;;  %v3486_v31 = vmax.f32 %v3342_v24, %v3386_v28  ;;  %v2955_v38 = vrot.slane %v2875_v4, 1  ;;  %v2956_v2 = vrot.slane %v2789_v52, 1  ;;  %9866 = vst [vmem:[#allocation17_spill] sm:$0xff] %v9095_v46  ;;  %v9100_v28 = vpop.f32.mrb[61].mxu0 }
 0x32f   : > { %v3099_v40 = vrot.slane %v2875_v4, 2  ;;  %v3100_v26 = vrot.slane %v2789_v52, 2  ;;  %v3243_v34 = vrot.slane %v2875_v4, 3  ;;  %v3244_v20 = vrot.slane %v2789_v52, 3  ;;  %v9104_v56 = vpop.f32.mrb[62].mxu0 }
 0x330   : > { %v3387_v49 = vrot.slane %v2875_v4, 4  ;;  %5964 = vmatmul.mubr.msk.f32.gmra.mrb[22].mxu1 %vm3513_vm3, %v3486_v31  ;;  %v2957_v15 = vsel %vm1184_vm4, %v2955_v38, %v2956_v2  ;;  %v3388_v12 = vrot.slane %v2789_v52, 4  ;;  %v2959_v19 = vsel %vm1184_vm4, %v2956_v2, %v2958_v63  ;;  %9867 = vst [vmem:[#allocation26_spill] sm:$0xff] %v9104_v56  ;;  %v9109_v53 = vpop.f32.mrb[63].mxu0 }
 0x331   : > { %v3246_v29 = vrot.slane %v2891_v10, 3  ;;  %v3055_v24 = vmax.f32 %v2875_v4, %v2957_v15  ;;  %v3101_v17 = vsel %vm1329_vm5, %v3099_v40, %v3100_v26  ;;  %v3245_v7 = vsel %vm1474_vm6, %v3243_v34, %v3244_v20  ;;  %9868 = vst [vmem:[#allocation28_spill] sm:$0xff] %v9109_v53  ;;  %v9113_v15 = vpop.f32.mrb[32].mxu0 }
 0x332   : > { %v3056_v1 = vmax.f32 %v2789_v52, %v2959_v19  ;;  %v3389_v46 = vsel %vm432_vm0, %v3387_v49, %v3388_v12  ;;  %v3103_v31 = vsel %vm1329_vm5, %v3100_v26, %v3102_v8  ;;  %v3390_v6 = vrot.slane %v2891_v10, 4  ;;  %9869 = vst [vmem:[#allocation24_spill] sm:$0xff] %v9113_v15  ;;  %v9120_v10 = vpop.f32.mrb[33].mxu0 }
 0x333   : > { %v3247_v38 = vsel %vm1474_vm6, %v3244_v20, %v3246_v29  ;;  %v3199_v63 = vmax.f32 %v3055_v24, %v3101_v17  ;;  %v2699_v4 = vmax.f32 %v2671_v27, %v8663_v42  ;;  %v2726_v40 = vmax.f32 %v2700_v41, %v8705_v58  ;;  %9870 = vst [vmem:[#allocation18_spill] sm:$0xff] %v9120_v10  ;;  %v9123_v20 = vpop.f32.mrb[34].mxu0 }
 0x334   : > { %v3200_v2 = vmax.f32 %v3056_v1, %v3103_v31  ;;  %v3391_v52 = vsel %vm432_vm0, %v3388_v12, %v3390_v6  ;;  %v2673_v34 = vmax.f32 %v2645_v35, %v8663_v42  ;;  %v2674_v49 = vmax.f32 %v2646_v9, %v8665_v23  ;;  %9871 = vst [vmem:[#allocation19_spill] sm:$0xff] %v9123_v20 }
 0x335   : > { %v2647_v8 = vmax.f32 %v8632_v59, %v8663_v42  ;;  %v3343_v26 = vmax.f32 %v3199_v63, %v3245_v7  ;;  %v2725_v1 = vmax.f32 %v2699_v4, %v8688_v18  ;;  %v2791_v27 = vrot.slane %v2726_v40, 6  ;;  %v9132_v59 = vpop.f32.mrb[35].mxu0 }
 0x336   : > { %v3344_v17 = vmax.f32 %v3200_v2, %v3247_v38  ;;  %v2701_v41 = vmax.f32 %v2673_v34, %v8688_v18  ;;  %v2702_v6 = vmax.f32 %v2674_v49, %v8705_v58  ;;  %v2648_v35 = vmax.f32 %v8646_v25, %v8665_v23  ;;  %9872 = vst [vmem:[#allocation29_spill] sm:$0xff] %v9132_v59  ;;  %v9135_v24 = vpop.f32.mrb[36].mxu0 }
 0x337   : > { %v9130_v9 = vmax.f32 %v2647_v8, %v8688_v18  ;;  %v3487_v12 = vmax.f32 %v3343_v26, %v3389_v46  ;;  %v2790_v19 = vrot.slane %v2725_v1, 6  ;;  %v2892_v29 = vsel %vm1023_vm2, %v2791_v27, -inf  ;;  %9873 = vst [vmem:[#allocation30_spill] sm:$0xff] %v9135_v24  ;;  %v9137_v4 = vpop.f32.mrb[37].mxu0 }
 0x338   : > { %v3488_v7 = vmax.f32 %v3344_v17, %v3391_v52  ;;  %v2963_v31 = vrot.slane %v2892_v29, 1  ;;  %v3107_v38 = vrot.slane %v2892_v29, 2  ;;  %v3251_v63 = vrot.slane %v2892_v29, 3  ;;  %9874 = vst [vmem:[#allocation31_spill] sm:$0xff] %v9137_v4  ;;  %v9144_v34 = vpop.f32.mrb[38].mxu0 }
 0x339   : > { %v3395_v2 = vrot.slane %v2892_v29, 4  ;;  %5966 = vmatprep.mubr.msk.f32.mxu1 %vm3513_vm3, %v3487_v12  ;;  %v2792_v25 = vsel %vm1023_vm2, %v2790_v19, %v2791_v27  ;;  %v2876_v40 = vsel %vm1023_vm2, -inf, %v2790_v19  ;;  %v2727_v46 = vmax.f32 %v2701_v41, %v8720_v61  ;;  %9875 = vst [vmem:[#allocation32_spill] sm:$0xff] %v9144_v34  ;;  %v9147_v1 = vpop.f32.mrb[39].mxu0 }
 0x33a   : > { %v2728_v52 = vmax.f32 %v2702_v6, %v8723_v60  ;;  %5967 = vmatmul.mubr.msk.f32.gmra.mrb[24].mxu1 %vm3513_vm3, %v3488_v7  ;;  %v2960_v49 = vrot.slane %v2876_v40, 1  ;;  %v2961_v8 = vrot.slane %v2792_v25, 1  ;;  %v3104_v26 = vrot.slane %v2876_v40, 2  ;;  %9876 = vst [vmem:[#allocation33_spill] sm:$0xff] %v9147_v1  ;;  %v9149_v24 = vpop.f32.mrb[40].mxu0 }
 0x33b   : > { %v3105_v17 = vrot.slane %v2792_v25, 2  ;;  %v3248_v29 = vrot.slane %v2876_v40, 3  ;;  %v3249_v12 = vrot.slane %v2792_v25, 3  ;;  %v3392_v4 = vrot.slane %v2876_v40, 4  ;;  %9877 = vst [vmem:[#allocation34_spill] sm:$0xff] %v9149_v24  ;;  %v9155_v34 = vpop.f32.mrb[41].mxu0 }
 0x33c   : > { %v3393_v27 = vrot.slane %v2792_v25, 4  ;;  %v2962_v41 = vsel %vm1184_vm4, %v2960_v49, %v2961_v8  ;;  %v2964_v19 = vsel %vm1184_vm4, %v2961_v8, %v2963_v31  ;;  %v9159_v15 = vpop.f32.mrb[42].mxu0  ;;  %v2793_v53 = vrot.slane %v2727_v46, 6 }
 0x33d   : > { %v3106_v6 = vsel %vm1329_vm5, %v3104_v26, %v3105_v17  ;;  %v3108_v7 = vsel %vm1329_vm5, %v3105_v17, %v3107_v38  ;;  %v3057_v59 = vmax.f32 %v2876_v40, %v2962_v41  ;;  %v3250_v20 = vsel %vm1474_vm6, %v3248_v29, %v3249_v12  ;;  %v9163_v56 = vpop.f32.mrb[43].mxu0 }
 0x33e   : > { %v3394_v1 = vsel %vm432_vm0, %v3392_v4, %v3393_v27  ;;  %v3058_v10 = vmax.f32 %v2792_v25, %v2964_v19  ;;  %v3252_v24 = vsel %vm1474_vm6, %v3249_v12, %v3251_v63  ;;  %v3396_v49 = vsel %vm432_vm0, %v3393_v27, %v3395_v2  ;;  %v9168_v17 = vpop.f32.mrb[44].mxu0 }
 0x33f   : > { %v2794_v26 = vrot.slane %v2728_v52, 6  ;;  %v3201_v31 = vmax.f32 %v3057_v59, %v3106_v6  ;;  %v2676_v8 = vmax.f32 %v2648_v35, %v8705_v58  ;;  %v2703_v40 = vmax.f32 %v9130_v9, %v8720_v61  ;;  %9878 = vst [vmem:[#allocation35_spill] sm:$0xff] %v9168_v17  ;;  %v9175_v46 = vpop.f32.mrb[45].mxu0 }
 0x340   : > { %v3202_v38 = vmax.f32 %v3058_v10, %v3108_v7  ;;  %v2877_v25 = vsel %vm1023_vm2, -inf, %v2793_v53  ;;  %v2649_v2 = vmax.f32 %v8663_v42, %v8688_v18  ;;  %9879 = vst [vmem:[#allocation36_spill] sm:$0xff] %v9175_v46 }
 0x341   : > { %v2795_v4 = vsel %vm1023_vm2, %v2793_v53, %v2794_v26  ;;  %v2893_v63 = vsel %vm1023_vm2, %v2794_v26, -inf  ;;  %v3345_v59 = vmax.f32 %v3201_v31, %v3250_v20  ;;  %v2965_v52 = vrot.slane %v2877_v25, 1 }
 0x342   : > { %v3346_v10 = vmax.f32 %v3202_v38, %v3252_v24  ;;  %v2966_v35 = vrot.slane %v2795_v4, 1  ;;  %v3109_v29 = vrot.slane %v2877_v25, 2  ;;  %v3110_v12 = vrot.slane %v2795_v4, 2 }
 0x343   : > { %v3253_v9 = vrot.slane %v2877_v25, 3  ;;  %v3254_v27 = vrot.slane %v2795_v4, 3  ;;  %v3489_v41 = vmax.f32 %v3345_v59, %v3394_v1  ;;  %v3397_v53 = vrot.slane %v2877_v25, 4 }
 0x344   : > { %v3490_v6 = vmax.f32 %v3346_v10, %v3396_v49  ;;  %v2967_v19 = vsel %vm1184_vm4, %v2965_v52, %v2966_v35  ;;  %v3111_v26 = vsel %vm1329_vm5, %v3109_v29, %v3110_v12  ;;  %v3398_v17 = vrot.slane %v2795_v4, 4 }
 0x345   : > { %v3059_v7 = vmax.f32 %v2877_v25, %v2967_v19  ;;  %v3255_v42 = vsel %vm1474_vm6, %v3253_v9, %v3254_v27  ;;  %5969 = vmatprep.mubr.msk.f32.mxu1 %vm3513_vm3, %v3489_v41  ;;  %v2968_v20 = vrot.slane %v2893_v63, 1  ;;  %v3112_v24 = vrot.slane %v2893_v63, 2 }
 0x346   : > { %v3256_v31 = vrot.slane %v2893_v63, 3  ;;  %v3400_v38 = vrot.slane %v2893_v63, 4  ;;  %5970 = vmatmul.mubr.msk.f32.gmra.mrb[26].mxu1 %vm3513_vm3, %v3490_v6  ;;  %v3399_v1 = vsel %vm432_vm0, %v3397_v53, %v3398_v17  ;;  %v2704_v49 = vmax.f32 %v2676_v8, %v8723_v60 }
 0x347   : > { %v3203_v46 = vmax.f32 %v3059_v7, %v3111_v26  ;;  %v2729_v25 = vmax.f32 %v2703_v40, %v8740_v14  ;;  %v2969_v59 = vsel %vm1184_vm4, %v2966_v35, %v2968_v20  ;;  %v3113_v10 = vsel %vm1329_vm5, %v3110_v12, %v3112_v24 }
 0x348   : > { %v3257_v52 = vsel %vm1474_vm6, %v3254_v27, %v3256_v31  ;;  %v3401_v29 = vsel %vm432_vm0, %v3398_v17, %v3400_v38  ;;  %v3060_v41 = vmax.f32 %v2795_v4, %v2969_v59  ;;  %v2730_v63 = vmax.f32 %v2704_v49, %v8752_v33 }
 0x349   : > { %v3347_v9 = vmax.f32 %v3203_v46, %v3255_v42  ;;  %v2796_v6 = vrot.slane %v2729_v25, 6  ;;  %v2650_v19 = vmax.f32 %v8665_v23, %v8705_v58  ;;  %v2677_v8 = vmax.f32 %v2649_v2, %v8720_v61 }
 0x34a   : > { %v2651_v40 = vmax.f32 %v8688_v18, %v8720_v61  ;;  %v2652_v35 = vmax.f32 %v8705_v58, %v8723_v60  ;;  %v3204_v27 = vmax.f32 %v3060_v41, %v3113_v10  ;;  %v2797_v53 = vrot.slane %v2730_v63, 6 }
 0x34b   : > { %v3491_v12 = vmax.f32 %v3347_v9, %v3399_v1  ;;  %v2878_v17 = vsel %vm1023_vm2, -inf, %v2796_v6  ;;  %v2678_v18 = vmax.f32 %v2650_v19, %v8723_v60 }
 0x34c   : > { %v2970_v4 = vrot.slane %v2878_v17, 1  ;;  %v3114_v46 = vrot.slane %v2878_v17, 2  ;;  %v3258_v7 = vrot.slane %v2878_v17, 3  ;;  %v3402_v26 = vrot.slane %v2878_v17, 4 }
 0x34d   : > { %5972 = vmatprep.mubr.msk.f32.mxu1 %vm3513_vm3, %v3491_v12  ;;  %v3348_v23 = vmax.f32 %v3204_v27, %v3257_v52  ;;  %v2798_v2 = vsel %vm1023_vm2, %v2796_v6, %v2797_v53  ;;  %v2894_v42 = vsel %vm1023_vm2, %v2797_v53, -inf  ;;  %v2705_v27 = vmax.f32 %v2677_v8, %v8740_v14 }
 0x34e   : > { %v2971_v20 = vrot.slane %v2798_v2, 1  ;;  %v3115_v58 = vrot.slane %v2798_v2, 2  ;;  %v3259_v24 = vrot.slane %v2798_v2, 3  ;;  %v3403_v31 = vrot.slane %v2798_v2, 4 }
 0x34f   : > { %v3492_v38 = vmax.f32 %v3348_v23, %v3401_v29  ;;  %v2973_v1 = vrot.slane %v2894_v42, 1  ;;  %v3117_v49 = vrot.slane %v2894_v42, 2  ;;  %v3261_v25 = vrot.slane %v2894_v42, 3 }
 0x350   : > { %v2972_v59 = vsel %vm1184_vm4, %v2970_v4, %v2971_v20  ;;  %v3116_v10 = vsel %vm1329_vm5, %v3114_v46, %v3115_v58  ;;  %v3260_v52 = vsel %vm1474_vm6, %v3258_v7, %v3259_v24  ;;  %v3404_v9 = vsel %vm432_vm0, %v3402_v26, %v3403_v31 }
 0x351   : > { %5973 = vmatmul.mubr.msk.f32.gmra.mrb[28].mxu1 %vm3513_vm3, %v3492_v38  ;;  %v3061_v41 = vmax.f32 %v2878_v17, %v2972_v59  ;;  %v2974_v63 = vsel %vm1184_vm4, %v2971_v20, %v2973_v1  ;;  %v3118_v6 = vsel %vm1329_vm5, %v3115_v58, %v3117_v49  ;;  %v3262_v29 = vsel %vm1474_vm6, %v3259_v24, %v3261_v25 }
 0x352   : > { %v3062_v19 = vmax.f32 %v2798_v2, %v2974_v63  ;;  %v3405_v12 = vrot.slane %v2894_v42, 4  ;;  %v2706_v53 = vmax.f32 %v2678_v18, %v8752_v33  ;;  %v2679_v46 = vmax.f32 %v2651_v40, %v8740_v14 }
 0x353   : > { %v3205_v4 = vmax.f32 %v3061_v41, %v3116_v10  ;;  %v2680_v7 = vmax.f32 %v2652_v35, %v8752_v33  ;;  %v2653_v17 = vmax.f32 %v8720_v61, %v8740_v14  ;;  %v2731_v20 = vmax.f32 %v2705_v27, %v8772_v13 }
 0x354   : > { %v3206_v26 = vmax.f32 %v3062_v19, %v3118_v6  ;;  %v3406_v23 = vsel %vm432_vm0, %v3403_v31, %v3405_v12  ;;  %v2732_v2 = vmax.f32 %v2706_v53, %v8782_v3  ;;  %v2707_v8 = vmax.f32 %v2679_v46, %v8772_v13 }
 0x355   : > { %v3349_v42 = vmax.f32 %v3205_v4, %v3260_v52  ;;  %v2708_v18 = vmax.f32 %v2680_v7, %v8782_v3  ;;  %v2654_v40 = vmax.f32 %v8723_v60, %v8752_v33  ;;  %v2799_v35 = vrot.slane %v2731_v20, 6 }
 0x356   : > { %v3350_v58 = vmax.f32 %v3206_v26, %v3262_v29  ;;  %v2800_v24 = vrot.slane %v2732_v2, 6  ;;  %v9224_v61 = vmax.f32 %v2653_v17, %v8772_v13  ;;  %v2733_v31 = vmax.f32 %v2707_v8, %v8804_v51 }
 0x357   : > { %v3493_v38 = vmax.f32 %v3349_v42, %v3404_v9  ;;  %v2734_v1 = vmax.f32 %v2708_v18, %v8810_v45  ;;  %v9229_v49 = vmax.f32 %v2654_v40, %v8782_v3  ;;  %v2879_v10 = vsel %vm1023_vm2, -inf, %v2799_v35 }
 0x358   : > { %v3494_v25 = vmax.f32 %v3350_v58, %v3406_v23  ;;  %v2801_v59 = vsel %vm1023_vm2, %v2799_v35, %v2800_v24  ;;  %v2895_v60 = vsel %vm1023_vm2, %v2800_v24, -inf  ;;  %v2975_v52 = vrot.slane %v2879_v10, 1 }
 0x359   : > { %5975 = vmatprep.mubr.msk.f32.mxu1 %vm3513_vm3, %v3493_v38  ;;  %v2976_v41 = vrot.slane %v2801_v59, 1  ;;  %v3119_v63 = vrot.slane %v2879_v10, 2  ;;  %v3120_v9 = vrot.slane %v2801_v59, 2  ;;  %v3263_v6 = vrot.slane %v2879_v10, 3 }
 0x35a   : > { %5976 = vmatmul.mubr.msk.f32.gmra.mrb[30].mxu1 %vm3513_vm3, %v3494_v25  ;;  %v3264_v29 = vrot.slane %v2801_v59, 3  ;;  %v3407_v19 = vrot.slane %v2879_v10, 4  ;;  %v3408_v12 = vrot.slane %v2801_v59, 4  ;;  %v2978_v4 = vrot.slane %v2895_v60, 1 }
 0x35b   : > { %v2977_v27 = vsel %vm1184_vm4, %v2975_v52, %v2976_v41  ;;  %v3121_v53 = vsel %vm1329_vm5, %v3119_v63, %v3120_v9  ;;  %v3122_v46 = vrot.slane %v2895_v60, 2  ;;  %v3266_v23 = vrot.slane %v2895_v60, 3  ;;  %v9249_v52 = vpop.f32.mrb[46].mxu0 }
 0x35c   : > { %v3063_v7 = vmax.f32 %v2879_v10, %v2977_v27  ;;  %v3265_v17 = vsel %vm1474_vm6, %v3263_v6, %v3264_v29  ;;  %v3409_v26 = vsel %vm432_vm0, %v3407_v19, %v3408_v12  ;;  %v2979_v20 = vsel %vm1184_vm4, %v2976_v41, %v2978_v4  ;;  %v9252_v63 = vpop.f32.mrb[47].mxu0 }
 0x35d   : > { %v3123_v2 = vsel %vm1329_vm5, %v3120_v9, %v3122_v46  ;;  %v3410_v42 = vrot.slane %v2895_v60, 4  ;;  %v2802_v8 = vrot.slane %v2733_v31, 6  ;;  %v3064_v40 = vmax.f32 %v2801_v59, %v2979_v20 }
 0x35e   : > { %v3207_v18 = vmax.f32 %v3063_v7, %v3121_v53  ;;  %v3267_v58 = vsel %vm1474_vm6, %v3264_v29, %v3266_v23  ;;  %v2803_v35 = vrot.slane %v2734_v1, 6  ;;  %v2709_v25 = vmax.f32 %v9224_v61, %v8804_v51 }
 0x35f   : > { %v3411_v24 = vsel %vm432_vm0, %v3408_v12, %v3410_v42  ;;  %v2880_v38 = vsel %vm1023_vm2, -inf, %v2802_v8  ;;  %v2710_v10 = vmax.f32 %v9229_v49, %v8810_v45  ;;  %v3208_v60 = vmax.f32 %v3064_v40, %v3123_v2 }
 0x360   : > { %v3351_v41 = vmax.f32 %v3207_v18, %v3265_v17  ;;  %v2804_v31 = vsel %vm1023_vm2, %v2802_v8, %v2803_v35  ;;  %v2980_v59 = vrot.slane %v2880_v38, 1  ;;  %v3124_v9 = vrot.slane %v2880_v38, 2 }
 0x361   : > { %v2981_v1 = vrot.slane %v2804_v31, 1  ;;  %v3125_v6 = vrot.slane %v2804_v31, 2  ;;  %v3268_v29 = vrot.slane %v2880_v38, 3  ;;  %v3352_v12 = vmax.f32 %v3208_v60, %v3267_v58 }
 0x362   : > { %v3495_v19 = vmax.f32 %v3351_v41, %v3409_v26  ;;  %v3269_v27 = vrot.slane %v2804_v31, 3  ;;  %v3412_v61 = vrot.slane %v2880_v38, 4  ;;  %v3413_v4 = vrot.slane %v2804_v31, 4 }
 0x363   : > { %v2982_v53 = vsel %vm1184_vm4, %v2980_v59, %v2981_v1  ;;  %v3126_v49 = vsel %vm1329_vm5, %v3124_v9, %v3125_v6  ;;  %v2896_v46 = vsel %vm1023_vm2, %v2803_v35, -inf  ;;  %v3496_v7 = vmax.f32 %v3352_v12, %v3411_v24 }
 0x364   : > { %5978 = vmatprep.mubr.msk.f32.mxu1 %vm3513_vm3, %v3495_v19  ;;  %v3065_v17 = vmax.f32 %v2880_v38, %v2982_v53  ;;  %v3270_v23 = vsel %vm1474_vm6, %v3268_v29, %v3269_v27  ;;  %v2983_v20 = vrot.slane %v2896_v46, 1  ;;  %v3414_v2 = vsel %vm432_vm0, %v3412_v61, %v3413_v4 }
 0x365   : > { %v3127_v26 = vrot.slane %v2896_v46, 2  ;;  %v3271_v42 = vrot.slane %v2896_v46, 3  ;;  %v3415_v8 = vrot.slane %v2896_v46, 4  ;;  %5979 = vmatmul.mubr.msk.f32.gmra.mrb[0].mxu1 %vm3513_vm3, %v3496_v7  ;;  %v2735_v58 = vmax.f32 %v2709_v25, %v8818_v21 }
 0x366   : > { %v3209_v18 = vmax.f32 %v3065_v17, %v3126_v49  ;;  %v2984_v40 = vsel %vm1184_vm4, %v2981_v1, %v2983_v20  ;;  %v2736_v35 = vmax.f32 %v2710_v10, %v8860_v44  ;;  %v2655_v19 = vmax.f32 %v8740_v14, %v8772_v13 }
 0x367   : > { %v3066_v41 = vmax.f32 %v2804_v31, %v2984_v40  ;;  %v3128_v24 = vsel %vm1329_vm5, %v3125_v6, %v3127_v26  ;;  %v3272_v38 = vsel %vm1474_vm6, %v3269_v27, %v3271_v42  ;;  %v3416_v60 = vsel %vm432_vm0, %v3413_v4, %v3415_v8 }
 0x368   : > { %v3353_v59 = vmax.f32 %v3209_v18, %v3270_v23  ;;  %v2805_v9 = vrot.slane %v2735_v58, 6  ;;  %v2806_v29 = vrot.slane %v2736_v35, 6  ;;  %v2656_v1 = vmax.f32 %v8752_v33, %v8782_v3 }
 0x369   : > { %v3210_v12 = vmax.f32 %v3066_v41, %v3128_v24  ;;  %v2657_v25 = vmax.f32 %v8772_v13, %v8804_v51  ;;  %v2658_v10 = vmax.f32 %v8782_v3, %v8810_v45 }
 0x36a   : > { %v3497_v31 = vmax.f32 %v3353_v59, %v3414_v2  ;;  %v2807_v6 = vsel %vm1023_vm2, %v2805_v9, %v2806_v29  ;;  %v2881_v27 = vsel %vm1023_vm2, -inf, %v2805_v9  ;;  %v2897_v61 = vsel %vm1023_vm2, %v2806_v29, -inf }
 0x36b   : > { %v3354_v53 = vmax.f32 %v3210_v12, %v3272_v38  ;;  %v2985_v49 = vrot.slane %v2881_v27, 1  ;;  %v2986_v14 = vrot.slane %v2807_v6, 1  ;;  %v3129_v4 = vrot.slane %v2881_v27, 2 }
 0x36c   : > { %5981 = vmatprep.mubr.msk.f32.mxu1 %vm3513_vm3, %v3497_v31  ;;  %v3130_v33 = vrot.slane %v2807_v6, 2  ;;  %v3273_v46 = vrot.slane %v2881_v27, 3  ;;  %v3274_v7 = vrot.slane %v2807_v6, 3  ;;  %v3417_v13 = vrot.slane %v2881_v27, 4 }
 0x36d   : > { %v3498_v17 = vmax.f32 %v3354_v53, %v3416_v60  ;;  %v2987_v3 = vsel %vm1184_vm4, %v2985_v49, %v2986_v14  ;;  %v3418_v23 = vrot.slane %v2807_v6, 4  ;;  %v2988_v20 = vrot.slane %v2897_v61, 1 }
 0x36e   : > { %v3067_v2 = vmax.f32 %v2881_v27, %v2987_v3  ;;  %v3131_v26 = vsel %vm1329_vm5, %v3129_v4, %v3130_v33  ;;  %v3275_v42 = vsel %vm1474_vm6, %v3273_v46, %v3274_v7  ;;  %v3132_v8 = vrot.slane %v2897_v61, 2 }
 0x36f   : > { %5982 = vmatmul.mubr.msk.f32.gmra.mrb[2].mxu1 %vm3513_vm3, %v3498_v17  ;;  %v3419_v18 = vsel %vm432_vm0, %v3417_v13, %v3418_v23  ;;  %v2989_v40 = vsel %vm1184_vm4, %v2986_v14, %v2988_v20  ;;  %v3276_v58 = vrot.slane %v2897_v61, 3  ;;  %v3420_v35 = vrot.slane %v2897_v61, 4 }
 0x370   : > { %v3211_v41 = vmax.f32 %v3067_v2, %v3131_v26  ;;  %v3068_v24 = vmax.f32 %v2807_v6, %v2989_v40  ;;  %v3133_v38 = vsel %vm1329_vm5, %v3130_v33, %v3132_v8  ;;  %v2683_v60 = vmax.f32 %v2655_v19, %v8804_v51 }
 0x371   : > { %v3277_v59 = vsel %vm1474_vm6, %v3274_v7, %v3276_v58  ;;  %v3421_v9 = vsel %vm432_vm0, %v3418_v23, %v3420_v35  ;;  %v2684_v29 = vmax.f32 %v2656_v1, %v8810_v45  ;;  %v2685_v12 = vmax.f32 %v2657_v25, %v8818_v21 }
 0x372   : > { %v3355_v31 = vmax.f32 %v3211_v41, %v3275_v42  ;;  %v3212_v27 = vmax.f32 %v3068_v24, %v3133_v38  ;;  %v2711_v53 = vmax.f32 %v2683_v60, %v8818_v21  ;;  %v2686_v61 = vmax.f32 %v2658_v10, %v8860_v44 }
 0x373   : > { %v2712_v6 = vmax.f32 %v2684_v29, %v8860_v44  ;;  %v2713_v49 = vmax.f32 %v2685_v12, %v8865_v57  ;;  %v9880_v51 = vrot.slane %v8981_v48, 6  ;;  %v9881_v19 = vrot.slane %v8946_v47, 6 }
 0x374   : > { %v3000_v45 = vrot.slane %v8966_v39, 1  ;;  %v3499_v1 = vmax.f32 %v3355_v31, %v3419_v18  ;;  %v3356_v25 = vmax.f32 %v3212_v27, %v3277_v59  ;;  %v2737_v4 = vmax.f32 %v2711_v53, %v8865_v57 }
 0x375   : > { %v9300_v14 = vsel %vm1023_vm2, %v9881_v19, %v9880_v51  ;;  %v2714_v21 = vmax.f32 %v2686_v61, %v8877_v32  ;;  %v2738_v10 = vmax.f32 %v2712_v6, %v8877_v32  ;;  %v2739_v44 = vmax.f32 %v2713_v49, %v8901_v0 }
 0x376   : > { %v3001_v33 = vrot.slane %v9300_v14, 1  ;;  %v3144_v46 = vrot.slane %v8966_v39, 2  ;;  %5984 = vmatprep.mubr.msk.f32.mxu1 %vm3513_vm3, %v3499_v1  ;;  %v3500_v47 = vmax.f32 %v3356_v25, %v3421_v9  ;;  %v2808_v7 = vrot.slane %v2737_v4, 6 }
 0x377   : > { %v2740_v13 = vmax.f32 %v2714_v21, %v8909_v22  ;;  %v3145_v17 = vrot.slane %v9300_v14, 2  ;;  %v2809_v3 = vrot.slane %v2738_v10, 6  ;;  %v2811_v57 = vrot.slane %v2739_v44, 6 }
 0x378   : > { %v9315_v32 = vsel %vm1184_vm4, %v3000_v45, %v3001_v33  ;;  %v3288_v0 = vrot.slane %v8966_v39, 3  ;;  %5985 = vmatmul.mubr.msk.f32.gmra.mrb[4].mxu1 %vm3513_vm3, %v3500_v47  ;;  %v2882_v23 = vsel %vm1023_vm2, -inf, %v2808_v7 }
 0x379   : > { %v2812_v20 = vrot.slane %v2740_v13, 6  ;;  %v3073_v2 = vmax.f32 %v8966_v39, %v9315_v32  ;;  %v3146_v22 = vsel %vm1329_vm5, %v3144_v46, %v3145_v17  ;;  %v2810_v26 = vsel %vm1023_vm2, %v2808_v7, %v2809_v3 }
 0x37a   : > { %v2990_v42 = vrot.slane %v2882_v23, 1  ;;  %v3134_v8 = vrot.slane %v2882_v23, 2  ;;  %v3278_v18 = vrot.slane %v2882_v23, 3  ;;  %v2991_v40 = vrot.slane %v2810_v26, 1 }
 0x37b   : > { %v3135_v58 = vrot.slane %v2810_v26, 2  ;;  %v3279_v35 = vrot.slane %v2810_v26, 3  ;;  %v3422_v41 = vrot.slane %v2882_v23, 4  ;;  %v3423_v24 = vrot.slane %v2810_v26, 4 }
 0x37c   : > { %v2898_v38 = vsel %vm1023_vm2, %v2809_v3, -inf  ;;  %v2813_v60 = vsel %vm1023_vm2, %v2811_v57, %v2812_v20  ;;  %v2883_v59 = vsel %vm1023_vm2, -inf, %v2811_v57  ;;  %v2992_v9 = vsel %vm1184_vm4, %v2990_v42, %v2991_v40 }
 0x37d   : > { %v3136_v29 = vsel %vm1329_vm5, %v3134_v8, %v3135_v58  ;;  %v3280_v12 = vsel %vm1474_vm6, %v3278_v18, %v3279_v35  ;;  %v2993_v31 = vrot.slane %v2898_v38, 1  ;;  %v3069_v27 = vmax.f32 %v2882_v23, %v2992_v9 }
 0x37e   : > { %v3424_v53 = vsel %vm432_vm0, %v3422_v41, %v3423_v24  ;;  %v3137_v61 = vrot.slane %v2898_v38, 2  ;;  %v3281_v6 = vrot.slane %v2898_v38, 3  ;;  %v3425_v51 = vrot.slane %v2898_v38, 4 }
 0x37f   : > { %v2994_v49 = vsel %vm1184_vm4, %v2991_v40, %v2993_v31  ;;  %v2995_v19 = vrot.slane %v2883_v59, 1  ;;  %v2996_v45 = vrot.slane %v2813_v60, 1  ;;  %v3213_v1 = vmax.f32 %v3069_v27, %v3136_v29 }
 0x380   : > { %v3070_v25 = vmax.f32 %v2810_v26, %v2994_v49  ;;  %v3138_v4 = vsel %vm1329_vm5, %v3135_v58, %v3137_v61  ;;  %v3282_v21 = vsel %vm1474_vm6, %v3279_v35, %v3281_v6  ;;  %v3426_v10 = vsel %vm432_vm0, %v3423_v24, %v3425_v51 }
 0x381   : > { %v2997_v44 = vsel %vm1184_vm4, %v2995_v19, %v2996_v45  ;;  %v3139_v46 = vrot.slane %v2883_v59, 2  ;;  %v3140_v47 = vrot.slane %v2813_v60, 2  ;;  %v3357_v7 = vmax.f32 %v3213_v1, %v3280_v12 }
 0x382   : > { %v3214_v13 = vmax.f32 %v3070_v25, %v3138_v4  ;;  %v3071_v3 = vmax.f32 %v2883_v59, %v2997_v44  ;;  %v3283_v57 = vrot.slane %v2883_v59, 3  ;;  %v3284_v23 = vrot.slane %v2813_v60, 3 }
 0x383   : > { %v3141_v32 = vsel %vm1329_vm5, %v3139_v46, %v3140_v47  ;;  %v3427_v42 = vrot.slane %v2883_v59, 4  ;;  %v3428_v8 = vrot.slane %v2813_v60, 4  ;;  %v3501_v26 = vmax.f32 %v3357_v7, %v3424_v53 }
 0x384   : > { %v3358_v18 = vmax.f32 %v3214_v13, %v3282_v21  ;;  %v3215_v40 = vmax.f32 %v3071_v3, %v3141_v32  ;;  %v2899_v58 = vsel %vm1023_vm2, %v2812_v20, -inf  ;;  %v3285_v35 = vsel %vm1474_vm6, %v3283_v57, %v3284_v23 }
 0x385   : > { %v3429_v41 = vsel %vm432_vm0, %v3427_v42, %v3428_v8  ;;  %v2998_v24 = vrot.slane %v2899_v58, 1  ;;  %v3142_v38 = vrot.slane %v2899_v58, 2  ;;  %5987 = vmatprep.mubr.msk.f32.mxu1 %vm3513_vm3, %v3501_v26  ;;  %v3286_v12 = vrot.slane %v2899_v58, 3 }
 0x386   : > { %v3502_v9 = vmax.f32 %v3358_v18, %v3426_v10  ;;  %v3359_v29 = vmax.f32 %v3215_v40, %v3285_v35  ;;  %v3430_v31 = vrot.slane %v2899_v58, 4  ;;  %v3217_v53 = vmax.f32 %v3073_v2, %v3146_v22 }
 0x387   : > { %v2999_v59 = vsel %vm1184_vm4, %v2996_v45, %v2998_v24  ;;  %v3143_v27 = vsel %vm1329_vm5, %v3140_v47, %v3142_v38  ;;  %v3289_v61 = vrot.slane %v9300_v14, 3  ;;  %v3287_v49 = vsel %vm1474_vm6, %v3284_v23, %v3286_v12 }
 0x388   : > { %5988 = vmatmul.mubr.msk.f32.gmra.mrb[6].mxu1 %vm3513_vm3, %v3502_v9  ;;  %v3503_v20 = vmax.f32 %v3359_v29, %v3429_v41  ;;  %v3072_v6 = vmax.f32 %v2813_v60, %v2999_v59  ;;  %v3431_v51 = vsel %vm432_vm0, %v3428_v8, %v3430_v31  ;;  %v3432_v1 = vrot.slane %v8966_v39, 4 }
 0x389   : > { %v3290_v19 = vsel %vm1474_vm6, %v3288_v0, %v3289_v61  ;;  %v3433_v45 = vrot.slane %v9300_v14, 4  ;;  %v9882_v2 = vrot.slane %v8981_v48, 6  ;;  %v2819_v39 = vsel %vm1023_vm2, %v8954_v55, %v8989_v54 }
 0x38a   : > { %5990 = vmatprep.mubr.msk.f32.mxu1 %vm3513_vm3, %v3503_v20  ;;  %v3216_v25 = vmax.f32 %v3072_v6, %v3143_v27  ;;  %v3361_v60 = vmax.f32 %v3217_v53, %v3290_v19  ;;  %v3005_v32 = vrot.slane %v8970_v62, 1  ;;  %v3006_v55 = vrot.slane %v2819_v39, 1 }
 0x38b   : > { %v2900_v22 = vsel %vm1023_vm2, %v9882_v2, -inf  ;;  %v3434_v10 = vsel %vm432_vm0, %v3432_v1, %v3433_v45  ;;  %v3149_v42 = vrot.slane %v8970_v62, 2  ;;  %v3150_v8 = vrot.slane %v2819_v39, 2 }
 0x38c   : > { %v3003_v4 = vrot.slane %v2900_v22, 1  ;;  %v3147_v21 = vrot.slane %v2900_v22, 2  ;;  %v3291_v44 = vrot.slane %v2900_v22, 3  ;;  %v3435_v46 = vrot.slane %v2900_v22, 4 }
 0x38d   : > { %v3360_v0 = vmax.f32 %v3216_v25, %v3287_v49  ;;  %v3505_v47 = vmax.f32 %v3361_v60, %v3434_v10  ;;  %v3294_v18 = vrot.slane %v2819_v39, 3  ;;  %v3437_v40 = vrot.slane %v8970_v62, 4  ;;  %v9397_v10 = vld [vmem:[#allocation10] ss:$0 sm:$0xff] }
 0x38e   : > { %v3004_v48 = vsel %vm1184_vm4, %v3001_v33, %v3003_v4  ;;  %v3148_v7 = vsel %vm1329_vm5, %v3145_v17, %v3147_v21  ;;  %v3292_v3 = vsel %vm1474_vm6, %v3289_v61, %v3291_v44  ;;  %v3436_v57 = vsel %vm432_vm0, %v3433_v45, %v3435_v46  ;;  %v9885_v45 = vld [vmem:[#allocation21_spill] sm:$0xff] }
 0x38f   : > { %v3074_v13 = vmax.f32 %v9300_v14, %v3004_v48  ;;  %v3504_v23 = vmax.f32 %v3360_v0, %v3431_v51  ;;  %v3293_v33 = vrot.slane %v8970_v62, 3  ;;  %v3007_v14 = vsel %vm1184_vm4, %v3005_v32, %v3006_v55 }
 0x390   : > { %v3151_v17 = vsel %vm1329_vm5, %v3149_v42, %v3150_v8  ;;  %v3438_v58 = vrot.slane %v2819_v39, 4  ;;  %v2901_v35 = vsel %vm1023_vm2, %v8989_v54, -inf  ;;  %v3075_v24 = vmax.f32 %v8970_v62, %v3007_v14 }
 0x391   : > { %v3218_v26 = vmax.f32 %v3074_v13, %v3148_v7  ;;  %5991 = vmatmul.mubr.msk.f32.gmra.mrb[8].mxu1 %vm3513_vm3, %v3504_v23  ;;  %v3295_v38 = vsel %vm1474_vm6, %v3293_v33, %v3294_v18  ;;  %v3008_v9 = vrot.slane %v2901_v35, 1  ;;  %v3152_v12 = vrot.slane %v2901_v35, 2 }
 0x392   : > { %5993 = vmatprep.mubr.msk.f32.mxu1 %vm3513_vm3, %v3505_v47  ;;  %v3439_v29 = vsel %vm432_vm0, %v3437_v40, %v3438_v58  ;;  %v3296_v31 = vrot.slane %v2901_v35, 3  ;;  %v3440_v59 = vrot.slane %v2901_v35, 4  ;;  %v3219_v53 = vmax.f32 %v3075_v24, %v3151_v17 }
 0x393   : > { %v3362_v41 = vmax.f32 %v3218_v26, %v3292_v3  ;;  %v3009_v61 = vsel %vm1184_vm4, %v3006_v55, %v3008_v9  ;;  %v9883_v20 = vrot.slane %v8979_v11, 6  ;;  %v9884_v54 = vrot.slane %v8944_v43, 6 }
 0x394   : > { %v3076_v49 = vmax.f32 %v2819_v39, %v3009_v61  ;;  %v3153_v62 = vsel %vm1329_vm5, %v3150_v8, %v3152_v12  ;;  %v3297_v51 = vsel %vm1474_vm6, %v3294_v18, %v3296_v31  ;;  %v3441_v19 = vsel %vm432_vm0, %v3438_v58, %v3440_v59 }
 0x395   : > { %v3506_v27 = vmax.f32 %v3362_v41, %v3436_v57  ;;  %v2822_v6 = vsel %vm1023_vm2, %v9884_v54, %v9883_v20  ;;  %v3363_v1 = vmax.f32 %v3219_v53, %v3295_v38  ;;  %v3010_v2 = vrot.slane %v9885_v45, 1  ;;  %v9887_v38 = vld [vmem:[#allocation22_spill] sm:$0xff] }
 0x396   : > { %v3011_v22 = vrot.slane %v2822_v6, 1  ;;  %v3154_v25 = vrot.slane %v9885_v45, 2  ;;  %v3220_v60 = vmax.f32 %v3076_v49, %v3153_v62  ;;  %v3155_v4 = vrot.slane %v2822_v6, 2 }
 0x397   : > { %5994 = vmatmul.mubr.msk.f32.gmra.mrb[10].mxu1 %vm3513_vm3, %v3506_v27  ;;  %v3298_v43 = vrot.slane %v9885_v45, 3  ;;  %v3299_v21 = vrot.slane %v2822_v6, 3  ;;  %v3507_v44 = vmax.f32 %v3363_v1, %v3439_v29  ;;  %v3442_v39 = vrot.slane %v9885_v45, 4  ;;  %v9888_v29 = vld [vmem:[#allocation23_spill] sm:$0xff]  ;;  %v9890_v27 = vld [vmem:[#allocation25_spill] sm:$0xff]  ;;  %v9895_v1 = vld [vmem:[#allocation28_spill] sm:$0xff] }
 0x398   : > { %v3012_v46 = vsel %vm1184_vm4, %v3010_v2, %v3011_v22  ;;  %v3443_v0 = vrot.slane %v2822_v6, 4  ;;  %v3364_v47 = vmax.f32 %v3220_v60, %v3297_v51  ;;  %v3156_v7 = vsel %vm1329_vm5, %v3154_v25, %v3155_v4  ;;  %v9894_v51 = vld [vmem:[#allocation26_spill] sm:$0xff]  ;;  %v9896_v60 = vld [vmem:[#allocation24_spill] sm:$0xff] }
 0x399   : > { %v3077_v48 = vmax.f32 %v9885_v45, %v3012_v46  ;;  %v3300_v13 = vsel %vm1474_vm6, %v3298_v43, %v3299_v21  ;;  %5996 = vmatprep.mubr.msk.f32.mxu1 %vm3513_vm3, %v3507_v44  ;;  %v9886_v57 = vmov %v9883_v20  ;;  %v9411_v23 = vadd.f32 %v9041_v36, %v9397_v10  ;;  %v9892_v20 = vld [vmem:[#allocation27_spill] sm:$0xff]  ;;  %v9897_v43 = vld [vmem:[#allocation18_spill] sm:$0xff] }
 0x39a   : > { %v3444_v3 = vsel %vm432_vm0, %v3442_v39, %v3443_v0  ;;  %v2902_v32 = vsel %vm1023_vm2, %v9886_v57, -inf  ;;  %v9415_v55 = vadd.f32 %v9397_v10, %v9044_v37  ;;  %v3508_v42 = vmax.f32 %v3364_v47, %v3441_v19 }
 0x39b   : > { %v3221_v8 = vmax.f32 %v3077_v48, %v3156_v7  ;;  %v3013_v26 = vrot.slane %v2902_v32, 1  ;;  %v3157_v33 = vrot.slane %v2902_v32, 2  ;;  %v3301_v18 = vrot.slane %v2902_v32, 3 }
 0x39c   : > { %v3445_v40 = vrot.slane %v2902_v32, 4  ;;  %v9419_v14 = vadd.f32 %v9049_v30, %v9397_v10  ;;  %v9423_v11 = vadd.f32 %v9397_v10, %v9053_v50  ;;  %5997 = vmatmul.mubr.msk.f32.gmra.mrb[12].mxu1 %vm3513_vm3, %v3508_v42  ;;  %v9430_v58 = vadd.f32 %v9058_v16, %v9397_v10  ;;  %v9889_v16 = vld [vmem:[#allocation16_spill] sm:$0xff] }
 0x39d   : > { %v3365_v36 = vmax.f32 %v3221_v8, %v3300_v13  ;;  %v3014_v37 = vsel %vm1184_vm4, %v3011_v22, %v3013_v26  ;;  %v3158_v17 = vsel %vm1329_vm5, %v3155_v4, %v3157_v33  ;;  %v3302_v41 = vsel %vm1474_vm6, %v3299_v21, %v3301_v18  ;;  %v9899_v13 = vld [vmem:[#allocation29_spill] sm:$0xff] }
 0x39e   : > { %v3078_v35 = vmax.f32 %v2822_v6, %v3014_v37  ;;  %v3446_v30 = vsel %vm432_vm0, %v3443_v0, %v3445_v40  ;;  %v9436_v50 = vadd.f32 %v9397_v10, %v9062_v5  ;;  %v9440_v9 = vadd.f32 %v9887_v38, %v9397_v10  ;;  %v9891_v5 = vld [vmem:[#allocation20_spill] sm:$0xff]  ;;  %v9893_v6 = vld [vmem:[#allocation17_spill] sm:$0xff] }
 0x39f   : > { %v3509_v24 = vmax.f32 %v3365_v36, %v3444_v3  ;;  %v9444_v12 = vadd.f32 %v9397_v10, %v9888_v29  ;;  %v9448_v31 = vadd.f32 %v9889_v16, %v9397_v10  ;;  %v9452_v53 = vadd.f32 %v9397_v10, %v9890_v27  ;;  %v9900_v36 = vld [vmem:[#allocation30_spill] sm:$0xff] }
 0x3a0   : > { %v3222_v59 = vmax.f32 %v3078_v35, %v3158_v17  ;;  %v9456_v61 = vadd.f32 %v9891_v5, %v9397_v10  ;;  %v9460_v54 = vadd.f32 %v9397_v10, %v9892_v20  ;;  %v9465_v49 = vadd.f32 %v9893_v6, %v9397_v10  ;;  %v9901_v35 = vld [vmem:[#allocation31_spill] sm:$0xff]  ;;  %v9902_v6 = vld [vmem:[#allocation32_spill] sm:$0xff] }
 0x3a1   : > { %5999 = vmatprep.mubr.msk.f32.mxu1 %vm3513_vm3, %v3509_v24  ;;  %v9469_v62 = vadd.f32 %v9397_v10, %v9100_v28  ;;  %v9473_v19 = vadd.f32 %v9894_v51, %v9397_v10  ;;  %v9477_v45 = vadd.f32 %v9397_v10, %v9895_v1  ;;  %v9482_v25 = vadd.f32 %v9249_v52, %v9397_v10  ;;  %v9898_v52 = vld [vmem:[#allocation19_spill] sm:$0xff] }
 0x3a2   : > { %v3366_v2 = vmax.f32 %v3222_v59, %v3302_v41  ;;  %v9486_v28 = vadd.f32 %v9397_v10, %v9252_v63  ;;  %v6004_v4 = vadd.f32 %v9896_v60, %v9397_v10  ;;  %v6006_v21 = vadd.f32 %v9397_v10, %v9897_v43 }
 0x3a3   : > { %v6008_v7 = vadd.f32 %v9898_v52, %v9397_v10  ;;  %v6010_v63 = vadd.f32 %v9397_v10, %v9899_v13  ;;  %v6012_v37 = vadd.f32 %v9900_v36, %v9397_v10  ;;  %v6014_v41 = vadd.f32 %v9397_v10, %v9901_v35 }
 0x3a4   : > { %v3510_v22 = vmax.f32 %v3366_v2, %v3446_v30  ;;  %v6016_v51 = vadd.f32 %v9902_v6, %v9397_v10  ;;  %v9903_v2 = vld [vmem:[#allocation33_spill] sm:$0xff]  ;;  %v6026_v6 = vadd.f32 %v9397_v10, %v9163_v56 }
 0x3a6   : > { %6000 = vmatmul.mubr.msk.f32.gmra.mrb[14].mxu1 %vm3513_vm3, %v3510_v22  ;;  %v6018_v22 = vadd.f32 %v9397_v10, %v9903_v2 }
 0x3e7   : > { %v5956_v44 = vpop.f32.mrb[16].mxu1 }
 0x3e8   : > { %v6005_v46 = vadd.f32 %v6004_v4, %v5956_v44  ;;  %v4759_v39 = vpop.f32.mrb[17].mxu1 }
 0x3e9   : > { %v6007_v0 = vadd.f32 %v6006_v21, %v4759_v39 }
 0x3ea   : > { %v5549_v47 = vmul.f32 -1.442695, %v6005_v46 }
 0x3eb   : > { %v5548_v48 = vmul.f32 -1.442695, %v6007_v0 }
 0x3ec   : > { %6353 = vpow2.f32 %v5549_v47 }
 0x3ed   : > { %6355 = vpow2.f32 %v5548_v48 }
 0x3f1   : > { %v5959_v3 = vpop.f32.mrb[18].mxu1 }
 0x3f2   : > { %v6009_v57 = vadd.f32 %v6008_v7, %v5959_v3  ;;  %v4769_v32 = vpop.f32.mrb[19].mxu1  ;;  %v9904_v3 = vld [vmem:[#allocation34_spill] sm:$0xff] }
 0x3f3   : > { %v6011_v42 = vadd.f32 %v6010_v63, %v4769_v32  ;;  %v6020_v32 = vadd.f32 %v9904_v3, %v9397_v10 }
 0x3f4   : > { %v5551_v8 = vmul.f32 -1.442695, %v6009_v57 }
 0x3f5   : > { %v5550_v26 = vmul.f32 -1.442695, %v6011_v42 }
 0x3f6   : > { %6357 = vpow2.f32 %v5551_v8  ;;  %v6354_v33 = vpop.eup %6353 }
 0x3f7   : > { %6359 = vpow2.f32 %v5550_v26  ;;  %v6356_v18 = vpop.eup %6355  ;;  %v5047_v40 = vadd.f32 1.0, %v6354_v33  ;;  %v6022_v26 = vadd.f32 %v9397_v10, %v9155_v34 }
 0x3f8   : > { %v5046_v17 = vadd.f32 1.0, %v6356_v18 }
 0x3f9   : > { %6361 = vrcp.f32 %v5047_v40 }
 0x3fa   : > { %v5962_v30 = vpop.f32.mrb[20].mxu1  ;;  %6363 = vrcp.f32 %v5046_v17 }
 0x3fb   : > { %v6013_v24 = vadd.f32 %v6012_v37, %v5962_v30  ;;  %v4779_v38 = vpop.f32.mrb[21].mxu1 }
 0x3fc   : > { %v6015_v29 = vadd.f32 %v6014_v41, %v4779_v38 }
 0x3fd   : > { %v5553_v16 = vmul.f32 -1.442695, %v6013_v24 }
 0x3fe   : > { %v5552_v59 = vmul.f32 -1.442695, %v6015_v29 }
 0x3ff   : > { %6365 = vpow2.f32 %v5553_v16 }
 0x400   : > { %v6358_v27 = vpop.eup %6357  ;;  %6367 = vpow2.f32 %v5552_v59 }
 0x401   : > { %v6360_v5 = vpop.eup %6359  ;;  %v5049_v20 = vadd.f32 1.0, %v6358_v27 }
 0x402   : > { %v5048_v1 = vadd.f32 1.0, %v6360_v5  ;;  %v6024_v5 = vadd.f32 %v9159_v15, %v9397_v10 }
 0x403   : > { %6369 = vrcp.f32 %v5049_v20  ;;  %v5965_v60 = vpop.f32.mrb[22].mxu1  ;;  %v6362_v4 = vpop.eup %6361 }
 0x404   : > { %6371 = vrcp.f32 %v5048_v1  ;;  %v9504_v43 = vadd.f32 %v6016_v51, %v5965_v60  ;;  %v4789_v21 = vpop.f32.mrb[23].mxu1  ;;  %v6364_v44 = vpop.eup %6363  ;;  %v5143_v39 = vmul.f32 %v6362_v4, %v6005_v46 }
 0x405   : > { %v6019_v47 = vadd.f32 %v6018_v22, %v4789_v21  ;;  %v5142_v48 = vmul.f32 %v6364_v44, %v6007_v0 }
 0x406   : > { %v5555_v52 = vmul.f32 -1.442695, %v9504_v43  ;;  %5176 = vst.msk [vmem:[%s9509_s24 + $0x8] sm:$0xff] %vm5174_vm7, %v5143_v39 }
 0x407   : > { %v5554_v7 = vmul.f32 -1.442695, %v6019_v47  ;;  %5175 = vst.msk [vmem:[%s9509_s24] sm:$0xff] %vm5174_vm7, %v5142_v48 }
 0x408   : > { %6373 = vpow2.f32 %v5555_v52  ;;  %v9905_v52 = vld [vmem:[#allocation35_spill] sm:$0xff] }
 0x409   : > { %v6366_v13 = vpop.eup %6365  ;;  %6375 = vpow2.f32 %v5554_v7  ;;  %v6028_v7 = vadd.f32 %v9905_v52, %v9397_v10 }
 0x40a   : > { %v6368_v63 = vpop.eup %6367  ;;  %v5051_v46 = vadd.f32 1.0, %v6366_v13  ;;  %v9906_v13 = vld [vmem:[#allocation36_spill] sm:$0xff] }
 0x40b   : > { %v5050_v0 = vadd.f32 1.0, %v6368_v63  ;;  %v6030_v63 = vadd.f32 %v9397_v10, %v9906_v13 }
 0x40c   : > { %6377 = vrcp.f32 %v5051_v46 }
 0x40d   : > { %v6370_v8 = vpop.eup %6369  ;;  %6379 = vrcp.f32 %v5050_v0  ;;  %v5968_v33 = vpop.f32.mrb[24].mxu1 }
 0x40e   : > { %v6372_v18 = vpop.eup %6371  ;;  %v5145_v40 = vmul.f32 %v6370_v8, %v6009_v57  ;;  %v6021_v36 = vadd.f32 %v6020_v32, %v5968_v33  ;;  %v4799_v37 = vpop.f32.mrb[25].mxu1 }
 0x40f   : > { %v5144_v17 = vmul.f32 %v6372_v18, %v6011_v42  ;;  %v6023_v35 = vadd.f32 %v6022_v26, %v4799_v37 }
 0x410   : > { %5178 = vst.msk [vmem:[%s9509_s24 + $0x18] sm:$0xff] %vm5174_vm7, %v5145_v40  ;;  %v5557_v41 = vmul.f32 -1.442695, %v6021_v36 }
 0x411   : > { %5177 = vst.msk [vmem:[%s9509_s24 + $0x10] sm:$0xff] %vm5174_vm7, %v5144_v17  ;;  %v5556_v30 = vmul.f32 -1.442695, %v6023_v35 }
 0x412   : > { %v6374_v38 = vpop.eup %6373  ;;  %6381 = vpow2.f32 %v5557_v41 }
 0x413   : > { %v6376_v16 = vpop.eup %6375  ;;  %v5053_v34 = vadd.f32 1.0, %v6374_v38  ;;  %6383 = vpow2.f32 %v5556_v30 }
 0x414   : > { %v5052_v59 = vadd.f32 1.0, %v6376_v16 }
 0x415   : > { %6385 = vrcp.f32 %v5053_v34 }
 0x416   : > { %v6378_v57 = vpop.eup %6377  ;;  %6387 = vrcp.f32 %v5052_v59 }
 0x417   : > { %v6380_v27 = vpop.eup %6379  ;;  %v5147_v42 = vmul.f32 %v6378_v57, %v6013_v24 }
 0x418   : > { %v5146_v20 = vmul.f32 %v6380_v27, %v6015_v29 }
 0x419   : > { %5180 = vst.msk [vmem:[%s9509_s24 + $0x28] sm:$0xff] %vm5174_vm7, %v5147_v42  ;;  %v5971_v51 = vpop.f32.mrb[26].mxu1 }
 0x41a   : > { %5179 = vst.msk [vmem:[%s9509_s24 + $0x20] sm:$0xff] %vm5174_vm7, %v5146_v20  ;;  %v6025_v1 = vadd.f32 %v6024_v5, %v5971_v51  ;;  %v4809_v2 = vpop.f32.mrb[27].mxu1 }
 0x41b   : > { %v6027_v22 = vadd.f32 %v6026_v6, %v4809_v2 }
 0x41c   : > { %v6382_v60 = vpop.eup %6381  ;;  %v5559_v4 = vmul.f32 -1.442695, %v6025_v1 }
 0x41d   : > { %v6384_v24 = vpop.eup %6383  ;;  %v5055_v21 = vadd.f32 1.0, %v6382_v60  ;;  %v5558_v44 = vmul.f32 -1.442695, %v6027_v22 }
 0x41e   : > { %v5054_v15 = vadd.f32 1.0, %v6384_v24  ;;  %6389 = vpow2.f32 %v5559_v4 }
 0x41f   : > { %v6386_v29 = vpop.eup %6385  ;;  %6391 = vrcp.f32 %v5055_v21 }
 0x420   : > { %v6388_v56 = vpop.eup %6387  ;;  %v5149_v39 = vmul.f32 %v6386_v29, %v9504_v43  ;;  %6393 = vrcp.f32 %v5054_v15 }
 0x421   : > { %v5148_v48 = vmul.f32 %v6388_v56, %v6019_v47  ;;  %6395 = vpow2.f32 %v5558_v44 }
 0x422   : > { %5182 = vst.msk [vmem:[%s9509_s24 + $0x38] sm:$0xff] %vm5174_vm7, %v5149_v39 }
 0x423   : > { %5181 = vst.msk [vmem:[%s9509_s24 + $0x30] sm:$0xff] %vm5174_vm7, %v5148_v48 }
 0x424   : > { %v5974_v46 = vpop.f32.mrb[28].mxu1 }
 0x425   : > { %v6029_v0 = vadd.f32 %v6028_v7, %v5974_v46  ;;  %v4819_v3 = vpop.f32.mrb[29].mxu1 }
 0x426   : > { %v6031_v32 = vadd.f32 %v6030_v63, %v4819_v3 }
 0x427   : > { %v5561_v43 = vmul.f32 -1.442695, %v6029_v0 }
 0x428   : > { %v5560_v8 = vmul.f32 -1.442695, %v6031_v32  ;;  %v6390_v47 = vpop.eup %6389 }
 0x429   : > { %6397 = vpow2.f32 %v5561_v43  ;;  %v6392_v26 = vpop.eup %6391  ;;  %v5057_v33 = vadd.f32 1.0, %v6390_v47 }
 0x42a   : > { %6399 = vpow2.f32 %v5560_v8  ;;  %v6394_v18 = vpop.eup %6393  ;;  %v5151_v40 = vmul.f32 %v6392_v26, %v6021_v36 }
 0x42b   : > { %v6396_v37 = vpop.eup %6395  ;;  %v5150_v17 = vmul.f32 %v6394_v18, %v6023_v35  ;;  %6401 = vrcp.f32 %v5057_v33 }
 0x42c   : > { %5184 = vst.msk [vmem:[%s9509_s24 + $0x48] sm:$0xff] %vm5174_vm7, %v5151_v40  ;;  %v5056_v10 = vadd.f32 1.0, %v6396_v37 }
 0x42d   : > { %v5977_v41 = vpop.f32.mrb[30].mxu1  ;;  %5183 = vst.msk [vmem:[%s9509_s24 + $0x40] sm:$0xff] %vm5174_vm7, %v5150_v17 }
 0x42e   : > { %v6033_v30 = vadd.f32 %v9482_v25, %v5977_v41  ;;  %v4829_v38 = vpop.f32.mrb[31].mxu1  ;;  %6403 = vrcp.f32 %v5056_v10 }
 0x42f   : > { %v6035_v16 = vadd.f32 %v9486_v28, %v4829_v38 }
 0x430   : > { %v5563_v34 = vmul.f32 -1.442695, %v6033_v30 }
 0x431   : > { %v5562_v59 = vmul.f32 -1.442695, %v6035_v16 }
 0x432   : > { %6405 = vpow2.f32 %v5563_v34 }
 0x433   : > { %v6398_v36 = vpop.eup %6397  ;;  %6407 = vpow2.f32 %v5562_v59 }
 0x434   : > { %v6400_v35 = vpop.eup %6399  ;;  %v5059_v57 = vadd.f32 1.0, %v6398_v36 }
 0x435   : > { %v5058_v27 = vadd.f32 1.0, %v6400_v35  ;;  %v6402_v42 = vpop.eup %6401 }
 0x436   : > { %6409 = vrcp.f32 %v5059_v57  ;;  %v5153_v5 = vmul.f32 %v6402_v42, %v6025_v1 }
 0x437   : > { %6411 = vrcp.f32 %v5058_v27 }
 0x438   : > { %v6404_v20 = vpop.eup %6403  ;;  %5186 = vst.msk [vmem:[%s9509_s24 + $0x58] sm:$0xff] %vm5174_vm7, %v5153_v5  ;;  %v5980_v25 = vpop.f32.mrb[0].mxu1 }
 0x439   : > { %v5152_v6 = vmul.f32 %v6404_v20, %v6027_v22  ;;  %v6037_v28 = vadd.f32 %v5980_v25, %v9411_v23  ;;  %v4839_v51 = vpop.f32.mrb[1].mxu1 }
 0x43a   : > { %v6039_v2 = vadd.f32 %v4839_v51, %v9415_v55 }
 0x43b   : > { %5185 = vst.msk [vmem:[%s9509_s24 + $0x50] sm:$0xff] %vm5174_vm7, %v5152_v6  ;;  %v5565_v4 = vmul.f32 -1.442695, %v6037_v28 }
 0x43c   : > { %v6406_v60 = vpop.eup %6405  ;;  %v5564_v1 = vmul.f32 -1.442695, %v6039_v2 }
 0x43d   : > { %v6408_v24 = vpop.eup %6407  ;;  %v5061_v21 = vadd.f32 1.0, %v6406_v60  ;;  %6413 = vpow2.f32 %v5565_v4 }
 0x43e   : > { %v5060_v44 = vadd.f32 1.0, %v6408_v24 }
 0x43f   : > { %6415 = vrcp.f32 %v5061_v21 }
 0x440   : > { %v6410_v15 = vpop.eup %6409  ;;  %6417 = vrcp.f32 %v5060_v44 }
 0x441   : > { %v6412_v22 = vpop.eup %6411  ;;  %v5155_v29 = vmul.f32 %v6410_v15, %v6029_v0  ;;  %6419 = vpow2.f32 %v5564_v1 }
 0x442   : > { %v5154_v23 = vmul.f32 %v6412_v22, %v6031_v32  ;;  %v5983_v56 = vpop.f32.mrb[2].mxu1 }
 0x443   : > { %5188 = vst.msk [vmem:[%s9509_s24 + $0x68] sm:$0xff] %vm5174_vm7, %v5155_v29  ;;  %v6041_v55 = vadd.f32 %v5983_v56, %v9419_v14  ;;  %v4849_v39 = vpop.f32.mrb[3].mxu1 }
 0x444   : > { %5187 = vst.msk [vmem:[%s9509_s24 + $0x60] sm:$0xff] %vm5174_vm7, %v5154_v23  ;;  %v6043_v48 = vadd.f32 %v4849_v39, %v9423_v11 }
 0x445   : > { %v5567_v52 = vmul.f32 -1.442695, %v6041_v55 }
 0x446   : > { %v5566_v7 = vmul.f32 -1.442695, %v6043_v48 }
 0x447   : > { %6421 = vpow2.f32 %v5567_v52  ;;  %v6414_v13 = vpop.eup %6413 }
 0x448   : > { %6423 = vpow2.f32 %v5566_v7  ;;  %v5063_v46 = vadd.f32 1.0, %v6414_v13 }
 0x449   : > { %v6416_v63 = vpop.eup %6415 }
 0x44a   : > { %v6418_v0 = vpop.eup %6417  ;;  %v5157_v3 = vmul.f32 %v6416_v63, %v6033_v30  ;;  %6425 = vrcp.f32 %v5063_v46 }
 0x44b   : > { %v6420_v32 = vpop.eup %6419  ;;  %v5156_v43 = vmul.f32 %v6418_v0, %v6035_v16  ;;  %v5986_v14 = vpop.f32.mrb[4].mxu1 }
 0x44c   : > { %5190 = vst.msk [vmem:[%s9509_s24 + $0x78] sm:$0xff] %vm5174_vm7, %v5157_v3  ;;  %v5062_v8 = vadd.f32 1.0, %v6420_v32  ;;  %v6045_v47 = vadd.f32 %v5986_v14, %v9430_v58  ;;  %v4859_v11 = vpop.f32.mrb[5].mxu1 }
 0x44d   : > { %5189 = vst.msk [vmem:[%s9509_s24 + $0x70] sm:$0xff] %vm5174_vm7, %v5156_v43  ;;  %v6047_v26 = vadd.f32 %v4859_v11, %v9436_v50 }
 0x44e   : > { %6427 = vrcp.f32 %v5062_v8  ;;  %v5569_v33 = vmul.f32 -1.442695, %v6045_v47 }
 0x44f   : > { %v5568_v18 = vmul.f32 -1.442695, %v6047_v26 }
 0x450   : > { %6429 = vpow2.f32 %v5569_v33 }
 0x451   : > { %v6422_v40 = vpop.eup %6421  ;;  %6431 = vpow2.f32 %v5568_v18 }
 0x452   : > { %v6424_v37 = vpop.eup %6423  ;;  %v5065_v17 = vadd.f32 1.0, %v6422_v40 }
 0x453   : > { %v5064_v10 = vadd.f32 1.0, %v6424_v37 }
 0x454   : > { %6433 = vrcp.f32 %v5065_v17  ;;  %v6426_v41 = vpop.eup %6425 }
 0x455   : > { %6435 = vrcp.f32 %v5064_v10  ;;  %v5159_v58 = vmul.f32 %v6426_v41, %v6037_v28 }
 0x457   : > { %5192 = vst.msk [vmem:[%s9509_s24 + $0x88] sm:$0xff] %vm5174_vm7, %v5159_v58 }
 0x458   : > { %v6428_v30 = vpop.eup %6427 }
 0x459   : > { %v5158_v38 = vmul.f32 %v6428_v30, %v6039_v2 }
 0x45a   : > { %v6430_v16 = vpop.eup %6429 }
 0x45b   : > { %v5989_v50 = vpop.f32.mrb[6].mxu1  ;;  %v6432_v34 = vpop.eup %6431  ;;  %5191 = vst.msk [vmem:[%s9509_s24 + $0x80] sm:$0xff] %vm5174_vm7, %v5158_v38  ;;  %v5067_v59 = vadd.f32 1.0, %v6430_v16 }
 0x45c   : > { %v6049_v36 = vadd.f32 %v5989_v50, %v9440_v9  ;;  %v4869_v35 = vpop.f32.mrb[7].mxu1  ;;  %v5066_v57 = vadd.f32 1.0, %v6432_v34 }
 0x45d   : > { %v6051_v27 = vadd.f32 %v4869_v35, %v9444_v12  ;;  %6437 = vrcp.f32 %v5067_v59 }
 0x45e   : > { %v5571_v42 = vmul.f32 -1.442695, %v6049_v36  ;;  %v6434_v5 = vpop.eup %6433  ;;  %6439 = vrcp.f32 %v5066_v57 }
 0x45f   : > { %v5570_v20 = vmul.f32 -1.442695, %v6051_v27  ;;  %v6436_v25 = vpop.eup %6435  ;;  %v5161_v6 = vmul.f32 %v6434_v5, %v6041_v55 }
 0x460   : > { %6441 = vpow2.f32 %v5571_v42  ;;  %v5160_v28 = vmul.f32 %v6436_v25, %v6043_v48 }
 0x461   : > { %6443 = vpow2.f32 %v5570_v20  ;;  %5194 = vst.msk [vmem:[%s9509_s24 + $0x98] sm:$0xff] %vm5174_vm7, %v5161_v6 }
 0x462   : > { %5193 = vst.msk [vmem:[%s9509_s24 + $0x90] sm:$0xff] %vm5174_vm7, %v5160_v28 }
 0x464   : > { %v5992_v51 = vpop.f32.mrb[8].mxu1 }
 0x465   : > { %v9575_v9 = vadd.f32 %v5992_v51, %v9448_v31  ;;  %v4879_v2 = vpop.f32.mrb[9].mxu1 }
 0x466   : > { %v9578_v12 = vadd.f32 %v4879_v2, %v9452_v53 }
 0x467   : > { %v5573_v60 = vmul.f32 -1.442695, %v9575_v9  ;;  %v6438_v24 = vpop.eup %6437 }
 0x468   : > { %v5572_v4 = vmul.f32 -1.442695, %v9578_v12  ;;  %v6440_v1 = vpop.eup %6439  ;;  %v5163_v44 = vmul.f32 %v6438_v24, %v6045_v47 }
 0x469   : > { %6445 = vpow2.f32 %v5573_v60  ;;  %v5162_v29 = vmul.f32 %v6440_v1, %v6047_v26 }
 0x46a   : > { %v5995_v21 = vpop.f32.mrb[10].mxu1  ;;  %6447 = vpow2.f32 %v5572_v4  ;;  %v6442_v22 = vpop.eup %6441  ;;  %5196 = vst.msk [vmem:[%s9509_s24 + $0xa8] sm:$0xff] %vm5174_vm7, %v5163_v44 }
 0x46b   : > { %v9583_v15 = vadd.f32 %v5995_v21, %v9456_v61  ;;  %v4889_v31 = vpop.f32.mrb[11].mxu1  ;;  %v6444_v23 = vpop.eup %6443  ;;  %v5069_v56 = vadd.f32 1.0, %v6442_v22  ;;  %5195 = vst.msk [vmem:[%s9509_s24 + $0xa0] sm:$0xff] %vm5174_vm7, %v5162_v29 }
 0x46c   : > { %v6059_v53 = vadd.f32 %v4889_v31, %v9460_v54  ;;  %v5068_v39 = vadd.f32 1.0, %v6444_v23 }
 0x46d   : > { %v5575_v55 = vmul.f32 -1.442695, %v9583_v15  ;;  %6449 = vrcp.f32 %v5069_v56 }
 0x46e   : > { %v5574_v48 = vmul.f32 -1.442695, %v6059_v53  ;;  %6451 = vrcp.f32 %v5068_v39 }
 0x46f   : > { %6453 = vpow2.f32 %v5575_v55  ;;  %v5998_v61 = vpop.f32.mrb[12].mxu1 }
 0x470   : > { %6455 = vpow2.f32 %v5574_v48  ;;  %v6061_v52 = vadd.f32 %v5998_v61, %v9465_v49  ;;  %v4899_v7 = vpop.f32.mrb[13].mxu1 }
 0x471   : > { %v6063_v54 = vadd.f32 %v4899_v7, %v9469_v62 }
 0x472   : > { %v5577_v63 = vmul.f32 -1.442695, %v6061_v52 }
 0x473   : > { %v6446_v13 = vpop.eup %6445  ;;  %v5576_v3 = vmul.f32 -1.442695, %v6063_v54 }
 0x474   : > { %v6448_v46 = vpop.eup %6447  ;;  %v5071_v0 = vadd.f32 1.0, %v6446_v13  ;;  %6457 = vpow2.f32 %v5577_v63 }
 0x475   : > { %v5070_v32 = vadd.f32 1.0, %v6448_v46 }
 0x476   : > { %6459 = vrcp.f32 %v5071_v0 }
 0x477   : > { %6461 = vrcp.f32 %v5070_v32  ;;  %v6450_v43 = vpop.eup %6449 }
 0x478   : > { %6463 = vpow2.f32 %v5576_v3  ;;  %v6452_v14 = vpop.eup %6451  ;;  %v5165_v8 = vmul.f32 %v6450_v43, %v6049_v36 }
 0x479   : > { %v6001_v47 = vpop.f32.mrb[14].mxu1  ;;  %v6454_v49 = vpop.eup %6453  ;;  %v5164_v11 = vmul.f32 %v6452_v14, %v6051_v27 }
 0x47a   : > { %v6065_v62 = vadd.f32 %v6001_v47, %v9473_v19  ;;  %v4909_v26 = vpop.f32.mrb[15].mxu1  ;;  %v6456_v33 = vpop.eup %6455  ;;  %5198 = vst.msk [vmem:[%s9509_s24 + $0xb8] sm:$0xff] %vm5174_vm7, %v5165_v8  ;;  %v5073_v18 = vadd.f32 1.0, %v6454_v49 }
 0x47b   : > { %v6067_v40 = vadd.f32 %v4909_v26, %v9477_v45  ;;  %5197 = vst.msk [vmem:[%s9509_s24 + $0xb0] sm:$0xff] %vm5174_vm7, %v5164_v11  ;;  %v5072_v37 = vadd.f32 1.0, %v6456_v33 }
 0x47c   : > { %v5579_v17 = vmul.f32 -1.442695, %v6065_v62  ;;  %6465 = vrcp.f32 %v5073_v18 }
 0x47d   : > { %v5578_v10 = vmul.f32 -1.442695, %v6067_v40  ;;  %6467 = vrcp.f32 %v5072_v37 }
 0x47e   : > { %v6458_v41 = vpop.eup %6457  ;;  %6469 = vpow2.f32 %v5579_v17 }
 0x47f   : > { %v5075_v19 = vadd.f32 1.0, %v6458_v41  ;;  %6471 = vpow2.f32 %v5578_v10 }
 0x480   : > { %v6460_v58 = vpop.eup %6459 }
 0x481   : > { %v6462_v30 = vpop.eup %6461  ;;  %v5167_v38 = vmul.f32 %v6460_v58, %v9575_v9  ;;  %6473 = vrcp.f32 %v5075_v19 }
 0x482   : > { %v6464_v45 = vpop.eup %6463  ;;  %v5166_v16 = vmul.f32 %v6462_v30, %v9578_v12 }
 0x483   : > { %5200 = vst.msk [vmem:[%s9509_s24 + $0xc8] sm:$0xff] %vm5174_vm7, %v5167_v38  ;;  %v5074_v50 = vadd.f32 1.0, %v6464_v45 }
 0x484   : > { %5199 = vst.msk [vmem:[%s9509_s24 + $0xc0] sm:$0xff] %vm5174_vm7, %v5166_v16 }
 0x485   : > { %6475 = vrcp.f32 %v5074_v50 }
 0x486   : > { %v6466_v34 = vpop.eup %6465 }
 0x487   : > { %v6468_v59 = vpop.eup %6467  ;;  %v5169_v36 = vmul.f32 %v6466_v34, %v9583_v15 }
 0x488   : > { %v6470_v35 = vpop.eup %6469  ;;  %v5168_v57 = vmul.f32 %v6468_v59, %v6059_v53 }
 0x489   : > { %v6472_v27 = vpop.eup %6471  ;;  %5202 = vst.msk [vmem:[%s9509_s24 + $0xd8] sm:$0xff] %vm5174_vm7, %v5169_v36  ;;  %v5077_v42 = vadd.f32 1.0, %v6470_v35 }
 0x48a   : > { %5201 = vst.msk [vmem:[%s9509_s24 + $0xd0] sm:$0xff] %vm5174_vm7, %v5168_v57  ;;  %v5076_v5 = vadd.f32 1.0, %v6472_v27 }
 0x48b   : > { %v6474_v20 = vpop.eup %6473  ;;  %6477 = vrcp.f32 %v5077_v42 }
 0x48c   : > { %v5171_v25 = vmul.f32 %v6474_v20, %v6061_v52  ;;  %6479 = vrcp.f32 %v5076_v5 }
 0x48e   : > { %5204 = vst.msk [vmem:[%s9509_s24 + $0xe8] sm:$0xff] %vm5174_vm7, %v5171_v25 }
 0x48f   : > { %v6476_v6 = vpop.eup %6475 }
 0x490   : > { %v5170_v28 = vmul.f32 %v6476_v6, %v6063_v54 }
 0x492   : > { %5203 = vst.msk [vmem:[%s9509_s24 + $0xe0] sm:$0xff] %vm5174_vm7, %v5170_v28 }
 0x495   : > { %v6478_v51 = vpop.eup %6477 }
 0x496   : > { %v6480_v9 = vpop.eup %6479  ;;  %v5173_v2 = vmul.f32 %v6478_v51, %v6065_v62 }
 0x497   : > { %v5172_v12 = vmul.f32 %v6480_v9, %v6067_v40 }
 0x498   : > { %5206 = vst.msk [vmem:[%s9509_s24 + $0xf8] sm:$0xff] %vm5174_vm7, %v5173_v2 }
 0x499   : > { %5205 = vst.msk [vmem:[%s9509_s24 + $0xf0] sm:$0xff] %vm5174_vm7, %v5172_v12 }
 0x49a   : > { %6638 = shalt.err (!%p6635_p13)
}
 0x49b   : > { %s6639_s13 = scalar_lea.hbm %s9619_s12, 4096  ;;  %s6643_s27 = scalar_lea.hbm %s9674_s5, 8192 }
 0x49c   : > { %p6640_p0 = scmp.ne.s32.totalorder %s9619_s12, %s6639_s13  ;;  %p6644_p9 = scmp.lt.u32.totalorder %s9619_s12, %s9674_s5 }
 0x49d   : > { %p6645_p12 = scmp.lt.u32.totalorder %s6643_s27, %s6639_s13  ;;  %p6647_p4 = scmp.lt.u32.totalorder %s6639_s13, %s9619_s12 }
 0x49e   : > { %p6641_p5 = pnand %p6640_p0, %p6895_p1 }
 0x49f   : > { %p6646_p2 = por %p6645_p12, %p6644_p9 }
 0x4a0   : > { %p6642_p11 = pneg %p6641_p5 }
 0x4a1   : > { %p6648_p6 = por %p6647_p4, %p6646_p2 }
 0x4a3   : > { %p6649_p8 = pnand %p6648_p6, %p6642_p11 }
 0x4a5   : > { %6652 = shalt.err (!%p6649_p8)
}
 0x4a6   : > { %s6711_s26 = smov 128   ;;  %s6712_s11 = smov 8  }
 0x4a7   : > { %6150 = dma.vmem_to_hbm [thread:$0]  (%p6895_p1), %s9621_s9, 4096, %s9619_s12, %s5208_s22, %s6711_s26, %s6711_s26, %s6712_s11  }
 0x4a8 PF: > { %s5236_s8 = sand.u32 1, %s6687_s18   ;;  %p9907_p3 = scmp.ne.s32.totalorder %s9716_s25, 0 }
 0x4a9   : > { %p9908_p7 = scmp.ge.s32.totalorder %s6699_s21, 2  ;;  %s5237_s23 = scalar_lea.sflag [#allocation4], %s5236_s8 }
 0x4ab   : > { %p6170_p10 = pnand %p9908_p7, %p9907_p3 }
 0x4ad   : > { %6682 = dma.done.wait (!%p6170_p10), %s5237_s23, 4096  }
 0x4ae   : > { %6684 = vsyncadd (!%p6170_p10), %s5237_s23, 4294963200  ;;  %p20_p13 = scmp.ge.s32.totalorder %s6885_s14, 4   ;;  %s9909_s18 = smov %s6691_s19 }
 0x4af   : > { %s9910_s19 = smov %s6695_s20  ;;  %s9911_s20 = smov %s6901_s16 }
 0x4b0   : > { %s9912_s21 = smov %s6885_s14  ;;  %22 = sbr.rel (!%p20_p13) target bundleno = 7 (0x7), region = 104 }
 0x4b7   :  { %5242 = vsyncpa [#allocation3], 1 }
 0x4b8   :  { %5244 = vsyncpa [#allocation3 + $0x1], 1 }
 0x4b9   :  { %5245 = vsyncpa [#allocation6], 1 }
 0x4ba   :  { %5246 = vsyncpa [#allocation9], 1 }
 0x4bb   :  { %5247 = vsyncpa [#allocation4], 1 }
 0x4bc   :  { %5249 = vsyncpa [#allocation4 + $0x1], 1 }

</bundles_post_ra>
